<compile_context>
chip_gen: v7x
topology: tpu7x:2x2x1
jax: 0.10.0
libtpu: 0.0.40
codegen_flags: <defaults>
</compile_context>

<pallas_src>
import numpy as np
import jax
import jax.numpy as jnp
from jax.experimental import pallas as pl
from jax.experimental.pallas import tpu as pltpu

NEG_SLOPE = 0.01     # nn.LeakyReLU() default
LANE_BASE = 128      # lane offset of the image interior inside the staging buffer


# ----------------------------------------------------------------------------
# Constant matrices (numpy, passed to the kernel as inputs)
# ----------------------------------------------------------------------------
def _interp_matrix(out_size, in_size):
    """1-D interpolation matrix matching torch bilinear, align_corners=False."""
    A = np.zeros((out_size, in_size), np.float32)
    scale = in_size / out_size
    for i in range(out_size):
        src = (i + 0.5) * scale - 0.5
        src = max(src, 0.0)                       # torch clamps negative src to 0
        i0 = min(int(np.floor(src)), in_size - 1)
        i1 = min(i0 + 1, in_size - 1)
        w1 = src - i0
        A[i, i0] += 1.0 - w1
        A[i, i1] += w1
    return A


def _bilinear_matrix(H, W, h, w):
    """(h*w, H*W) matrix M with  x @ M == bilinear_resize(x)  for x: (C, h*w)."""
    Ah = _interp_matrix(H, h)                     # (H, h)
    Aw = _interp_matrix(W, w)                     # (W, w)
    return np.kron(Ah, Aw).T.astype(np.float32)   # (h*w, H*W)


def _pool_select_matrix(H, W):
    """(H*W, H/2*W/2) 0/1 matrix selecting the top-left element of every 2x2
    window; combined with the in-kernel shift-max it implements MaxPool2d(2)."""
    H2, W2 = H // 2, W // 2
    S = np.zeros((H * W, H2 * W2), np.float32)
    for ho in range(H2):
        for wo in range(W2):
            S[(2 * ho) * W + 2 * wo, ho * W2 + wo] = 1.0
    return S


# ----------------------------------------------------------------------------
# Fused UNet kernel
# ----------------------------------------------------------------------------
def _make_unet_kernel(H, W, c_in, n_f, c_out, c_max, B, b_off):
    HW = H * W
    H2, W2 = H // 2, W // 2
    HW2 = H2 * W2
    F, F2 = n_f, 2 * n_f
    LB = LANE_BASE

    def kernel(x_ref,
               w_e0c1, w_e0c2, w_e1c1, w_e1c2, w_up, w_d1, w_d2,
               w_hd, b_all, m_up, s_pool,
               out_ref, pbuf):

        # ---- per-grid-step halo zeroing (these lanes are never written) ----
        pbuf[:, LB - 32:LB] = jnp.zeros((c_max, 32), jnp.float32)
        pbuf[:, LB + HW:LB + HW + 32] = jnp.zeros((c_max, 32), jnp.float32)

        # ---- hoisted horizontal boundary masks (one pair per resolution) ---
        colF = jax.lax.broadcasted_iota(jnp.int32, (1, HW), 1) & (W - 1)
        mlF, mrF = colF > 0, colF < (W - 1)
        colC = jax.lax.broadcasted_iota(jnp.int32, (1, HW2), 1) & (W2 - 1)
        mlC, mrC = colC > 0, colC < (W2 - 1)

        def stage(parts, hw):
            """Write a channel concatenation of (Ci, hw) values into the
            interior lanes of the staging buffer (halos stay zero)."""
            off = 0
            for p in parts:
                ci = p.shape[0]
                pbuf[off:off + ci, LB:LB + hw] = p
                off += ci

        def conv3x3(w2, boff, cout, ih, iw, cin, leaky, ml, mr):
            """3x3 'same' conv on the staged (cin, ih*iw) image -> (cout, ih*iw).
            Vertical padding via the zeroed halo lanes, horizontal padding via
            the hoisted lane masks.  3 independent accumulators (one per ky)."""
            hw = ih * iw
            accs = []
            for ky in range(3):
                acc = None
                for kx in range(3):
                    start = LB + (ky - 1) * iw + (kx - 1)
                    xs = pbuf[0:cin, start:start + hw]          # (cin, hw)
                    if kx == 0:                                  # left pad column
                        xs = jnp.where(ml, xs, 0.0)
                    elif kx == 2:                                # right pad column
                        xs = jnp.where(mr, xs, 0.0)
                    k = ky * 3 + kx
                    wk = w2[:, k * cin:(k + 1) * cin]            # (cout, cin)
                    d = jnp.dot(wk, xs, preferred_element_type=jnp.float32)
                    acc = d if acc is None else acc + d
                accs.append(acc)
            bias = b_all[boff:boff + cout, :]
            out = (accs[0] + accs[1]) + (accs[2] + bias)
            if leaky:
                out = jnp.where(out >= 0, out, NEG_SLOPE * out)
            return out

        for b in range(B):
            x = x_ref[b].astype(jnp.float32)                     # (c_in, HW)

            # ---------------- encoder stage 0 (H x W) ----------------
            stage([x], HW)
            a0 = conv3x3(w_e0c1, b_off["e0c1"], F, H, W, c_in, True, mlF, mrF)
            stage([a0], HW)
            f0 = conv3x3(w_e0c2, b_off["e0c2"], F, H, W, F, True, mlF, mrF)  # skip

            # ---------------- MaxPool2d(2): shift-max + one selection dot ----
            stage([f0], HW)
            x1 = pbuf[0:F, LB + 1:LB + 1 + HW]
            xW = pbuf[0:F, LB + W:LB + W + HW]
            xW1 = pbuf[0:F, LB + W + 1:LB + W + 1 + HW]
            m2 = jnp.maximum(jnp.maximum(f0, x1), jnp.maximum(xW, xW1))
            pooled = jnp.dot(m2, s_pool[...], preferred_element_type=jnp.float32)

            # clear the stale strip that becomes the bottom halo at H/2 x W/2
            pbuf[:, LB + HW2:LB + HW2 + 16] = jnp.zeros((c_max, 16), jnp.float32)

            # ---------------- encoder stage 1 (H/2 x W/2) ----------------
            stage([pooled], HW2)
            a1 = conv3x3(w_e1c1, b_off["e1c1"], F2, H2, W2, F, True, mlC, mrC)
            stage([a1], HW2)
            f1 = conv3x3(w_e1c2, b_off["e1c2"], F2, H2, W2, F2, True, mlC, mrC)
            # (the reference encoder pools once more, but that result is unused)

            # -------- decoder: bilinear upsample (align_corners=False) -------
            up = jnp.dot(f1, m_up[...], preferred_element_type=jnp.float32)  # (F2,HW)
            stage([up], HW)
            upc = conv3x3(w_up, b_off["up"], F, H, W, F2, False, mlF, mrF)   # no act

            # torch.cat([upconv_out, skip], dim=1)
            stage([upc, f0], HW)
            d = conv3x3(w_d1, b_off["d1"], F, H, W, 2 * F, True, mlF, mrF)
            stage([d], HW)
            d = conv3x3(w_d2, b_off["d2"], F, H, W, F, True, mlF, mrF)

            # ---------------- 1x1 head ----------------
            out = jnp.dot(w_hd[...], d, preferred_element_type=jnp.float32) \
                + b_all[b_off["head"]:b_off["head"] + c_out, :]
            out_ref[b] = out.astype(out_ref.dtype)               # (c_out, HW)

    return kernel


# ----------------------------------------------------------------------------
# Wrapper: one pallas_call for the whole forward pass
# ----------------------------------------------------------------------------
def unet_forward(x_nchw, params, images_per_step=None):
    """x: (N, 4, H, W) float32 -> (N, 2, H, W).  Whole UNet in one pallas_call."""
    N, c_in, H, W = x_nchw.shape
    assert H % 2 == 0 and W % 2 == 0
    assert (W & (W - 1)) == 0 and W >= 4, "W must be a power of two (lane-mask trick)"
    assert W + 1 <= 32 and (W // 2) + 1 <= 16   # halo band / mid-strip widths
    assert W + 1 <= LANE_BASE

    n_f = params["e0c1_w"].shape[0]              # 8
    c_out = params["head_w"].shape[0]            # 2
    HW = H * W
    c_max = max(c_in, 2 * n_f)
    pbuf_lanes = LANE_BASE + HW + 128            # interior + zero halos

    # images per grid step: amortize per-step overhead, keep grid >= 2 (v7x TCs)
    if images_per_step is None:
        B = 1
        for cand in (8, 4, 2):
            if N % cand == 0 and N // cand >= 2:
                B = cand
                break
    else:
        B = images_per_step
    assert N % B == 0

    # conv weights: PyTorch (Cout, Cin, 3, 3) -> lane-dense (Cout, 9*Cin),
    # column layout (ky*3+kx)*Cin + ci
    def w2d(key):
        w = params[key]
        co, ci = w.shape[0], w.shape[1]
        return jnp.transpose(w, (0, 2, 3, 1)).reshape(co, 9 * ci)

    # all biases packed into one (sum_cout, 1) constant
    bias_order = ["e0c1", "e0c2", "e1c1", "e1c2", "up", "d1", "d2", "head"]
    b_off, off, b_parts = {}, 0, []
    for name in bias_order:
        bb = params[name + "_b"].reshape(-1, 1)
        b_off[name] = off
        off += bb.shape[0]
        b_parts.append(bb)
    b_all = jnp.concatenate(b_parts, axis=0)

    w_hd = params["head_w"].reshape(c_out, n_f)                   # 1x1 conv
    m_up = jnp.asarray(_bilinear_matrix(H, W, H // 2, W // 2))    # (HW/4, HW)
    s_pool = jnp.asarray(_pool_select_matrix(H, W))               # (HW, HW/4)

    ins = (
        x_nchw.reshape(N, c_in, HW),
        w2d("e0c1_w"), w2d("e0c2_w"), w2d("e1c1_w"), w2d("e1c2_w"),
        w2d("up_w"), w2d("d1_w"), w2d("d2_w"),
        w_hd, b_all, m_up, s_pool,
    )

    in_specs = [pl.BlockSpec((B, c_in, HW), lambda n: (n, 0, 0))]
    for arr in ins[1:]:
        in_specs.append(
            pl.BlockSpec(tuple(arr.shape), lambda n, _nd=arr.ndim: (0,) * _nd))

    kernel = _make_unet_kernel(H, W, c_in, n_f, c_out, c_max, B, b_off)

    out = pl.pallas_call(
        kernel,
        out_shape=jax.ShapeDtypeStruct((N, c_out, HW), x_nchw.dtype),
        grid_spec=pltpu.PrefetchScalarGridSpec(
            num_scalar_prefetch=0,
            grid=(N // B,),
            in_specs=in_specs,
            out_specs=pl.BlockSpec((B, c_out, HW), lambda n: (n, 0, 0)),
            scratch_shapes=[pltpu.VMEM((c_max, pbuf_lanes), jnp.float32)],
        ),
        compiler_params=pltpu.CompilerParams(dimension_semantics=("parallel",)),
    )(*ins)
    return out.reshape(N, c_out, H, W)


# ----------------------------------------------------------------------------
# Parameter initialization (PyTorch weight layout: (Cout, Cin, kh, kw))
# ----------------------------------------------------------------------------
def _conv_param(key, c_out, c_in, k):
    kw, kb = jax.random.split(key)
    bound = 1.0 / np.sqrt(c_in * k * k)
    w = jax.random.uniform(kw, (c_out, c_in, k, k), jnp.float32, -bound, bound)
    b = jax.random.uniform(kb, (c_out,), jnp.float32, -bound, bound)
    return w, b


def init_unet_params(key, c_in=4, c_out=2, n_f=8, k=3):
    layers = [
        ("e0c1", n_f, c_in, k), ("e0c2", n_f, n_f, k),             # encoder stage 0
        ("e1c1", 2 * n_f, n_f, k), ("e1c2", 2 * n_f, 2 * n_f, k),  # encoder stage 1
        ("up", n_f, 2 * n_f, k),                                   # decoder upconv
        ("d1", n_f, 2 * n_f, k), ("d2", n_f, n_f, k),              # decoder ConvBlock
        ("head", c_out, n_f, 1),                                   # 1x1 head
    ]
    keys = jax.random.split(key, len(layers))
    params = {}
    for kk, (name, co, ci, ks) in zip(keys, layers):
        w, b = _conv_param(kk, co, ci, ks)
        params[name + "_w"] = w
        params[name + "_b"] = b
    return params


if __name__ == "__main__":
    # UNet(dim=2, n_ch_in=4, n_ch_out=2, n_enc_stages=2, n_convs_per_stage=2,
    #      n_filters=8, kernel_size=3, bias=True, res_connection=False)
    N, CIN, COUT, NF, H, W = 2, 4, 2, 8, 16, 16

    key = jax.random.PRNGKey(0)
    kp, kx = jax.random.split(key)
    params = init_unet_params(kp, CIN, COUT, NF)
    x = jax.random.normal(kx, (N, CIN, H, W), jnp.float32)   # NCHW, like PyTorch

    out = jax.jit(unet_forward)(x, params)
    out = jax.block_until_ready(out)
    assert out.shape == (N, COUT, H, W), out.shape
    assert out.dtype == jnp.float32
    assert bool(jnp.all(jnp.isfinite(out)))
    print("KERNEL_OK")
</pallas_src>

<mosaic_0001>
module attributes {stable_mosaic.version = 11 : i64} {
  func.func @kernel(%arg0: i32, %arg1: memref<1x4x256xf32, #tpu.memory_space<vmem>>, %arg2: memref<8x36xf32, #tpu.memory_space<vmem>>, %arg3: memref<8x72xf32, #tpu.memory_space<vmem>>, %arg4: memref<16x72xf32, #tpu.memory_space<vmem>>, %arg5: memref<16x144xf32, #tpu.memory_space<vmem>>, %arg6: memref<8x144xf32, #tpu.memory_space<vmem>>, %arg7: memref<8x144xf32, #tpu.memory_space<vmem>>, %arg8: memref<8x72xf32, #tpu.memory_space<vmem>>, %arg9: memref<2x8xf32, #tpu.memory_space<vmem>>, %arg10: memref<74x1xf32, #tpu.memory_space<vmem>>, %arg11: memref<64x256xf32, #tpu.memory_space<vmem>>, %arg12: memref<256x64xf32, #tpu.memory_space<vmem>>, %arg13: memref<1x2x256xf32, #tpu.memory_space<vmem>>, %arg14: memref<16x512xf32, #tpu.memory_space<vmem>>) attributes {dimension_semantics = [#tpu.dimension_semantics<parallel>], iteration_bounds = array<i64: 2>, scalar_prefetch = 0 : i64, scratch_operands = 1 : i64, tpu.core_type = #tpu.core_type<tc>, window_params = [{transform_indices = @transform_0, window_bounds = array<i64: 1, 4, 256>}, {pipeline_mode = #tpu.pipeline_mode<synchronous>, transform_indices = @transform_1, window_bounds = array<i64: 8, 36>}, {pipeline_mode = #tpu.pipeline_mode<synchronous>, transform_indices = @transform_2, window_bounds = array<i64: 8, 72>}, {pipeline_mode = #tpu.pipeline_mode<synchronous>, transform_indices = @transform_3, window_bounds = array<i64: 16, 72>}, {pipeline_mode = #tpu.pipeline_mode<synchronous>, transform_indices = @transform_4, window_bounds = array<i64: 16, 144>}, {pipeline_mode = #tpu.pipeline_mode<synchronous>, transform_indices = @transform_5, window_bounds = array<i64: 8, 144>}, {pipeline_mode = #tpu.pipeline_mode<synchronous>, transform_indices = @transform_6, window_bounds = array<i64: 8, 144>}, {pipeline_mode = #tpu.pipeline_mode<synchronous>, transform_indices = @transform_7, window_bounds = array<i64: 8, 72>}, {pipeline_mode = #tpu.pipeline_mode<synchronous>, transform_indices = @transform_8, window_bounds = array<i64: 2, 8>}, {pipeline_mode = #tpu.pipeline_mode<synchronous>, transform_indices = @transform_9, window_bounds = array<i64: 74, 1>}, {pipeline_mode = #tpu.pipeline_mode<synchronous>, transform_indices = @transform_10, window_bounds = array<i64: 64, 256>}, {pipeline_mode = #tpu.pipeline_mode<synchronous>, transform_indices = @transform_11, window_bounds = array<i64: 256, 64>}, {transform_indices = @transform_12, window_bounds = array<i64: 1, 2, 256>}]} {
    %cst = arith.constant 0.000000e+00 : f32
    %0 = vector.broadcast %cst : f32 to vector<16x32xf32>
    %c0 = arith.constant 0 : index
    %c96 = arith.constant 96 : index
    %1 = vector.load %arg14[%c0, %c96] : memref<16x512xf32, #tpu.memory_space<vmem>>, vector<16x32xf32>
    tpu.vector_store %arg14[%c0, %c96], %0 {strides = array<i32>} : memref<16x512xf32, #tpu.memory_space<vmem>>, vector<16x32xf32>,
    %cst_0 = arith.constant 0.000000e+00 : f32
    %2 = vector.broadcast %cst_0 : f32 to vector<16x32xf32>
    %c0_1 = arith.constant 0 : index
    %c384 = arith.constant 384 : index
    %3 = vector.load %arg14[%c0_1, %c384] : memref<16x512xf32, #tpu.memory_space<vmem>>, vector<16x32xf32>
    tpu.vector_store %arg14[%c0_1, %c384], %2 {strides = array<i32>} : memref<16x512xf32, #tpu.memory_space<vmem>>, vector<16x32xf32>,
    %4 = tpu.iota {dimensions = array<i32: 1>} : vector<1x256xi32>
    %c15_i32 = arith.constant 15 : i32
    %5 = vector.broadcast %c15_i32 : i32 to vector<1x256xi32>
    %6 = arith.andi %4, %5 : vector<1x256xi32>
    %c0_i32 = arith.constant 0 : i32
    %7 = vector.broadcast %c0_i32 : i32 to vector<1x256xi32>
    %8 = arith.cmpi sgt, %6, %7 : vector<1x256xi32>
    %c15_i32_2 = arith.constant 15 : i32
    %9 = vector.broadcast %c15_i32_2 : i32 to vector<1x256xi32>
    %10 = arith.cmpi slt, %6, %9 : vector<1x256xi32>
    %11 = tpu.iota {dimensions = array<i32: 1>} : vector<1x64xi32>
    %c7_i32 = arith.constant 7 : i32
    %12 = vector.broadcast %c7_i32 : i32 to vector<1x64xi32>
    %13 = arith.andi %11, %12 : vector<1x64xi32>
    %c0_i32_3 = arith.constant 0 : i32
    %14 = vector.broadcast %c0_i32_3 : i32 to vector<1x64xi32>
    %15 = arith.cmpi sgt, %13, %14 : vector<1x64xi32>
    %c7_i32_4 = arith.constant 7 : i32
    %16 = vector.broadcast %c7_i32_4 : i32 to vector<1x64xi32>
    %17 = arith.cmpi slt, %13, %16 : vector<1x64xi32>
    %c0_5 = arith.constant 0 : index
    %c0_6 = arith.constant 0 : index
    %c0_7 = arith.constant 0 : index
    %18 = vector.load %arg1[%c0_5, %c0_6, %c0_7] : memref<1x4x256xf32, #tpu.memory_space<vmem>>, vector<1x4x256xf32>
    %19 = vector.shape_cast %18 : vector<1x4x256xf32> to vector<4x256xf32>
    %c0_8 = arith.constant 0 : index
    %c128 = arith.constant 128 : index
    %20 = vector.load %arg14[%c0_8, %c128] : memref<16x512xf32, #tpu.memory_space<vmem>>, vector<4x256xf32>
    tpu.vector_store %arg14[%c0_8, %c128], %19 {strides = array<i32>} : memref<16x512xf32, #tpu.memory_space<vmem>>, vector<4x256xf32>,
    %c0_9 = arith.constant 0 : index
    %c111 = arith.constant 111 : index
    %21 = vector.load %arg14[%c0_9, %c111] : memref<16x512xf32, #tpu.memory_space<vmem>>, vector<4x256xf32>
    %cst_10 = arith.constant 0.000000e+00 : f32
    %22 = vector.shape_cast %8 : vector<1x256xi1> to vector<1x256xi1>
    %23 = vector.broadcast %22 : vector<1x256xi1> to vector<4x256xi1>
    %24 = vector.broadcast %cst_10 : f32 to vector<4x256xf32>
    %25 = arith.select %23, %21, %24 : vector<4x256xi1>, vector<4x256xf32>
    %c0_11 = arith.constant 0 : index
    %c0_12 = arith.constant 0 : index
    %26 = vector.load %arg2[%c0_11, %c0_12] : memref<8x36xf32, #tpu.memory_space<vmem>>, vector<8x4xf32>
    %cst_13 = arith.constant dense<0.000000e+00> : vector<8x256xf32>
    %27 = tpu.matmul %26, %25, %cst_13 {dimension_numbers = #tpu.dot_dimension_numbers<[1], [0], [0], [1], [0, 0, 1, 1], [], []>} : vector<8x4xf32>, vector<4x256xf32>, vector<8x256xf32> -> vector<8x256xf32>
    %c0_14 = arith.constant 0 : index
    %c112 = arith.constant 112 : index
    %28 = vector.load %arg14[%c0_14, %c112] : memref<16x512xf32, #tpu.memory_space<vmem>>, vector<4x256xf32>
    %c0_15 = arith.constant 0 : index
    %c4 = arith.constant 4 : index
    %29 = vector.load %arg2[%c0_15, %c4] : memref<8x36xf32, #tpu.memory_space<vmem>>, vector<8x4xf32>
    %cst_16 = arith.constant dense<0.000000e+00> : vector<8x256xf32>
    %30 = tpu.matmul %29, %28, %cst_16 {dimension_numbers = #tpu.dot_dimension_numbers<[1], [0], [0], [1], [0, 0, 1, 1], [], []>} : vector<8x4xf32>, vector<4x256xf32>, vector<8x256xf32> -> vector<8x256xf32>
    %31 = arith.addf %27, %30 : vector<8x256xf32>
    %c0_17 = arith.constant 0 : index
    %c113 = arith.constant 113 : index
    %32 = vector.load %arg14[%c0_17, %c113] : memref<16x512xf32, #tpu.memory_space<vmem>>, vector<4x256xf32>
    %cst_18 = arith.constant 0.000000e+00 : f32
    %33 = vector.shape_cast %10 : vector<1x256xi1> to vector<1x256xi1>
    %34 = vector.broadcast %33 : vector<1x256xi1> to vector<4x256xi1>
    %35 = vector.broadcast %cst_18 : f32 to vector<4x256xf32>
    %36 = arith.select %34, %32, %35 : vector<4x256xi1>, vector<4x256xf32>
    %c0_19 = arith.constant 0 : index
    %c8 = arith.constant 8 : index
    %37 = vector.load %arg2[%c0_19, %c8] : memref<8x36xf32, #tpu.memory_space<vmem>>, vector<8x4xf32>
    %cst_20 = arith.constant dense<0.000000e+00> : vector<8x256xf32>
    %38 = tpu.matmul %37, %36, %cst_20 {dimension_numbers = #tpu.dot_dimension_numbers<[1], [0], [0], [1], [0, 0, 1, 1], [], []>} : vector<8x4xf32>, vector<4x256xf32>, vector<8x256xf32> -> vector<8x256xf32>
    %39 = arith.addf %31, %38 : vector<8x256xf32>
    %c0_21 = arith.constant 0 : index
    %c127 = arith.constant 127 : index
    %40 = vector.load %arg14[%c0_21, %c127] : memref<16x512xf32, #tpu.memory_space<vmem>>, vector<4x256xf32>
    %cst_22 = arith.constant 0.000000e+00 : f32
    %41 = vector.shape_cast %8 : vector<1x256xi1> to vector<1x256xi1>
    %42 = vector.broadcast %41 : vector<1x256xi1> to vector<4x256xi1>
    %43 = vector.broadcast %cst_22 : f32 to vector<4x256xf32>
    %44 = arith.select %42, %40, %43 : vector<4x256xi1>, vector<4x256xf32>
    %c0_23 = arith.constant 0 : index
    %c12 = arith.constant 12 : index
    %45 = vector.load %arg2[%c0_23, %c12] : memref<8x36xf32, #tpu.memory_space<vmem>>, vector<8x4xf32>
    %cst_24 = arith.constant dense<0.000000e+00> : vector<8x256xf32>
    %46 = tpu.matmul %45, %44, %cst_24 {dimension_numbers = #tpu.dot_dimension_numbers<[1], [0], [0], [1], [0, 0, 1, 1], [], []>} : vector<8x4xf32>, vector<4x256xf32>, vector<8x256xf32> -> vector<8x256xf32>
    %c0_25 = arith.constant 0 : index
    %c128_26 = arith.constant 128 : index
    %47 = vector.load %arg14[%c0_25, %c128_26] : memref<16x512xf32, #tpu.memory_space<vmem>>, vector<4x256xf32>
    %c0_27 = arith.constant 0 : index
    %c16 = arith.constant 16 : index
    %48 = vector.load %arg2[%c0_27, %c16] : memref<8x36xf32, #tpu.memory_space<vmem>>, vector<8x4xf32>
    %cst_28 = arith.constant dense<0.000000e+00> : vector<8x256xf32>
    %49 = tpu.matmul %48, %47, %cst_28 {dimension_numbers = #tpu.dot_dimension_numbers<[1], [0], [0], [1], [0, 0, 1, 1], [], []>} : vector<8x4xf32>, vector<4x256xf32>, vector<8x256xf32> -> vector<8x256xf32>
    %50 = arith.addf %46, %49 : vector<8x256xf32>
    %c0_29 = arith.constant 0 : index
    %c129 = arith.constant 129 : index
    %51 = vector.load %arg14[%c0_29, %c129] : memref<16x512xf32, #tpu.memory_space<vmem>>, vector<4x256xf32>
    %cst_30 = arith.constant 0.000000e+00 : f32
    %52 = vector.shape_cast %10 : vector<1x256xi1> to vector<1x256xi1>
    %53 = vector.broadcast %52 : vector<1x256xi1> to vector<4x256xi1>
    %54 = vector.broadcast %cst_30 : f32 to vector<4x256xf32>
    %55 = arith.select %53, %51, %54 : vector<4x256xi1>, vector<4x256xf32>
    %c0_31 = arith.constant 0 : index
    %c20 = arith.constant 20 : index
    %56 = vector.load %arg2[%c0_31, %c20] : memref<8x36xf32, #tpu.memory_space<vmem>>, vector<8x4xf32>
    %cst_32 = arith.constant dense<0.000000e+00> : vector<8x256xf32>
    %57 = tpu.matmul %56, %55, %cst_32 {dimension_numbers = #tpu.dot_dimension_numbers<[1], [0], [0], [1], [0, 0, 1, 1], [], []>} : vector<8x4xf32>, vector<4x256xf32>, vector<8x256xf32> -> vector<8x256xf32>
    %58 = arith.addf %50, %57 : vector<8x256xf32>
    %c0_33 = arith.constant 0 : index
    %c143 = arith.constant 143 : index
    %59 = vector.load %arg14[%c0_33, %c143] : memref<16x512xf32, #tpu.memory_space<vmem>>, vector<4x256xf32>
    %cst_34 = arith.constant 0.000000e+00 : f32
    %60 = vector.shape_cast %8 : vector<1x256xi1> to vector<1x256xi1>
    %61 = vector.broadcast %60 : vector<1x256xi1> to vector<4x256xi1>
    %62 = vector.broadcast %cst_34 : f32 to vector<4x256xf32>
    %63 = arith.select %61, %59, %62 : vector<4x256xi1>, vector<4x256xf32>
    %c0_35 = arith.constant 0 : index
    %c24 = arith.constant 24 : index
    %64 = vector.load %arg2[%c0_35, %c24] : memref<8x36xf32, #tpu.memory_space<vmem>>, vector<8x4xf32>
    %cst_36 = arith.constant dense<0.000000e+00> : vector<8x256xf32>
    %65 = tpu.matmul %64, %63, %cst_36 {dimension_numbers = #tpu.dot_dimension_numbers<[1], [0], [0], [1], [0, 0, 1, 1], [], []>} : vector<8x4xf32>, vector<4x256xf32>, vector<8x256xf32> -> vector<8x256xf32>
    %c0_37 = arith.constant 0 : index
    %c144 = arith.constant 144 : index
    %66 = vector.load %arg14[%c0_37, %c144] : memref<16x512xf32, #tpu.memory_space<vmem>>, vector<4x256xf32>
    %c0_38 = arith.constant 0 : index
    %c28 = arith.constant 28 : index
    %67 = vector.load %arg2[%c0_38, %c28] : memref<8x36xf32, #tpu.memory_space<vmem>>, vector<8x4xf32>
    %cst_39 = arith.constant dense<0.000000e+00> : vector<8x256xf32>
    %68 = tpu.matmul %67, %66, %cst_39 {dimension_numbers = #tpu.dot_dimension_numbers<[1], [0], [0], [1], [0, 0, 1, 1], [], []>} : vector<8x4xf32>, vector<4x256xf32>, vector<8x256xf32> -> vector<8x256xf32>
    %69 = arith.addf %65, %68 : vector<8x256xf32>
    %c0_40 = arith.constant 0 : index
    %c145 = arith.constant 145 : index
    %70 = vector.load %arg14[%c0_40, %c145] : memref<16x512xf32, #tpu.memory_space<vmem>>, vector<4x256xf32>
    %cst_41 = arith.constant 0.000000e+00 : f32
    %71 = vector.shape_cast %10 : vector<1x256xi1> to vector<1x256xi1>
    %72 = vector.broadcast %71 : vector<1x256xi1> to vector<4x256xi1>
    %73 = vector.broadcast %cst_41 : f32 to vector<4x256xf32>
    %74 = arith.select %72, %70, %73 : vector<4x256xi1>, vector<4x256xf32>
    %c0_42 = arith.constant 0 : index
    %c32 = arith.constant 32 : index
    %75 = vector.load %arg2[%c0_42, %c32] : memref<8x36xf32, #tpu.memory_space<vmem>>, vector<8x4xf32>
    %cst_43 = arith.constant dense<0.000000e+00> : vector<8x256xf32>
    %76 = tpu.matmul %75, %74, %cst_43 {dimension_numbers = #tpu.dot_dimension_numbers<[1], [0], [0], [1], [0, 0, 1, 1], [], []>} : vector<8x4xf32>, vector<4x256xf32>, vector<8x256xf32> -> vector<8x256xf32>
    %77 = arith.addf %69, %76 : vector<8x256xf32>
    %c0_44 = arith.constant 0 : index
    %c0_45 = arith.constant 0 : index
    %78 = vector.load %arg10[%c0_44, %c0_45] : memref<74x1xf32, #tpu.memory_space<vmem>>, vector<8x1xf32>
    %79 = arith.addf %39, %58 : vector<8x256xf32>
    %80 = vector.broadcast %78 : vector<8x1xf32> to vector<8x256xf32>
    %81 = arith.addf %77, %80 : vector<8x256xf32>
    %82 = arith.addf %79, %81 : vector<8x256xf32>
    %cst_46 = arith.constant 0.000000e+00 : f32
    %83 = vector.broadcast %cst_46 : f32 to vector<8x256xf32>
    %84 = arith.cmpf oge, %82, %83 : vector<8x256xf32>
    %cst_47 = arith.constant 0.00999999977 : f32
    %85 = vector.broadcast %cst_47 : f32 to vector<8x256xf32>
    %86 = arith.mulf %85, %82 : vector<8x256xf32>
    %87 = arith.select %84, %82, %86 : vector<8x256xi1>, vector<8x256xf32>
    %c0_48 = arith.constant 0 : index
    %c128_49 = arith.constant 128 : index
    %88 = vector.load %arg14[%c0_48, %c128_49] : memref<16x512xf32, #tpu.memory_space<vmem>>, vector<8x256xf32>
    tpu.vector_store %arg14[%c0_48, %c128_49], %87 {strides = array<i32>} : memref<16x512xf32, #tpu.memory_space<vmem>>, vector<8x256xf32>,
    %c0_50 = arith.constant 0 : index
    %c111_51 = arith.constant 111 : index
    %89 = vector.load %arg14[%c0_50, %c111_51] : memref<16x512xf32, #tpu.memory_space<vmem>>, vector<8x256xf32>
    %cst_52 = arith.constant 0.000000e+00 : f32
    %90 = vector.shape_cast %8 : vector<1x256xi1> to vector<1x256xi1>
    %91 = vector.broadcast %90 : vector<1x256xi1> to vector<8x256xi1>
    %92 = vector.broadcast %cst_52 : f32 to vector<8x256xf32>
    %93 = arith.select %91, %89, %92 : vector<8x256xi1>, vector<8x256xf32>
    %c0_53 = arith.constant 0 : index
    %c0_54 = arith.constant 0 : index
    %94 = vector.load %arg3[%c0_53, %c0_54] : memref<8x72xf32, #tpu.memory_space<vmem>>, vector<8x8xf32>
    %cst_55 = arith.constant dense<0.000000e+00> : vector<8x256xf32>
    %95 = tpu.matmul %94, %93, %cst_55 {dimension_numbers = #tpu.dot_dimension_numbers<[1], [0], [0], [1], [0, 0, 1, 1], [], []>} : vector<8x8xf32>, vector<8x256xf32>, vector<8x256xf32> -> vector<8x256xf32>
    %c0_56 = arith.constant 0 : index
    %c112_57 = arith.constant 112 : index
    %96 = vector.load %arg14[%c0_56, %c112_57] : memref<16x512xf32, #tpu.memory_space<vmem>>, vector<8x256xf32>
    %c0_58 = arith.constant 0 : index
    %c8_59 = arith.constant 8 : index
    %97 = vector.load %arg3[%c0_58, %c8_59] : memref<8x72xf32, #tpu.memory_space<vmem>>, vector<8x8xf32>
    %cst_60 = arith.constant dense<0.000000e+00> : vector<8x256xf32>
    %98 = tpu.matmul %97, %96, %cst_60 {dimension_numbers = #tpu.dot_dimension_numbers<[1], [0], [0], [1], [0, 0, 1, 1], [], []>} : vector<8x8xf32>, vector<8x256xf32>, vector<8x256xf32> -> vector<8x256xf32>
    %99 = arith.addf %95, %98 : vector<8x256xf32>
    %c0_61 = arith.constant 0 : index
    %c113_62 = arith.constant 113 : index
    %100 = vector.load %arg14[%c0_61, %c113_62] : memref<16x512xf32, #tpu.memory_space<vmem>>, vector<8x256xf32>
    %cst_63 = arith.constant 0.000000e+00 : f32
    %101 = vector.shape_cast %10 : vector<1x256xi1> to vector<1x256xi1>
    %102 = vector.broadcast %101 : vector<1x256xi1> to vector<8x256xi1>
    %103 = vector.broadcast %cst_63 : f32 to vector<8x256xf32>
    %104 = arith.select %102, %100, %103 : vector<8x256xi1>, vector<8x256xf32>
    %c0_64 = arith.constant 0 : index
    %c16_65 = arith.constant 16 : index
    %105 = vector.load %arg3[%c0_64, %c16_65] : memref<8x72xf32, #tpu.memory_space<vmem>>, vector<8x8xf32>
    %cst_66 = arith.constant dense<0.000000e+00> : vector<8x256xf32>
    %106 = tpu.matmul %105, %104, %cst_66 {dimension_numbers = #tpu.dot_dimension_numbers<[1], [0], [0], [1], [0, 0, 1, 1], [], []>} : vector<8x8xf32>, vector<8x256xf32>, vector<8x256xf32> -> vector<8x256xf32>
    %107 = arith.addf %99, %106 : vector<8x256xf32>
    %c0_67 = arith.constant 0 : index
    %c127_68 = arith.constant 127 : index
    %108 = vector.load %arg14[%c0_67, %c127_68] : memref<16x512xf32, #tpu.memory_space<vmem>>, vector<8x256xf32>
    %cst_69 = arith.constant 0.000000e+00 : f32
    %109 = vector.shape_cast %8 : vector<1x256xi1> to vector<1x256xi1>
    %110 = vector.broadcast %109 : vector<1x256xi1> to vector<8x256xi1>
    %111 = vector.broadcast %cst_69 : f32 to vector<8x256xf32>
    %112 = arith.select %110, %108, %111 : vector<8x256xi1>, vector<8x256xf32>
    %c0_70 = arith.constant 0 : index
    %c24_71 = arith.constant 24 : index
    %113 = vector.load %arg3[%c0_70, %c24_71] : memref<8x72xf32, #tpu.memory_space<vmem>>, vector<8x8xf32>
    %cst_72 = arith.constant dense<0.000000e+00> : vector<8x256xf32>
    %114 = tpu.matmul %113, %112, %cst_72 {dimension_numbers = #tpu.dot_dimension_numbers<[1], [0], [0], [1], [0, 0, 1, 1], [], []>} : vector<8x8xf32>, vector<8x256xf32>, vector<8x256xf32> -> vector<8x256xf32>
    %c0_73 = arith.constant 0 : index
    %c128_74 = arith.constant 128 : index
    %115 = vector.load %arg14[%c0_73, %c128_74] : memref<16x512xf32, #tpu.memory_space<vmem>>, vector<8x256xf32>
    %c0_75 = arith.constant 0 : index
    %c32_76 = arith.constant 32 : index
    %116 = vector.load %arg3[%c0_75, %c32_76] : memref<8x72xf32, #tpu.memory_space<vmem>>, vector<8x8xf32>
    %cst_77 = arith.constant dense<0.000000e+00> : vector<8x256xf32>
    %117 = tpu.matmul %116, %115, %cst_77 {dimension_numbers = #tpu.dot_dimension_numbers<[1], [0], [0], [1], [0, 0, 1, 1], [], []>} : vector<8x8xf32>, vector<8x256xf32>, vector<8x256xf32> -> vector<8x256xf32>
    %118 = arith.addf %114, %117 : vector<8x256xf32>
    %c0_78 = arith.constant 0 : index
    %c129_79 = arith.constant 129 : index
    %119 = vector.load %arg14[%c0_78, %c129_79] : memref<16x512xf32, #tpu.memory_space<vmem>>, vector<8x256xf32>
    %cst_80 = arith.constant 0.000000e+00 : f32
    %120 = vector.shape_cast %10 : vector<1x256xi1> to vector<1x256xi1>
    %121 = vector.broadcast %120 : vector<1x256xi1> to vector<8x256xi1>
    %122 = vector.broadcast %cst_80 : f32 to vector<8x256xf32>
    %123 = arith.select %121, %119, %122 : vector<8x256xi1>, vector<8x256xf32>
    %c0_81 = arith.constant 0 : index
    %c40 = arith.constant 40 : index
    %124 = vector.load %arg3[%c0_81, %c40] : memref<8x72xf32, #tpu.memory_space<vmem>>, vector<8x8xf32>
    %cst_82 = arith.constant dense<0.000000e+00> : vector<8x256xf32>
    %125 = tpu.matmul %124, %123, %cst_82 {dimension_numbers = #tpu.dot_dimension_numbers<[1], [0], [0], [1], [0, 0, 1, 1], [], []>} : vector<8x8xf32>, vector<8x256xf32>, vector<8x256xf32> -> vector<8x256xf32>
    %126 = arith.addf %118, %125 : vector<8x256xf32>
    %c0_83 = arith.constant 0 : index
    %c143_84 = arith.constant 143 : index
    %127 = vector.load %arg14[%c0_83, %c143_84] : memref<16x512xf32, #tpu.memory_space<vmem>>, vector<8x256xf32>
    %cst_85 = arith.constant 0.000000e+00 : f32
    %128 = vector.shape_cast %8 : vector<1x256xi1> to vector<1x256xi1>
    %129 = vector.broadcast %128 : vector<1x256xi1> to vector<8x256xi1>
    %130 = vector.broadcast %cst_85 : f32 to vector<8x256xf32>
    %131 = arith.select %129, %127, %130 : vector<8x256xi1>, vector<8x256xf32>
    %c0_86 = arith.constant 0 : index
    %c48 = arith.constant 48 : index
    %132 = vector.load %arg3[%c0_86, %c48] : memref<8x72xf32, #tpu.memory_space<vmem>>, vector<8x8xf32>
    %cst_87 = arith.constant dense<0.000000e+00> : vector<8x256xf32>
    %133 = tpu.matmul %132, %131, %cst_87 {dimension_numbers = #tpu.dot_dimension_numbers<[1], [0], [0], [1], [0, 0, 1, 1], [], []>} : vector<8x8xf32>, vector<8x256xf32>, vector<8x256xf32> -> vector<8x256xf32>
    %c0_88 = arith.constant 0 : index
    %c144_89 = arith.constant 144 : index
    %134 = vector.load %arg14[%c0_88, %c144_89] : memref<16x512xf32, #tpu.memory_space<vmem>>, vector<8x256xf32>
    %c0_90 = arith.constant 0 : index
    %c56 = arith.constant 56 : index
    %135 = vector.load %arg3[%c0_90, %c56] : memref<8x72xf32, #tpu.memory_space<vmem>>, vector<8x8xf32>
    %cst_91 = arith.constant dense<0.000000e+00> : vector<8x256xf32>
    %136 = tpu.matmul %135, %134, %cst_91 {dimension_numbers = #tpu.dot_dimension_numbers<[1], [0], [0], [1], [0, 0, 1, 1], [], []>} : vector<8x8xf32>, vector<8x256xf32>, vector<8x256xf32> -> vector<8x256xf32>
    %137 = arith.addf %133, %136 : vector<8x256xf32>
    %c0_92 = arith.constant 0 : index
    %c145_93 = arith.constant 145 : index
    %138 = vector.load %arg14[%c0_92, %c145_93] : memref<16x512xf32, #tpu.memory_space<vmem>>, vector<8x256xf32>
    %cst_94 = arith.constant 0.000000e+00 : f32
    %139 = vector.shape_cast %10 : vector<1x256xi1> to vector<1x256xi1>
    %140 = vector.broadcast %139 : vector<1x256xi1> to vector<8x256xi1>
    %141 = vector.broadcast %cst_94 : f32 to vector<8x256xf32>
    %142 = arith.select %140, %138, %141 : vector<8x256xi1>, vector<8x256xf32>
    %c0_95 = arith.constant 0 : index
    %c64 = arith.constant 64 : index
    %143 = vector.load %arg3[%c0_95, %c64] : memref<8x72xf32, #tpu.memory_space<vmem>>, vector<8x8xf32>
    %cst_96 = arith.constant dense<0.000000e+00> : vector<8x256xf32>
    %144 = tpu.matmul %143, %142, %cst_96 {dimension_numbers = #tpu.dot_dimension_numbers<[1], [0], [0], [1], [0, 0, 1, 1], [], []>} : vector<8x8xf32>, vector<8x256xf32>, vector<8x256xf32> -> vector<8x256xf32>
    %145 = arith.addf %137, %144 : vector<8x256xf32>
    %c8_97 = arith.constant 8 : index
    %c0_98 = arith.constant 0 : index
    %146 = vector.load %arg10[%c8_97, %c0_98] : memref<74x1xf32, #tpu.memory_space<vmem>>, vector<8x1xf32>
    %147 = arith.addf %107, %126 : vector<8x256xf32>
    %148 = vector.broadcast %146 : vector<8x1xf32> to vector<8x256xf32>
    %149 = arith.addf %145, %148 : vector<8x256xf32>
    %150 = arith.addf %147, %149 : vector<8x256xf32>
    %cst_99 = arith.constant 0.000000e+00 : f32
    %151 = vector.broadcast %cst_99 : f32 to vector<8x256xf32>
    %152 = arith.cmpf oge, %150, %151 : vector<8x256xf32>
    %cst_100 = arith.constant 0.00999999977 : f32
    %153 = vector.broadcast %cst_100 : f32 to vector<8x256xf32>
    %154 = arith.mulf %153, %150 : vector<8x256xf32>
    %155 = arith.select %152, %150, %154 : vector<8x256xi1>, vector<8x256xf32>
    %c0_101 = arith.constant 0 : index
    %c128_102 = arith.constant 128 : index
    %156 = vector.load %arg14[%c0_101, %c128_102] : memref<16x512xf32, #tpu.memory_space<vmem>>, vector<8x256xf32>
    tpu.vector_store %arg14[%c0_101, %c128_102], %155 {strides = array<i32>} : memref<16x512xf32, #tpu.memory_space<vmem>>, vector<8x256xf32>,
    %c0_103 = arith.constant 0 : index
    %c129_104 = arith.constant 129 : index
    %157 = vector.load %arg14[%c0_103, %c129_104] : memref<16x512xf32, #tpu.memory_space<vmem>>, vector<8x256xf32>
    %c0_105 = arith.constant 0 : index
    %c144_106 = arith.constant 144 : index
    %158 = vector.load %arg14[%c0_105, %c144_106] : memref<16x512xf32, #tpu.memory_space<vmem>>, vector<8x256xf32>
    %c0_107 = arith.constant 0 : index
    %c145_108 = arith.constant 145 : index
    %159 = vector.load %arg14[%c0_107, %c145_108] : memref<16x512xf32, #tpu.memory_space<vmem>>, vector<8x256xf32>
    %160 = arith.maximumf %155, %157 : vector<8x256xf32>
    %161 = arith.maximumf %158, %159 : vector<8x256xf32>
    %162 = arith.maximumf %160, %161 : vector<8x256xf32>
    %c0_109 = arith.constant 0 : index
    %c0_110 = arith.constant 0 : index
    %163 = vector.load %arg12[%c0_109, %c0_110] : memref<256x64xf32, #tpu.memory_space<vmem>>, vector<256x64xf32>
    %cst_111 = arith.constant dense<0.000000e+00> : vector<8x64xf32>
    %164 = tpu.matmul %162, %163, %cst_111 {dimension_numbers = #tpu.dot_dimension_numbers<[1], [0], [0], [1], [0, 0, 1, 1], [], []>} : vector<8x256xf32>, vector<256x64xf32>, vector<8x64xf32> -> vector<8x64xf32>
    %cst_112 = arith.constant 0.000000e+00 : f32
    %165 = vector.broadcast %cst_112 : f32 to vector<16x16xf32>
    %c0_113 = arith.constant 0 : index
    %c192 = arith.constant 192 : index
    %166 = vector.load %arg14[%c0_113, %c192] : memref<16x512xf32, #tpu.memory_space<vmem>>, vector<16x16xf32>
    tpu.vector_store %arg14[%c0_113, %c192], %165 {strides = array<i32>} : memref<16x512xf32, #tpu.memory_space<vmem>>, vector<16x16xf32>,
    %c0_114 = arith.constant 0 : index
    %c128_115 = arith.constant 128 : index
    %167 = vector.load %arg14[%c0_114, %c128_115] : memref<16x512xf32, #tpu.memory_space<vmem>>, vector<8x64xf32>
    tpu.vector_store %arg14[%c0_114, %c128_115], %164 {strides = array<i32>} : memref<16x512xf32, #tpu.memory_space<vmem>>, vector<8x64xf32>,
    %c0_116 = arith.constant 0 : index
    %c119 = arith.constant 119 : index
    %168 = vector.load %arg14[%c0_116, %c119] : memref<16x512xf32, #tpu.memory_space<vmem>>, vector<8x64xf32>
    %cst_117 = arith.constant 0.000000e+00 : f32
    %169 = vector.shape_cast %15 : vector<1x64xi1> to vector<1x64xi1>
    %170 = vector.broadcast %169 : vector<1x64xi1> to vector<8x64xi1>
    %171 = vector.broadcast %cst_117 : f32 to vector<8x64xf32>
    %172 = arith.select %170, %168, %171 : vector<8x64xi1>, vector<8x64xf32>
    %c0_118 = arith.constant 0 : index
    %c0_119 = arith.constant 0 : index
    %173 = vector.load %arg4[%c0_118, %c0_119] : memref<16x72xf32, #tpu.memory_space<vmem>>, vector<16x8xf32>
    %cst_120 = arith.constant dense<0.000000e+00> : vector<16x64xf32>
    %174 = tpu.matmul %173, %172, %cst_120 {dimension_numbers = #tpu.dot_dimension_numbers<[1], [0], [0], [1], [0, 0, 1, 1], [], []>} : vector<16x8xf32>, vector<8x64xf32>, vector<16x64xf32> -> vector<16x64xf32>
    %c0_121 = arith.constant 0 : index
    %c120 = arith.constant 120 : index
    %175 = vector.load %arg14[%c0_121, %c120] : memref<16x512xf32, #tpu.memory_space<vmem>>, vector<8x64xf32>
    %c0_122 = arith.constant 0 : index
    %c8_123 = arith.constant 8 : index
    %176 = vector.load %arg4[%c0_122, %c8_123] : memref<16x72xf32, #tpu.memory_space<vmem>>, vector<16x8xf32>
    %cst_124 = arith.constant dense<0.000000e+00> : vector<16x64xf32>
    %177 = tpu.matmul %176, %175, %cst_124 {dimension_numbers = #tpu.dot_dimension_numbers<[1], [0], [0], [1], [0, 0, 1, 1], [], []>} : vector<16x8xf32>, vector<8x64xf32>, vector<16x64xf32> -> vector<16x64xf32>
    %178 = arith.addf %174, %177 : vector<16x64xf32>
    %c0_125 = arith.constant 0 : index
    %c121 = arith.constant 121 : index
    %179 = vector.load %arg14[%c0_125, %c121] : memref<16x512xf32, #tpu.memory_space<vmem>>, vector<8x64xf32>
    %cst_126 = arith.constant 0.000000e+00 : f32
    %180 = vector.shape_cast %17 : vector<1x64xi1> to vector<1x64xi1>
    %181 = vector.broadcast %180 : vector<1x64xi1> to vector<8x64xi1>
    %182 = vector.broadcast %cst_126 : f32 to vector<8x64xf32>
    %183 = arith.select %181, %179, %182 : vector<8x64xi1>, vector<8x64xf32>
    %c0_127 = arith.constant 0 : index
    %c16_128 = arith.constant 16 : index
    %184 = vector.load %arg4[%c0_127, %c16_128] : memref<16x72xf32, #tpu.memory_space<vmem>>, vector<16x8xf32>
    %cst_129 = arith.constant dense<0.000000e+00> : vector<16x64xf32>
    %185 = tpu.matmul %184, %183, %cst_129 {dimension_numbers = #tpu.dot_dimension_numbers<[1], [0], [0], [1], [0, 0, 1, 1], [], []>} : vector<16x8xf32>, vector<8x64xf32>, vector<16x64xf32> -> vector<16x64xf32>
    %186 = arith.addf %178, %185 : vector<16x64xf32>
    %c0_130 = arith.constant 0 : index
    %c127_131 = arith.constant 127 : index
    %187 = vector.load %arg14[%c0_130, %c127_131] : memref<16x512xf32, #tpu.memory_space<vmem>>, vector<8x64xf32>
    %cst_132 = arith.constant 0.000000e+00 : f32
    %188 = vector.shape_cast %15 : vector<1x64xi1> to vector<1x64xi1>
    %189 = vector.broadcast %188 : vector<1x64xi1> to vector<8x64xi1>
    %190 = vector.broadcast %cst_132 : f32 to vector<8x64xf32>
    %191 = arith.select %189, %187, %190 : vector<8x64xi1>, vector<8x64xf32>
    %c0_133 = arith.constant 0 : index
    %c24_134 = arith.constant 24 : index
    %192 = vector.load %arg4[%c0_133, %c24_134] : memref<16x72xf32, #tpu.memory_space<vmem>>, vector<16x8xf32>
    %cst_135 = arith.constant dense<0.000000e+00> : vector<16x64xf32>
    %193 = tpu.matmul %192, %191, %cst_135 {dimension_numbers = #tpu.dot_dimension_numbers<[1], [0], [0], [1], [0, 0, 1, 1], [], []>} : vector<16x8xf32>, vector<8x64xf32>, vector<16x64xf32> -> vector<16x64xf32>
    %c0_136 = arith.constant 0 : index
    %c128_137 = arith.constant 128 : index
    %194 = vector.load %arg14[%c0_136, %c128_137] : memref<16x512xf32, #tpu.memory_space<vmem>>, vector<8x64xf32>
    %c0_138 = arith.constant 0 : index
    %c32_139 = arith.constant 32 : index
    %195 = vector.load %arg4[%c0_138, %c32_139] : memref<16x72xf32, #tpu.memory_space<vmem>>, vector<16x8xf32>
    %cst_140 = arith.constant dense<0.000000e+00> : vector<16x64xf32>
    %196 = tpu.matmul %195, %194, %cst_140 {dimension_numbers = #tpu.dot_dimension_numbers<[1], [0], [0], [1], [0, 0, 1, 1], [], []>} : vector<16x8xf32>, vector<8x64xf32>, vector<16x64xf32> -> vector<16x64xf32>
    %197 = arith.addf %193, %196 : vector<16x64xf32>
    %c0_141 = arith.constant 0 : index
    %c129_142 = arith.constant 129 : index
    %198 = vector.load %arg14[%c0_141, %c129_142] : memref<16x512xf32, #tpu.memory_space<vmem>>, vector<8x64xf32>
    %cst_143 = arith.constant 0.000000e+00 : f32
    %199 = vector.shape_cast %17 : vector<1x64xi1> to vector<1x64xi1>
    %200 = vector.broadcast %199 : vector<1x64xi1> to vector<8x64xi1>
    %201 = vector.broadcast %cst_143 : f32 to vector<8x64xf32>
    %202 = arith.select %200, %198, %201 : vector<8x64xi1>, vector<8x64xf32>
    %c0_144 = arith.constant 0 : index
    %c40_145 = arith.constant 40 : index
    %203 = vector.load %arg4[%c0_144, %c40_145] : memref<16x72xf32, #tpu.memory_space<vmem>>, vector<16x8xf32>
    %cst_146 = arith.constant dense<0.000000e+00> : vector<16x64xf32>
    %204 = tpu.matmul %203, %202, %cst_146 {dimension_numbers = #tpu.dot_dimension_numbers<[1], [0], [0], [1], [0, 0, 1, 1], [], []>} : vector<16x8xf32>, vector<8x64xf32>, vector<16x64xf32> -> vector<16x64xf32>
    %205 = arith.addf %197, %204 : vector<16x64xf32>
    %c0_147 = arith.constant 0 : index
    %c135 = arith.constant 135 : index
    %206 = vector.load %arg14[%c0_147, %c135] : memref<16x512xf32, #tpu.memory_space<vmem>>, vector<8x64xf32>
    %cst_148 = arith.constant 0.000000e+00 : f32
    %207 = vector.shape_cast %15 : vector<1x64xi1> to vector<1x64xi1>
    %208 = vector.broadcast %207 : vector<1x64xi1> to vector<8x64xi1>
    %209 = vector.broadcast %cst_148 : f32 to vector<8x64xf32>
    %210 = arith.select %208, %206, %209 : vector<8x64xi1>, vector<8x64xf32>
    %c0_149 = arith.constant 0 : index
    %c48_150 = arith.constant 48 : index
    %211 = vector.load %arg4[%c0_149, %c48_150] : memref<16x72xf32, #tpu.memory_space<vmem>>, vector<16x8xf32>
    %cst_151 = arith.constant dense<0.000000e+00> : vector<16x64xf32>
    %212 = tpu.matmul %211, %210, %cst_151 {dimension_numbers = #tpu.dot_dimension_numbers<[1], [0], [0], [1], [0, 0, 1, 1], [], []>} : vector<16x8xf32>, vector<8x64xf32>, vector<16x64xf32> -> vector<16x64xf32>
    %c0_152 = arith.constant 0 : index
    %c136 = arith.constant 136 : index
    %213 = vector.load %arg14[%c0_152, %c136] : memref<16x512xf32, #tpu.memory_space<vmem>>, vector<8x64xf32>
    %c0_153 = arith.constant 0 : index
    %c56_154 = arith.constant 56 : index
    %214 = vector.load %arg4[%c0_153, %c56_154] : memref<16x72xf32, #tpu.memory_space<vmem>>, vector<16x8xf32>
    %cst_155 = arith.constant dense<0.000000e+00> : vector<16x64xf32>
    %215 = tpu.matmul %214, %213, %cst_155 {dimension_numbers = #tpu.dot_dimension_numbers<[1], [0], [0], [1], [0, 0, 1, 1], [], []>} : vector<16x8xf32>, vector<8x64xf32>, vector<16x64xf32> -> vector<16x64xf32>
    %216 = arith.addf %212, %215 : vector<16x64xf32>
    %c0_156 = arith.constant 0 : index
    %c137 = arith.constant 137 : index
    %217 = vector.load %arg14[%c0_156, %c137] : memref<16x512xf32, #tpu.memory_space<vmem>>, vector<8x64xf32>
    %cst_157 = arith.constant 0.000000e+00 : f32
    %218 = vector.shape_cast %17 : vector<1x64xi1> to vector<1x64xi1>
    %219 = vector.broadcast %218 : vector<1x64xi1> to vector<8x64xi1>
    %220 = vector.broadcast %cst_157 : f32 to vector<8x64xf32>
    %221 = arith.select %219, %217, %220 : vector<8x64xi1>, vector<8x64xf32>
    %c0_158 = arith.constant 0 : index
    %c64_159 = arith.constant 64 : index
    %222 = vector.load %arg4[%c0_158, %c64_159] : memref<16x72xf32, #tpu.memory_space<vmem>>, vector<16x8xf32>
    %cst_160 = arith.constant dense<0.000000e+00> : vector<16x64xf32>
    %223 = tpu.matmul %222, %221, %cst_160 {dimension_numbers = #tpu.dot_dimension_numbers<[1], [0], [0], [1], [0, 0, 1, 1], [], []>} : vector<16x8xf32>, vector<8x64xf32>, vector<16x64xf32> -> vector<16x64xf32>
    %224 = arith.addf %216, %223 : vector<16x64xf32>
    %c16_161 = arith.constant 16 : index
    %c0_162 = arith.constant 0 : index
    %225 = vector.load %arg10[%c16_161, %c0_162] : memref<74x1xf32, #tpu.memory_space<vmem>>, vector<16x1xf32>
    %226 = arith.addf %186, %205 : vector<16x64xf32>
    %227 = vector.broadcast %225 : vector<16x1xf32> to vector<16x64xf32>
    %228 = arith.addf %224, %227 : vector<16x64xf32>
    %229 = arith.addf %226, %228 : vector<16x64xf32>
    %cst_163 = arith.constant 0.000000e+00 : f32
    %230 = vector.broadcast %cst_163 : f32 to vector<16x64xf32>
    %231 = arith.cmpf oge, %229, %230 : vector<16x64xf32>
    %cst_164 = arith.constant 0.00999999977 : f32
    %232 = vector.broadcast %cst_164 : f32 to vector<16x64xf32>
    %233 = arith.mulf %232, %229 : vector<16x64xf32>
    %234 = arith.select %231, %229, %233 : vector<16x64xi1>, vector<16x64xf32>
    %c0_165 = arith.constant 0 : index
    %c128_166 = arith.constant 128 : index
    %235 = vector.load %arg14[%c0_165, %c128_166] : memref<16x512xf32, #tpu.memory_space<vmem>>, vector<16x64xf32>
    tpu.vector_store %arg14[%c0_165, %c128_166], %234 {strides = array<i32>} : memref<16x512xf32, #tpu.memory_space<vmem>>, vector<16x64xf32>,
    %c0_167 = arith.constant 0 : index
    %c119_168 = arith.constant 119 : index
    %236 = vector.load %arg14[%c0_167, %c119_168] : memref<16x512xf32, #tpu.memory_space<vmem>>, vector<16x64xf32>
    %cst_169 = arith.constant 0.000000e+00 : f32
    %237 = vector.shape_cast %15 : vector<1x64xi1> to vector<1x64xi1>
    %238 = vector.broadcast %237 : vector<1x64xi1> to vector<16x64xi1>
    %239 = vector.broadcast %cst_169 : f32 to vector<16x64xf32>
    %240 = arith.select %238, %236, %239 : vector<16x64xi1>, vector<16x64xf32>
    %c0_170 = arith.constant 0 : index
    %c0_171 = arith.constant 0 : index
    %241 = vector.load %arg5[%c0_170, %c0_171] : memref<16x144xf32, #tpu.memory_space<vmem>>, vector<16x16xf32>
    %cst_172 = arith.constant dense<0.000000e+00> : vector<16x64xf32>
    %242 = tpu.matmul %241, %240, %cst_172 {dimension_numbers = #tpu.dot_dimension_numbers<[1], [0], [0], [1], [0, 0, 1, 1], [], []>} : vector<16x16xf32>, vector<16x64xf32>, vector<16x64xf32> -> vector<16x64xf32>
    %c0_173 = arith.constant 0 : index
    %c120_174 = arith.constant 120 : index
    %243 = vector.load %arg14[%c0_173, %c120_174] : memref<16x512xf32, #tpu.memory_space<vmem>>, vector<16x64xf32>
    %c0_175 = arith.constant 0 : index
    %c16_176 = arith.constant 16 : index
    %244 = vector.load %arg5[%c0_175, %c16_176] : memref<16x144xf32, #tpu.memory_space<vmem>>, vector<16x16xf32>
    %cst_177 = arith.constant dense<0.000000e+00> : vector<16x64xf32>
    %245 = tpu.matmul %244, %243, %cst_177 {dimension_numbers = #tpu.dot_dimension_numbers<[1], [0], [0], [1], [0, 0, 1, 1], [], []>} : vector<16x16xf32>, vector<16x64xf32>, vector<16x64xf32> -> vector<16x64xf32>
    %246 = arith.addf %242, %245 : vector<16x64xf32>
    %c0_178 = arith.constant 0 : index
    %c121_179 = arith.constant 121 : index
    %247 = vector.load %arg14[%c0_178, %c121_179] : memref<16x512xf32, #tpu.memory_space<vmem>>, vector<16x64xf32>
    %cst_180 = arith.constant 0.000000e+00 : f32
    %248 = vector.shape_cast %17 : vector<1x64xi1> to vector<1x64xi1>
    %249 = vector.broadcast %248 : vector<1x64xi1> to vector<16x64xi1>
    %250 = vector.broadcast %cst_180 : f32 to vector<16x64xf32>
    %251 = arith.select %249, %247, %250 : vector<16x64xi1>, vector<16x64xf32>
    %c0_181 = arith.constant 0 : index
    %c32_182 = arith.constant 32 : index
    %252 = vector.load %arg5[%c0_181, %c32_182] : memref<16x144xf32, #tpu.memory_space<vmem>>, vector<16x16xf32>
    %cst_183 = arith.constant dense<0.000000e+00> : vector<16x64xf32>
    %253 = tpu.matmul %252, %251, %cst_183 {dimension_numbers = #tpu.dot_dimension_numbers<[1], [0], [0], [1], [0, 0, 1, 1], [], []>} : vector<16x16xf32>, vector<16x64xf32>, vector<16x64xf32> -> vector<16x64xf32>
    %254 = arith.addf %246, %253 : vector<16x64xf32>
    %c0_184 = arith.constant 0 : index
    %c127_185 = arith.constant 127 : index
    %255 = vector.load %arg14[%c0_184, %c127_185] : memref<16x512xf32, #tpu.memory_space<vmem>>, vector<16x64xf32>
    %cst_186 = arith.constant 0.000000e+00 : f32
    %256 = vector.shape_cast %15 : vector<1x64xi1> to vector<1x64xi1>
    %257 = vector.broadcast %256 : vector<1x64xi1> to vector<16x64xi1>
    %258 = vector.broadcast %cst_186 : f32 to vector<16x64xf32>
    %259 = arith.select %257, %255, %258 : vector<16x64xi1>, vector<16x64xf32>
    %c0_187 = arith.constant 0 : index
    %c48_188 = arith.constant 48 : index
    %260 = vector.load %arg5[%c0_187, %c48_188] : memref<16x144xf32, #tpu.memory_space<vmem>>, vector<16x16xf32>
    %cst_189 = arith.constant dense<0.000000e+00> : vector<16x64xf32>
    %261 = tpu.matmul %260, %259, %cst_189 {dimension_numbers = #tpu.dot_dimension_numbers<[1], [0], [0], [1], [0, 0, 1, 1], [], []>} : vector<16x16xf32>, vector<16x64xf32>, vector<16x64xf32> -> vector<16x64xf32>
    %c0_190 = arith.constant 0 : index
    %c128_191 = arith.constant 128 : index
    %262 = vector.load %arg14[%c0_190, %c128_191] : memref<16x512xf32, #tpu.memory_space<vmem>>, vector<16x64xf32>
    %c0_192 = arith.constant 0 : index
    %c64_193 = arith.constant 64 : index
    %263 = vector.load %arg5[%c0_192, %c64_193] : memref<16x144xf32, #tpu.memory_space<vmem>>, vector<16x16xf32>
    %cst_194 = arith.constant dense<0.000000e+00> : vector<16x64xf32>
    %264 = tpu.matmul %263, %262, %cst_194 {dimension_numbers = #tpu.dot_dimension_numbers<[1], [0], [0], [1], [0, 0, 1, 1], [], []>} : vector<16x16xf32>, vector<16x64xf32>, vector<16x64xf32> -> vector<16x64xf32>
    %265 = arith.addf %261, %264 : vector<16x64xf32>
    %c0_195 = arith.constant 0 : index
    %c129_196 = arith.constant 129 : index
    %266 = vector.load %arg14[%c0_195, %c129_196] : memref<16x512xf32, #tpu.memory_space<vmem>>, vector<16x64xf32>
    %cst_197 = arith.constant 0.000000e+00 : f32
    %267 = vector.shape_cast %17 : vector<1x64xi1> to vector<1x64xi1>
    %268 = vector.broadcast %267 : vector<1x64xi1> to vector<16x64xi1>
    %269 = vector.broadcast %cst_197 : f32 to vector<16x64xf32>
    %270 = arith.select %268, %266, %269 : vector<16x64xi1>, vector<16x64xf32>
    %c0_198 = arith.constant 0 : index
    %c80 = arith.constant 80 : index
    %271 = vector.load %arg5[%c0_198, %c80] : memref<16x144xf32, #tpu.memory_space<vmem>>, vector<16x16xf32>
    %cst_199 = arith.constant dense<0.000000e+00> : vector<16x64xf32>
    %272 = tpu.matmul %271, %270, %cst_199 {dimension_numbers = #tpu.dot_dimension_numbers<[1], [0], [0], [1], [0, 0, 1, 1], [], []>} : vector<16x16xf32>, vector<16x64xf32>, vector<16x64xf32> -> vector<16x64xf32>
    %273 = arith.addf %265, %272 : vector<16x64xf32>
    %c0_200 = arith.constant 0 : index
    %c135_201 = arith.constant 135 : index
    %274 = vector.load %arg14[%c0_200, %c135_201] : memref<16x512xf32, #tpu.memory_space<vmem>>, vector<16x64xf32>
    %cst_202 = arith.constant 0.000000e+00 : f32
    %275 = vector.shape_cast %15 : vector<1x64xi1> to vector<1x64xi1>
    %276 = vector.broadcast %275 : vector<1x64xi1> to vector<16x64xi1>
    %277 = vector.broadcast %cst_202 : f32 to vector<16x64xf32>
    %278 = arith.select %276, %274, %277 : vector<16x64xi1>, vector<16x64xf32>
    %c0_203 = arith.constant 0 : index
    %c96_204 = arith.constant 96 : index
    %279 = vector.load %arg5[%c0_203, %c96_204] : memref<16x144xf32, #tpu.memory_space<vmem>>, vector<16x16xf32>
    %cst_205 = arith.constant dense<0.000000e+00> : vector<16x64xf32>
    %280 = tpu.matmul %279, %278, %cst_205 {dimension_numbers = #tpu.dot_dimension_numbers<[1], [0], [0], [1], [0, 0, 1, 1], [], []>} : vector<16x16xf32>, vector<16x64xf32>, vector<16x64xf32> -> vector<16x64xf32>
    %c0_206 = arith.constant 0 : index
    %c136_207 = arith.constant 136 : index
    %281 = vector.load %arg14[%c0_206, %c136_207] : memref<16x512xf32, #tpu.memory_space<vmem>>, vector<16x64xf32>
    %c0_208 = arith.constant 0 : index
    %c112_209 = arith.constant 112 : index
    %282 = vector.load %arg5[%c0_208, %c112_209] : memref<16x144xf32, #tpu.memory_space<vmem>>, vector<16x16xf32>
    %cst_210 = arith.constant dense<0.000000e+00> : vector<16x64xf32>
    %283 = tpu.matmul %282, %281, %cst_210 {dimension_numbers = #tpu.dot_dimension_numbers<[1], [0], [0], [1], [0, 0, 1, 1], [], []>} : vector<16x16xf32>, vector<16x64xf32>, vector<16x64xf32> -> vector<16x64xf32>
    %284 = arith.addf %280, %283 : vector<16x64xf32>
    %c0_211 = arith.constant 0 : index
    %c137_212 = arith.constant 137 : index
    %285 = vector.load %arg14[%c0_211, %c137_212] : memref<16x512xf32, #tpu.memory_space<vmem>>, vector<16x64xf32>
    %cst_213 = arith.constant 0.000000e+00 : f32
    %286 = vector.shape_cast %17 : vector<1x64xi1> to vector<1x64xi1>
    %287 = vector.broadcast %286 : vector<1x64xi1> to vector<16x64xi1>
    %288 = vector.broadcast %cst_213 : f32 to vector<16x64xf32>
    %289 = arith.select %287, %285, %288 : vector<16x64xi1>, vector<16x64xf32>
    %c0_214 = arith.constant 0 : index
    %c128_215 = arith.constant 128 : index
    %290 = vector.load %arg5[%c0_214, %c128_215] : memref<16x144xf32, #tpu.memory_space<vmem>>, vector<16x16xf32>
    %cst_216 = arith.constant dense<0.000000e+00> : vector<16x64xf32>
    %291 = tpu.matmul %290, %289, %cst_216 {dimension_numbers = #tpu.dot_dimension_numbers<[1], [0], [0], [1], [0, 0, 1, 1], [], []>} : vector<16x16xf32>, vector<16x64xf32>, vector<16x64xf32> -> vector<16x64xf32>
    %292 = arith.addf %284, %291 : vector<16x64xf32>
    %c32_217 = arith.constant 32 : index
    %c0_218 = arith.constant 0 : index
    %293 = vector.load %arg10[%c32_217, %c0_218] : memref<74x1xf32, #tpu.memory_space<vmem>>, vector<16x1xf32>
    %294 = arith.addf %254, %273 : vector<16x64xf32>
    %295 = vector.broadcast %293 : vector<16x1xf32> to vector<16x64xf32>
    %296 = arith.addf %292, %295 : vector<16x64xf32>
    %297 = arith.addf %294, %296 : vector<16x64xf32>
    %cst_219 = arith.constant 0.000000e+00 : f32
    %298 = vector.broadcast %cst_219 : f32 to vector<16x64xf32>
    %299 = arith.cmpf oge, %297, %298 : vector<16x64xf32>
    %cst_220 = arith.constant 0.00999999977 : f32
    %300 = vector.broadcast %cst_220 : f32 to vector<16x64xf32>
    %301 = arith.mulf %300, %297 : vector<16x64xf32>
    %302 = arith.select %299, %297, %301 : vector<16x64xi1>, vector<16x64xf32>
    %c0_221 = arith.constant 0 : index
    %c0_222 = arith.constant 0 : index
    %303 = vector.load %arg11[%c0_221, %c0_222] : memref<64x256xf32, #tpu.memory_space<vmem>>, vector<64x256xf32>
    %cst_223 = arith.constant dense<0.000000e+00> : vector<16x256xf32>
    %304 = tpu.matmul %302, %303, %cst_223 {dimension_numbers = #tpu.dot_dimension_numbers<[1], [0], [0], [1], [0, 0, 1, 1], [], []>} : vector<16x64xf32>, vector<64x256xf32>, vector<16x256xf32> -> vector<16x256xf32>
    %c0_224 = arith.constant 0 : index
    %c128_225 = arith.constant 128 : index
    %305 = vector.load %arg14[%c0_224, %c128_225] : memref<16x512xf32, #tpu.memory_space<vmem>>, vector<16x256xf32>
    tpu.vector_store %arg14[%c0_224, %c128_225], %304 {strides = array<i32>} : memref<16x512xf32, #tpu.memory_space<vmem>>, vector<16x256xf32>,
    %c0_226 = arith.constant 0 : index
    %c111_227 = arith.constant 111 : index
    %306 = vector.load %arg14[%c0_226, %c111_227] : memref<16x512xf32, #tpu.memory_space<vmem>>, vector<16x256xf32>
    %cst_228 = arith.constant 0.000000e+00 : f32
    %307 = vector.shape_cast %8 : vector<1x256xi1> to vector<1x256xi1>
    %308 = vector.broadcast %307 : vector<1x256xi1> to vector<16x256xi1>
    %309 = vector.broadcast %cst_228 : f32 to vector<16x256xf32>
    %310 = arith.select %308, %306, %309 : vector<16x256xi1>, vector<16x256xf32>
    %c0_229 = arith.constant 0 : index
    %c0_230 = arith.constant 0 : index
    %311 = vector.load %arg6[%c0_229, %c0_230] : memref<8x144xf32, #tpu.memory_space<vmem>>, vector<8x16xf32>
    %cst_231 = arith.constant dense<0.000000e+00> : vector<8x256xf32>
    %312 = tpu.matmul %311, %310, %cst_231 {dimension_numbers = #tpu.dot_dimension_numbers<[1], [0], [0], [1], [0, 0, 1, 1], [], []>} : vector<8x16xf32>, vector<16x256xf32>, vector<8x256xf32> -> vector<8x256xf32>
    %c0_232 = arith.constant 0 : index
    %c112_233 = arith.constant 112 : index
    %313 = vector.load %arg14[%c0_232, %c112_233] : memref<16x512xf32, #tpu.memory_space<vmem>>, vector<16x256xf32>
    %c0_234 = arith.constant 0 : index
    %c16_235 = arith.constant 16 : index
    %314 = vector.load %arg6[%c0_234, %c16_235] : memref<8x144xf32, #tpu.memory_space<vmem>>, vector<8x16xf32>
    %cst_236 = arith.constant dense<0.000000e+00> : vector<8x256xf32>
    %315 = tpu.matmul %314, %313, %cst_236 {dimension_numbers = #tpu.dot_dimension_numbers<[1], [0], [0], [1], [0, 0, 1, 1], [], []>} : vector<8x16xf32>, vector<16x256xf32>, vector<8x256xf32> -> vector<8x256xf32>
    %316 = arith.addf %312, %315 : vector<8x256xf32>
    %c0_237 = arith.constant 0 : index
    %c113_238 = arith.constant 113 : index
    %317 = vector.load %arg14[%c0_237, %c113_238] : memref<16x512xf32, #tpu.memory_space<vmem>>, vector<16x256xf32>
    %cst_239 = arith.constant 0.000000e+00 : f32
    %318 = vector.shape_cast %10 : vector<1x256xi1> to vector<1x256xi1>
    %319 = vector.broadcast %318 : vector<1x256xi1> to vector<16x256xi1>
    %320 = vector.broadcast %cst_239 : f32 to vector<16x256xf32>
    %321 = arith.select %319, %317, %320 : vector<16x256xi1>, vector<16x256xf32>
    %c0_240 = arith.constant 0 : index
    %c32_241 = arith.constant 32 : index
    %322 = vector.load %arg6[%c0_240, %c32_241] : memref<8x144xf32, #tpu.memory_space<vmem>>, vector<8x16xf32>
    %cst_242 = arith.constant dense<0.000000e+00> : vector<8x256xf32>
    %323 = tpu.matmul %322, %321, %cst_242 {dimension_numbers = #tpu.dot_dimension_numbers<[1], [0], [0], [1], [0, 0, 1, 1], [], []>} : vector<8x16xf32>, vector<16x256xf32>, vector<8x256xf32> -> vector<8x256xf32>
    %324 = arith.addf %316, %323 : vector<8x256xf32>
    %c0_243 = arith.constant 0 : index
    %c127_244 = arith.constant 127 : index
    %325 = vector.load %arg14[%c0_243, %c127_244] : memref<16x512xf32, #tpu.memory_space<vmem>>, vector<16x256xf32>
    %cst_245 = arith.constant 0.000000e+00 : f32
    %326 = vector.shape_cast %8 : vector<1x256xi1> to vector<1x256xi1>
    %327 = vector.broadcast %326 : vector<1x256xi1> to vector<16x256xi1>
    %328 = vector.broadcast %cst_245 : f32 to vector<16x256xf32>
    %329 = arith.select %327, %325, %328 : vector<16x256xi1>, vector<16x256xf32>
    %c0_246 = arith.constant 0 : index
    %c48_247 = arith.constant 48 : index
    %330 = vector.load %arg6[%c0_246, %c48_247] : memref<8x144xf32, #tpu.memory_space<vmem>>, vector<8x16xf32>
    %cst_248 = arith.constant dense<0.000000e+00> : vector<8x256xf32>
    %331 = tpu.matmul %330, %329, %cst_248 {dimension_numbers = #tpu.dot_dimension_numbers<[1], [0], [0], [1], [0, 0, 1, 1], [], []>} : vector<8x16xf32>, vector<16x256xf32>, vector<8x256xf32> -> vector<8x256xf32>
    %c0_249 = arith.constant 0 : index
    %c128_250 = arith.constant 128 : index
    %332 = vector.load %arg14[%c0_249, %c128_250] : memref<16x512xf32, #tpu.memory_space<vmem>>, vector<16x256xf32>
    %c0_251 = arith.constant 0 : index
    %c64_252 = arith.constant 64 : index
    %333 = vector.load %arg6[%c0_251, %c64_252] : memref<8x144xf32, #tpu.memory_space<vmem>>, vector<8x16xf32>
    %cst_253 = arith.constant dense<0.000000e+00> : vector<8x256xf32>
    %334 = tpu.matmul %333, %332, %cst_253 {dimension_numbers = #tpu.dot_dimension_numbers<[1], [0], [0], [1], [0, 0, 1, 1], [], []>} : vector<8x16xf32>, vector<16x256xf32>, vector<8x256xf32> -> vector<8x256xf32>
    %335 = arith.addf %331, %334 : vector<8x256xf32>
    %c0_254 = arith.constant 0 : index
    %c129_255 = arith.constant 129 : index
    %336 = vector.load %arg14[%c0_254, %c129_255] : memref<16x512xf32, #tpu.memory_space<vmem>>, vector<16x256xf32>
    %cst_256 = arith.constant 0.000000e+00 : f32
    %337 = vector.shape_cast %10 : vector<1x256xi1> to vector<1x256xi1>
    %338 = vector.broadcast %337 : vector<1x256xi1> to vector<16x256xi1>
    %339 = vector.broadcast %cst_256 : f32 to vector<16x256xf32>
    %340 = arith.select %338, %336, %339 : vector<16x256xi1>, vector<16x256xf32>
    %c0_257 = arith.constant 0 : index
    %c80_258 = arith.constant 80 : index
    %341 = vector.load %arg6[%c0_257, %c80_258] : memref<8x144xf32, #tpu.memory_space<vmem>>, vector<8x16xf32>
    %cst_259 = arith.constant dense<0.000000e+00> : vector<8x256xf32>
    %342 = tpu.matmul %341, %340, %cst_259 {dimension_numbers = #tpu.dot_dimension_numbers<[1], [0], [0], [1], [0, 0, 1, 1], [], []>} : vector<8x16xf32>, vector<16x256xf32>, vector<8x256xf32> -> vector<8x256xf32>
    %343 = arith.addf %335, %342 : vector<8x256xf32>
    %c0_260 = arith.constant 0 : index
    %c143_261 = arith.constant 143 : index
    %344 = vector.load %arg14[%c0_260, %c143_261] : memref<16x512xf32, #tpu.memory_space<vmem>>, vector<16x256xf32>
    %cst_262 = arith.constant 0.000000e+00 : f32
    %345 = vector.shape_cast %8 : vector<1x256xi1> to vector<1x256xi1>
    %346 = vector.broadcast %345 : vector<1x256xi1> to vector<16x256xi1>
    %347 = vector.broadcast %cst_262 : f32 to vector<16x256xf32>
    %348 = arith.select %346, %344, %347 : vector<16x256xi1>, vector<16x256xf32>
    %c0_263 = arith.constant 0 : index
    %c96_264 = arith.constant 96 : index
    %349 = vector.load %arg6[%c0_263, %c96_264] : memref<8x144xf32, #tpu.memory_space<vmem>>, vector<8x16xf32>
    %cst_265 = arith.constant dense<0.000000e+00> : vector<8x256xf32>
    %350 = tpu.matmul %349, %348, %cst_265 {dimension_numbers = #tpu.dot_dimension_numbers<[1], [0], [0], [1], [0, 0, 1, 1], [], []>} : vector<8x16xf32>, vector<16x256xf32>, vector<8x256xf32> -> vector<8x256xf32>
    %c0_266 = arith.constant 0 : index
    %c144_267 = arith.constant 144 : index
    %351 = vector.load %arg14[%c0_266, %c144_267] : memref<16x512xf32, #tpu.memory_space<vmem>>, vector<16x256xf32>
    %c0_268 = arith.constant 0 : index
    %c112_269 = arith.constant 112 : index
    %352 = vector.load %arg6[%c0_268, %c112_269] : memref<8x144xf32, #tpu.memory_space<vmem>>, vector<8x16xf32>
    %cst_270 = arith.constant dense<0.000000e+00> : vector<8x256xf32>
    %353 = tpu.matmul %352, %351, %cst_270 {dimension_numbers = #tpu.dot_dimension_numbers<[1], [0], [0], [1], [0, 0, 1, 1], [], []>} : vector<8x16xf32>, vector<16x256xf32>, vector<8x256xf32> -> vector<8x256xf32>
    %354 = arith.addf %350, %353 : vector<8x256xf32>
    %c0_271 = arith.constant 0 : index
    %c145_272 = arith.constant 145 : index
    %355 = vector.load %arg14[%c0_271, %c145_272] : memref<16x512xf32, #tpu.memory_space<vmem>>, vector<16x256xf32>
    %cst_273 = arith.constant 0.000000e+00 : f32
    %356 = vector.shape_cast %10 : vector<1x256xi1> to vector<1x256xi1>
    %357 = vector.broadcast %356 : vector<1x256xi1> to vector<16x256xi1>
    %358 = vector.broadcast %cst_273 : f32 to vector<16x256xf32>
    %359 = arith.select %357, %355, %358 : vector<16x256xi1>, vector<16x256xf32>
    %c0_274 = arith.constant 0 : index
    %c128_275 = arith.constant 128 : index
    %360 = vector.load %arg6[%c0_274, %c128_275] : memref<8x144xf32, #tpu.memory_space<vmem>>, vector<8x16xf32>
    %cst_276 = arith.constant dense<0.000000e+00> : vector<8x256xf32>
    %361 = tpu.matmul %360, %359, %cst_276 {dimension_numbers = #tpu.dot_dimension_numbers<[1], [0], [0], [1], [0, 0, 1, 1], [], []>} : vector<8x16xf32>, vector<16x256xf32>, vector<8x256xf32> -> vector<8x256xf32>
    %362 = arith.addf %354, %361 : vector<8x256xf32>
    %c48_277 = arith.constant 48 : index
    %c0_278 = arith.constant 0 : index
    %363 = vector.load %arg10[%c48_277, %c0_278] : memref<74x1xf32, #tpu.memory_space<vmem>>, vector<8x1xf32>
    %364 = arith.addf %324, %343 : vector<8x256xf32>
    %365 = vector.broadcast %363 : vector<8x1xf32> to vector<8x256xf32>
    %366 = arith.addf %362, %365 : vector<8x256xf32>
    %367 = arith.addf %364, %366 : vector<8x256xf32>
    %c0_279 = arith.constant 0 : index
    %c128_280 = arith.constant 128 : index
    %368 = vector.load %arg14[%c0_279, %c128_280] : memref<16x512xf32, #tpu.memory_space<vmem>>, vector<8x256xf32>
    tpu.vector_store %arg14[%c0_279, %c128_280], %367 {strides = array<i32>} : memref<16x512xf32, #tpu.memory_space<vmem>>, vector<8x256xf32>,
    %c8_281 = arith.constant 8 : index
    %c128_282 = arith.constant 128 : index
    %369 = vector.load %arg14[%c8_281, %c128_282] : memref<16x512xf32, #tpu.memory_space<vmem>>, vector<8x256xf32>
    tpu.vector_store %arg14[%c8_281, %c128_282], %155 {strides = array<i32>} : memref<16x512xf32, #tpu.memory_space<vmem>>, vector<8x256xf32>,
    %c0_283 = arith.constant 0 : index
    %c111_284 = arith.constant 111 : index
    %370 = vector.load %arg14[%c0_283, %c111_284] : memref<16x512xf32, #tpu.memory_space<vmem>>, vector<16x256xf32>
    %cst_285 = arith.constant 0.000000e+00 : f32
    %371 = vector.shape_cast %8 : vector<1x256xi1> to vector<1x256xi1>
    %372 = vector.broadcast %371 : vector<1x256xi1> to vector<16x256xi1>
    %373 = vector.broadcast %cst_285 : f32 to vector<16x256xf32>
    %374 = arith.select %372, %370, %373 : vector<16x256xi1>, vector<16x256xf32>
    %c0_286 = arith.constant 0 : index
    %c0_287 = arith.constant 0 : index
    %375 = vector.load %arg7[%c0_286, %c0_287] : memref<8x144xf32, #tpu.memory_space<vmem>>, vector<8x16xf32>
    %cst_288 = arith.constant dense<0.000000e+00> : vector<8x256xf32>
    %376 = tpu.matmul %375, %374, %cst_288 {dimension_numbers = #tpu.dot_dimension_numbers<[1], [0], [0], [1], [0, 0, 1, 1], [], []>} : vector<8x16xf32>, vector<16x256xf32>, vector<8x256xf32> -> vector<8x256xf32>
    %c0_289 = arith.constant 0 : index
    %c112_290 = arith.constant 112 : index
    %377 = vector.load %arg14[%c0_289, %c112_290] : memref<16x512xf32, #tpu.memory_space<vmem>>, vector<16x256xf32>
    %c0_291 = arith.constant 0 : index
    %c16_292 = arith.constant 16 : index
    %378 = vector.load %arg7[%c0_291, %c16_292] : memref<8x144xf32, #tpu.memory_space<vmem>>, vector<8x16xf32>
    %cst_293 = arith.constant dense<0.000000e+00> : vector<8x256xf32>
    %379 = tpu.matmul %378, %377, %cst_293 {dimension_numbers = #tpu.dot_dimension_numbers<[1], [0], [0], [1], [0, 0, 1, 1], [], []>} : vector<8x16xf32>, vector<16x256xf32>, vector<8x256xf32> -> vector<8x256xf32>
    %380 = arith.addf %376, %379 : vector<8x256xf32>
    %c0_294 = arith.constant 0 : index
    %c113_295 = arith.constant 113 : index
    %381 = vector.load %arg14[%c0_294, %c113_295] : memref<16x512xf32, #tpu.memory_space<vmem>>, vector<16x256xf32>
    %cst_296 = arith.constant 0.000000e+00 : f32
    %382 = vector.shape_cast %10 : vector<1x256xi1> to vector<1x256xi1>
    %383 = vector.broadcast %382 : vector<1x256xi1> to vector<16x256xi1>
    %384 = vector.broadcast %cst_296 : f32 to vector<16x256xf32>
    %385 = arith.select %383, %381, %384 : vector<16x256xi1>, vector<16x256xf32>
    %c0_297 = arith.constant 0 : index
    %c32_298 = arith.constant 32 : index
    %386 = vector.load %arg7[%c0_297, %c32_298] : memref<8x144xf32, #tpu.memory_space<vmem>>, vector<8x16xf32>
    %cst_299 = arith.constant dense<0.000000e+00> : vector<8x256xf32>
    %387 = tpu.matmul %386, %385, %cst_299 {dimension_numbers = #tpu.dot_dimension_numbers<[1], [0], [0], [1], [0, 0, 1, 1], [], []>} : vector<8x16xf32>, vector<16x256xf32>, vector<8x256xf32> -> vector<8x256xf32>
    %388 = arith.addf %380, %387 : vector<8x256xf32>
    %c0_300 = arith.constant 0 : index
    %c127_301 = arith.constant 127 : index
    %389 = vector.load %arg14[%c0_300, %c127_301] : memref<16x512xf32, #tpu.memory_space<vmem>>, vector<16x256xf32>
    %cst_302 = arith.constant 0.000000e+00 : f32
    %390 = vector.shape_cast %8 : vector<1x256xi1> to vector<1x256xi1>
    %391 = vector.broadcast %390 : vector<1x256xi1> to vector<16x256xi1>
    %392 = vector.broadcast %cst_302 : f32 to vector<16x256xf32>
    %393 = arith.select %391, %389, %392 : vector<16x256xi1>, vector<16x256xf32>
    %c0_303 = arith.constant 0 : index
    %c48_304 = arith.constant 48 : index
    %394 = vector.load %arg7[%c0_303, %c48_304] : memref<8x144xf32, #tpu.memory_space<vmem>>, vector<8x16xf32>
    %cst_305 = arith.constant dense<0.000000e+00> : vector<8x256xf32>
    %395 = tpu.matmul %394, %393, %cst_305 {dimension_numbers = #tpu.dot_dimension_numbers<[1], [0], [0], [1], [0, 0, 1, 1], [], []>} : vector<8x16xf32>, vector<16x256xf32>, vector<8x256xf32> -> vector<8x256xf32>
    %c0_306 = arith.constant 0 : index
    %c128_307 = arith.constant 128 : index
    %396 = vector.load %arg14[%c0_306, %c128_307] : memref<16x512xf32, #tpu.memory_space<vmem>>, vector<16x256xf32>
    %c0_308 = arith.constant 0 : index
    %c64_309 = arith.constant 64 : index
    %397 = vector.load %arg7[%c0_308, %c64_309] : memref<8x144xf32, #tpu.memory_space<vmem>>, vector<8x16xf32>
    %cst_310 = arith.constant dense<0.000000e+00> : vector<8x256xf32>
    %398 = tpu.matmul %397, %396, %cst_310 {dimension_numbers = #tpu.dot_dimension_numbers<[1], [0], [0], [1], [0, 0, 1, 1], [], []>} : vector<8x16xf32>, vector<16x256xf32>, vector<8x256xf32> -> vector<8x256xf32>
    %399 = arith.addf %395, %398 : vector<8x256xf32>
    %c0_311 = arith.constant 0 : index
    %c129_312 = arith.constant 129 : index
    %400 = vector.load %arg14[%c0_311, %c129_312] : memref<16x512xf32, #tpu.memory_space<vmem>>, vector<16x256xf32>
    %cst_313 = arith.constant 0.000000e+00 : f32
    %401 = vector.shape_cast %10 : vector<1x256xi1> to vector<1x256xi1>
    %402 = vector.broadcast %401 : vector<1x256xi1> to vector<16x256xi1>
    %403 = vector.broadcast %cst_313 : f32 to vector<16x256xf32>
    %404 = arith.select %402, %400, %403 : vector<16x256xi1>, vector<16x256xf32>
    %c0_314 = arith.constant 0 : index
    %c80_315 = arith.constant 80 : index
    %405 = vector.load %arg7[%c0_314, %c80_315] : memref<8x144xf32, #tpu.memory_space<vmem>>, vector<8x16xf32>
    %cst_316 = arith.constant dense<0.000000e+00> : vector<8x256xf32>
    %406 = tpu.matmul %405, %404, %cst_316 {dimension_numbers = #tpu.dot_dimension_numbers<[1], [0], [0], [1], [0, 0, 1, 1], [], []>} : vector<8x16xf32>, vector<16x256xf32>, vector<8x256xf32> -> vector<8x256xf32>
    %407 = arith.addf %399, %406 : vector<8x256xf32>
    %c0_317 = arith.constant 0 : index
    %c143_318 = arith.constant 143 : index
    %408 = vector.load %arg14[%c0_317, %c143_318] : memref<16x512xf32, #tpu.memory_space<vmem>>, vector<16x256xf32>
    %cst_319 = arith.constant 0.000000e+00 : f32
    %409 = vector.shape_cast %8 : vector<1x256xi1> to vector<1x256xi1>
    %410 = vector.broadcast %409 : vector<1x256xi1> to vector<16x256xi1>
    %411 = vector.broadcast %cst_319 : f32 to vector<16x256xf32>
    %412 = arith.select %410, %408, %411 : vector<16x256xi1>, vector<16x256xf32>
    %c0_320 = arith.constant 0 : index
    %c96_321 = arith.constant 96 : index
    %413 = vector.load %arg7[%c0_320, %c96_321] : memref<8x144xf32, #tpu.memory_space<vmem>>, vector<8x16xf32>
    %cst_322 = arith.constant dense<0.000000e+00> : vector<8x256xf32>
    %414 = tpu.matmul %413, %412, %cst_322 {dimension_numbers = #tpu.dot_dimension_numbers<[1], [0], [0], [1], [0, 0, 1, 1], [], []>} : vector<8x16xf32>, vector<16x256xf32>, vector<8x256xf32> -> vector<8x256xf32>
    %c0_323 = arith.constant 0 : index
    %c144_324 = arith.constant 144 : index
    %415 = vector.load %arg14[%c0_323, %c144_324] : memref<16x512xf32, #tpu.memory_space<vmem>>, vector<16x256xf32>
    %c0_325 = arith.constant 0 : index
    %c112_326 = arith.constant 112 : index
    %416 = vector.load %arg7[%c0_325, %c112_326] : memref<8x144xf32, #tpu.memory_space<vmem>>, vector<8x16xf32>
    %cst_327 = arith.constant dense<0.000000e+00> : vector<8x256xf32>
    %417 = tpu.matmul %416, %415, %cst_327 {dimension_numbers = #tpu.dot_dimension_numbers<[1], [0], [0], [1], [0, 0, 1, 1], [], []>} : vector<8x16xf32>, vector<16x256xf32>, vector<8x256xf32> -> vector<8x256xf32>
    %418 = arith.addf %414, %417 : vector<8x256xf32>
    %c0_328 = arith.constant 0 : index
    %c145_329 = arith.constant 145 : index
    %419 = vector.load %arg14[%c0_328, %c145_329] : memref<16x512xf32, #tpu.memory_space<vmem>>, vector<16x256xf32>
    %cst_330 = arith.constant 0.000000e+00 : f32
    %420 = vector.shape_cast %10 : vector<1x256xi1> to vector<1x256xi1>
    %421 = vector.broadcast %420 : vector<1x256xi1> to vector<16x256xi1>
    %422 = vector.broadcast %cst_330 : f32 to vector<16x256xf32>
    %423 = arith.select %421, %419, %422 : vector<16x256xi1>, vector<16x256xf32>
    %c0_331 = arith.constant 0 : index
    %c128_332 = arith.constant 128 : index
    %424 = vector.load %arg7[%c0_331, %c128_332] : memref<8x144xf32, #tpu.memory_space<vmem>>, vector<8x16xf32>
    %cst_333 = arith.constant dense<0.000000e+00> : vector<8x256xf32>
    %425 = tpu.matmul %424, %423, %cst_333 {dimension_numbers = #tpu.dot_dimension_numbers<[1], [0], [0], [1], [0, 0, 1, 1], [], []>} : vector<8x16xf32>, vector<16x256xf32>, vector<8x256xf32> -> vector<8x256xf32>
    %426 = arith.addf %418, %425 : vector<8x256xf32>
    %c56_334 = arith.constant 56 : index
    %c0_335 = arith.constant 0 : index
    %427 = vector.load %arg10[%c56_334, %c0_335] : memref<74x1xf32, #tpu.memory_space<vmem>>, vector<8x1xf32>
    %428 = arith.addf %388, %407 : vector<8x256xf32>
    %429 = vector.broadcast %427 : vector<8x1xf32> to vector<8x256xf32>
    %430 = arith.addf %426, %429 : vector<8x256xf32>
    %431 = arith.addf %428, %430 : vector<8x256xf32>
    %cst_336 = arith.constant 0.000000e+00 : f32
    %432 = vector.broadcast %cst_336 : f32 to vector<8x256xf32>
    %433 = arith.cmpf oge, %431, %432 : vector<8x256xf32>
    %cst_337 = arith.constant 0.00999999977 : f32
    %434 = vector.broadcast %cst_337 : f32 to vector<8x256xf32>
    %435 = arith.mulf %434, %431 : vector<8x256xf32>
    %436 = arith.select %433, %431, %435 : vector<8x256xi1>, vector<8x256xf32>
    %c0_338 = arith.constant 0 : index
    %c128_339 = arith.constant 128 : index
    %437 = vector.load %arg14[%c0_338, %c128_339] : memref<16x512xf32, #tpu.memory_space<vmem>>, vector<8x256xf32>
    tpu.vector_store %arg14[%c0_338, %c128_339], %436 {strides = array<i32>} : memref<16x512xf32, #tpu.memory_space<vmem>>, vector<8x256xf32>,
    %c0_340 = arith.constant 0 : index
    %c111_341 = arith.constant 111 : index
    %438 = vector.load %arg14[%c0_340, %c111_341] : memref<16x512xf32, #tpu.memory_space<vmem>>, vector<8x256xf32>
    %cst_342 = arith.constant 0.000000e+00 : f32
    %439 = vector.shape_cast %8 : vector<1x256xi1> to vector<1x256xi1>
    %440 = vector.broadcast %439 : vector<1x256xi1> to vector<8x256xi1>
    %441 = vector.broadcast %cst_342 : f32 to vector<8x256xf32>
    %442 = arith.select %440, %438, %441 : vector<8x256xi1>, vector<8x256xf32>
    %c0_343 = arith.constant 0 : index
    %c0_344 = arith.constant 0 : index
    %443 = vector.load %arg8[%c0_343, %c0_344] : memref<8x72xf32, #tpu.memory_space<vmem>>, vector<8x8xf32>
    %cst_345 = arith.constant dense<0.000000e+00> : vector<8x256xf32>
    %444 = tpu.matmul %443, %442, %cst_345 {dimension_numbers = #tpu.dot_dimension_numbers<[1], [0], [0], [1], [0, 0, 1, 1], [], []>} : vector<8x8xf32>, vector<8x256xf32>, vector<8x256xf32> -> vector<8x256xf32>
    %c0_346 = arith.constant 0 : index
    %c112_347 = arith.constant 112 : index
    %445 = vector.load %arg14[%c0_346, %c112_347] : memref<16x512xf32, #tpu.memory_space<vmem>>, vector<8x256xf32>
    %c0_348 = arith.constant 0 : index
    %c8_349 = arith.constant 8 : index
    %446 = vector.load %arg8[%c0_348, %c8_349] : memref<8x72xf32, #tpu.memory_space<vmem>>, vector<8x8xf32>
    %cst_350 = arith.constant dense<0.000000e+00> : vector<8x256xf32>
    %447 = tpu.matmul %446, %445, %cst_350 {dimension_numbers = #tpu.dot_dimension_numbers<[1], [0], [0], [1], [0, 0, 1, 1], [], []>} : vector<8x8xf32>, vector<8x256xf32>, vector<8x256xf32> -> vector<8x256xf32>
    %448 = arith.addf %444, %447 : vector<8x256xf32>
    %c0_351 = arith.constant 0 : index
    %c113_352 = arith.constant 113 : index
    %449 = vector.load %arg14[%c0_351, %c113_352] : memref<16x512xf32, #tpu.memory_space<vmem>>, vector<8x256xf32>
    %cst_353 = arith.constant 0.000000e+00 : f32
    %450 = vector.shape_cast %10 : vector<1x256xi1> to vector<1x256xi1>
    %451 = vector.broadcast %450 : vector<1x256xi1> to vector<8x256xi1>
    %452 = vector.broadcast %cst_353 : f32 to vector<8x256xf32>
    %453 = arith.select %451, %449, %452 : vector<8x256xi1>, vector<8x256xf32>
    %c0_354 = arith.constant 0 : index
    %c16_355 = arith.constant 16 : index
    %454 = vector.load %arg8[%c0_354, %c16_355] : memref<8x72xf32, #tpu.memory_space<vmem>>, vector<8x8xf32>
    %cst_356 = arith.constant dense<0.000000e+00> : vector<8x256xf32>
    %455 = tpu.matmul %454, %453, %cst_356 {dimension_numbers = #tpu.dot_dimension_numbers<[1], [0], [0], [1], [0, 0, 1, 1], [], []>} : vector<8x8xf32>, vector<8x256xf32>, vector<8x256xf32> -> vector<8x256xf32>
    %456 = arith.addf %448, %455 : vector<8x256xf32>
    %c0_357 = arith.constant 0 : index
    %c127_358 = arith.constant 127 : index
    %457 = vector.load %arg14[%c0_357, %c127_358] : memref<16x512xf32, #tpu.memory_space<vmem>>, vector<8x256xf32>
    %cst_359 = arith.constant 0.000000e+00 : f32
    %458 = vector.shape_cast %8 : vector<1x256xi1> to vector<1x256xi1>
    %459 = vector.broadcast %458 : vector<1x256xi1> to vector<8x256xi1>
    %460 = vector.broadcast %cst_359 : f32 to vector<8x256xf32>
    %461 = arith.select %459, %457, %460 : vector<8x256xi1>, vector<8x256xf32>
    %c0_360 = arith.constant 0 : index
    %c24_361 = arith.constant 24 : index
    %462 = vector.load %arg8[%c0_360, %c24_361] : memref<8x72xf32, #tpu.memory_space<vmem>>, vector<8x8xf32>
    %cst_362 = arith.constant dense<0.000000e+00> : vector<8x256xf32>
    %463 = tpu.matmul %462, %461, %cst_362 {dimension_numbers = #tpu.dot_dimension_numbers<[1], [0], [0], [1], [0, 0, 1, 1], [], []>} : vector<8x8xf32>, vector<8x256xf32>, vector<8x256xf32> -> vector<8x256xf32>
    %c0_363 = arith.constant 0 : index
    %c128_364 = arith.constant 128 : index
    %464 = vector.load %arg14[%c0_363, %c128_364] : memref<16x512xf32, #tpu.memory_space<vmem>>, vector<8x256xf32>
    %c0_365 = arith.constant 0 : index
    %c32_366 = arith.constant 32 : index
    %465 = vector.load %arg8[%c0_365, %c32_366] : memref<8x72xf32, #tpu.memory_space<vmem>>, vector<8x8xf32>
    %cst_367 = arith.constant dense<0.000000e+00> : vector<8x256xf32>
    %466 = tpu.matmul %465, %464, %cst_367 {dimension_numbers = #tpu.dot_dimension_numbers<[1], [0], [0], [1], [0, 0, 1, 1], [], []>} : vector<8x8xf32>, vector<8x256xf32>, vector<8x256xf32> -> vector<8x256xf32>
    %467 = arith.addf %463, %466 : vector<8x256xf32>
    %c0_368 = arith.constant 0 : index
    %c129_369 = arith.constant 129 : index
    %468 = vector.load %arg14[%c0_368, %c129_369] : memref<16x512xf32, #tpu.memory_space<vmem>>, vector<8x256xf32>
    %cst_370 = arith.constant 0.000000e+00 : f32
    %469 = vector.shape_cast %10 : vector<1x256xi1> to vector<1x256xi1>
    %470 = vector.broadcast %469 : vector<1x256xi1> to vector<8x256xi1>
    %471 = vector.broadcast %cst_370 : f32 to vector<8x256xf32>
    %472 = arith.select %470, %468, %471 : vector<8x256xi1>, vector<8x256xf32>
    %c0_371 = arith.constant 0 : index
    %c40_372 = arith.constant 40 : index
    %473 = vector.load %arg8[%c0_371, %c40_372] : memref<8x72xf32, #tpu.memory_space<vmem>>, vector<8x8xf32>
    %cst_373 = arith.constant dense<0.000000e+00> : vector<8x256xf32>
    %474 = tpu.matmul %473, %472, %cst_373 {dimension_numbers = #tpu.dot_dimension_numbers<[1], [0], [0], [1], [0, 0, 1, 1], [], []>} : vector<8x8xf32>, vector<8x256xf32>, vector<8x256xf32> -> vector<8x256xf32>
    %475 = arith.addf %467, %474 : vector<8x256xf32>
    %c0_374 = arith.constant 0 : index
    %c143_375 = arith.constant 143 : index
    %476 = vector.load %arg14[%c0_374, %c143_375] : memref<16x512xf32, #tpu.memory_space<vmem>>, vector<8x256xf32>
    %cst_376 = arith.constant 0.000000e+00 : f32
    %477 = vector.shape_cast %8 : vector<1x256xi1> to vector<1x256xi1>
    %478 = vector.broadcast %477 : vector<1x256xi1> to vector<8x256xi1>
    %479 = vector.broadcast %cst_376 : f32 to vector<8x256xf32>
    %480 = arith.select %478, %476, %479 : vector<8x256xi1>, vector<8x256xf32>
    %c0_377 = arith.constant 0 : index
    %c48_378 = arith.constant 48 : index
    %481 = vector.load %arg8[%c0_377, %c48_378] : memref<8x72xf32, #tpu.memory_space<vmem>>, vector<8x8xf32>
    %cst_379 = arith.constant dense<0.000000e+00> : vector<8x256xf32>
    %482 = tpu.matmul %481, %480, %cst_379 {dimension_numbers = #tpu.dot_dimension_numbers<[1], [0], [0], [1], [0, 0, 1, 1], [], []>} : vector<8x8xf32>, vector<8x256xf32>, vector<8x256xf32> -> vector<8x256xf32>
    %c0_380 = arith.constant 0 : index
    %c144_381 = arith.constant 144 : index
    %483 = vector.load %arg14[%c0_380, %c144_381] : memref<16x512xf32, #tpu.memory_space<vmem>>, vector<8x256xf32>
    %c0_382 = arith.constant 0 : index
    %c56_383 = arith.constant 56 : index
    %484 = vector.load %arg8[%c0_382, %c56_383] : memref<8x72xf32, #tpu.memory_space<vmem>>, vector<8x8xf32>
    %cst_384 = arith.constant dense<0.000000e+00> : vector<8x256xf32>
    %485 = tpu.matmul %484, %483, %cst_384 {dimension_numbers = #tpu.dot_dimension_numbers<[1], [0], [0], [1], [0, 0, 1, 1], [], []>} : vector<8x8xf32>, vector<8x256xf32>, vector<8x256xf32> -> vector<8x256xf32>
    %486 = arith.addf %482, %485 : vector<8x256xf32>
    %c0_385 = arith.constant 0 : index
    %c145_386 = arith.constant 145 : index
    %487 = vector.load %arg14[%c0_385, %c145_386] : memref<16x512xf32, #tpu.memory_space<vmem>>, vector<8x256xf32>
    %cst_387 = arith.constant 0.000000e+00 : f32
    %488 = vector.shape_cast %10 : vector<1x256xi1> to vector<1x256xi1>
    %489 = vector.broadcast %488 : vector<1x256xi1> to vector<8x256xi1>
    %490 = vector.broadcast %cst_387 : f32 to vector<8x256xf32>
    %491 = arith.select %489, %487, %490 : vector<8x256xi1>, vector<8x256xf32>
    %c0_388 = arith.constant 0 : index
    %c64_389 = arith.constant 64 : index
    %492 = vector.load %arg8[%c0_388, %c64_389] : memref<8x72xf32, #tpu.memory_space<vmem>>, vector<8x8xf32>
    %cst_390 = arith.constant dense<0.000000e+00> : vector<8x256xf32>
    %493 = tpu.matmul %492, %491, %cst_390 {dimension_numbers = #tpu.dot_dimension_numbers<[1], [0], [0], [1], [0, 0, 1, 1], [], []>} : vector<8x8xf32>, vector<8x256xf32>, vector<8x256xf32> -> vector<8x256xf32>
    %494 = arith.addf %486, %493 : vector<8x256xf32>
    %c64_391 = arith.constant 64 : index
    %c0_392 = arith.constant 0 : index
    %495 = vector.load %arg10[%c64_391, %c0_392] : memref<74x1xf32, #tpu.memory_space<vmem>>, vector<8x1xf32>
    %496 = arith.addf %456, %475 : vector<8x256xf32>
    %497 = vector.broadcast %495 : vector<8x1xf32> to vector<8x256xf32>
    %498 = arith.addf %494, %497 : vector<8x256xf32>
    %499 = arith.addf %496, %498 : vector<8x256xf32>
    %cst_393 = arith.constant 0.000000e+00 : f32
    %500 = vector.broadcast %cst_393 : f32 to vector<8x256xf32>
    %501 = arith.cmpf oge, %499, %500 : vector<8x256xf32>
    %cst_394 = arith.constant 0.00999999977 : f32
    %502 = vector.broadcast %cst_394 : f32 to vector<8x256xf32>
    %503 = arith.mulf %502, %499 : vector<8x256xf32>
    %504 = arith.select %501, %499, %503 : vector<8x256xi1>, vector<8x256xf32>
    %c0_395 = arith.constant 0 : index
    %c0_396 = arith.constant 0 : index
    %505 = vector.load %arg9[%c0_395, %c0_396] : memref<2x8xf32, #tpu.memory_space<vmem>>, vector<2x8xf32>
    %cst_397 = arith.constant dense<0.000000e+00> : vector<2x256xf32>
    %506 = tpu.matmul %505, %504, %cst_397 {dimension_numbers = #tpu.dot_dimension_numbers<[1], [0], [0], [1], [0, 0, 1, 1], [], []>} : vector<2x8xf32>, vector<8x256xf32>, vector<2x256xf32> -> vector<2x256xf32>
    %c72 = arith.constant 72 : index
    %c0_398 = arith.constant 0 : index
    %507 = vector.load %arg10[%c72, %c0_398] : memref<74x1xf32, #tpu.memory_space<vmem>>, vector<2x1xf32>
    %508 = vector.broadcast %507 : vector<2x1xf32> to vector<2x256xf32>
    %509 = arith.addf %506, %508 : vector<2x256xf32>
    %c0_399 = arith.constant 0 : index
    %c0_400 = arith.constant 0 : index
    %c0_401 = arith.constant 0 : index
    %510 = vector.load %arg13[%c0_399, %c0_400, %c0_401] : memref<1x2x256xf32, #tpu.memory_space<vmem>>, vector<1x2x256xf32>
    %511 = vector.shape_cast %510 : vector<1x2x256xf32> to vector<2x256xf32>
    %512 = vector.shape_cast %509 : vector<2x256xf32> to vector<1x2x256xf32>
    tpu.vector_store %arg13[%c0_399, %c0_400, %c0_401], %512 {strides = array<i32>} : memref<1x2x256xf32, #tpu.memory_space<vmem>>, vector<1x2x256xf32>,
    return
  }
  func.func @transform_0(%arg0: i32) -> (i32, i32, i32) {
    %c0_i32 = arith.constant 0 : i32
    %c0_i32_0 = arith.constant 0 : i32
    %c0_i32_1 = arith.constant 0 : i32
    return %arg0, %c0_i32, %c0_i32_0 : i32, i32, i32
  }
  func.func @transform_1(%arg0: i32) -> (i32, i32) {
    %c0_i32 = arith.constant 0 : i32
    %c0_i32_0 = arith.constant 0 : i32
    %c0_i32_1 = arith.constant 0 : i32
    return %c0_i32, %c0_i32_0 : i32, i32
  }
  func.func @transform_2(%arg0: i32) -> (i32, i32) {
    %c0_i32 = arith.constant 0 : i32
    %c0_i32_0 = arith.constant 0 : i32
    %c0_i32_1 = arith.constant 0 : i32
    return %c0_i32, %c0_i32_0 : i32, i32
  }
  func.func @transform_3(%arg0: i32) -> (i32, i32) {
    %c0_i32 = arith.constant 0 : i32
    %c0_i32_0 = arith.constant 0 : i32
    %c0_i32_1 = arith.constant 0 : i32
    return %c0_i32, %c0_i32_0 : i32, i32
  }
  func.func @transform_4(%arg0: i32) -> (i32, i32) {
    %c0_i32 = arith.constant 0 : i32
    %c0_i32_0 = arith.constant 0 : i32
    %c0_i32_1 = arith.constant 0 : i32
    return %c0_i32, %c0_i32_0 : i32, i32
  }
  func.func @transform_5(%arg0: i32) -> (i32, i32) {
    %c0_i32 = arith.constant 0 : i32
    %c0_i32_0 = arith.constant 0 : i32
    %c0_i32_1 = arith.constant 0 : i32
    return %c0_i32, %c0_i32_0 : i32, i32
  }
  func.func @transform_6(%arg0: i32) -> (i32, i32) {
    %c0_i32 = arith.constant 0 : i32
    %c0_i32_0 = arith.constant 0 : i32
    %c0_i32_1 = arith.constant 0 : i32
    return %c0_i32, %c0_i32_0 : i32, i32
  }
  func.func @transform_7(%arg0: i32) -> (i32, i32) {
    %c0_i32 = arith.constant 0 : i32
    %c0_i32_0 = arith.constant 0 : i32
    %c0_i32_1 = arith.constant 0 : i32
    return %c0_i32, %c0_i32_0 : i32, i32
  }
  func.func @transform_8(%arg0: i32) -> (i32, i32) {
    %c0_i32 = arith.constant 0 : i32
    %c0_i32_0 = arith.constant 0 : i32
    %c0_i32_1 = arith.constant 0 : i32
    return %c0_i32, %c0_i32_0 : i32, i32
  }
  func.func @transform_9(%arg0: i32) -> (i32, i32) {
    %c0_i32 = arith.constant 0 : i32
    %c0_i32_0 = arith.constant 0 : i32
    %c0_i32_1 = arith.constant 0 : i32
    return %c0_i32, %c0_i32_0 : i32, i32
  }
  func.func @transform_10(%arg0: i32) -> (i32, i32) {
    %c0_i32 = arith.constant 0 : i32
    %c0_i32_0 = arith.constant 0 : i32
    %c0_i32_1 = arith.constant 0 : i32
    return %c0_i32, %c0_i32_0 : i32, i32
  }
  func.func @transform_11(%arg0: i32) -> (i32, i32) {
    %c0_i32 = arith.constant 0 : i32
    %c0_i32_0 = arith.constant 0 : i32
    %c0_i32_1 = arith.constant 0 : i32
    return %c0_i32, %c0_i32_0 : i32, i32
  }
  func.func @transform_12(%arg0: i32) -> (i32, i32, i32) {
    %c0_i32 = arith.constant 0 : i32
    %c0_i32_0 = arith.constant 0 : i32
    %c0_i32_1 = arith.constant 0 : i32
    return %arg0, %c0_i32, %c0_i32_0 : i32, i32, i32
  }
}

</mosaic_0001>

<bundles_post_ra>
// kernel: unet_forward.1
= control target key start
LH: loop header
LB: loop body
LE: loop exit
PB: predicated region body
PF: predicated region fallthrough
CT: control target
= control target key end

     0   :  { %s8005_s21 = smov 0   ;;  %s9227_s0 = inlined_call_operand.vmem [shape: f32[2,4,256], index: 0, kind: input, shape index: {}]   ;;  %s9228_s1 = inlined_call_operand.vmem [shape: f32[8,36], index: 1, kind: input, shape index: {}]   ;;  %s9229_s2 = inlined_call_operand.vmem [shape: f32[8,72], index: 2, kind: input, shape index: {}]   ;;  %s9230_s3 = inlined_call_operand.vmem [shape: f32[16,72], index: 3, kind: input, shape index: {}]   ;;  %s9231_s4 = inlined_call_operand.vmem [shape: f32[16,144], index: 4, kind: input, shape index: {}]   ;;  %s9232_s5 = inlined_call_operand.vmem [shape: f32[8,144], index: 5, kind: input, shape index: {}]   ;;  %s9233_s6 = inlined_call_operand.vmem [shape: f32[8,144], index: 6, kind: input, shape index: {}]   ;;  %s9234_s7 = inlined_call_operand.vmem [shape: f32[8,72], index: 7, kind: input, shape index: {}]   ;;  %s9235_s8 = inlined_call_operand.vmem [shape: f32[2,8], index: 8, kind: input, shape index: {}]   ;;  %s9236_s9 = inlined_call_operand.vmem [shape: f32[74,1], index: 9, kind: input, shape index: {}]   ;;  %s9237_s10 = inlined_call_operand.vmem [shape: f32[64,256], index: 10, kind: input, shape index: {}]   ;;  %s9238_s11 = inlined_call_operand.vmem [shape: f32[256,64], index: 11, kind: input, shape index: {}]   ;;  %s9239_s12 = inlined_call_operand.vmem [shape: f32[2,2,256], index: 12, kind: output, shape index: {}]  }
   0x1   :  { %9278 = sst [smem:[#allocation3_spill]] %s9227_s0 }
   0x2   :  { %9279 = sst [smem:[#allocation4_spill]] %s9228_s1 }
   0x3   :  { %9280 = sst [smem:[#allocation5_spill]] %s9229_s2 }
   0x4 LB: > { %s6823_s22 = sadd.s32 4294967295, %s7910_s21   ;;  %p6827_p0 = scmp.ge.s32.totalorder %s7910_s21, 1  ;;  %s7910_s21 = sphi %s8005_s21, %s22_s21  }
   0x5   : > { %p362_p1 = scmp.lt.s32.totalorder %s7910_s21, 3 }
   0x7   : > { %p363_p2 = pnand %p6827_p0, %p362_p1 }
   0x8   : > { %vm414_vm0 = vcmask (!%p363_p2), 1048320   ;;  %p404_p3 = scmp.lt.s32.totalorder (!%p363_p2), %s6823_s22, 1  ;;  %vm417_vm1 = vcmask (!%p363_p2), 261120   ;;  %v7912_v0 = vmov (!%p363_p2), 0.0   ;;  %s9281_s0 = sld [smem:[#allocation3_spill]] (!%p363_p2)  ;;  %v7928_v11 = vmov (!%p363_p2), 0  }
   0x9   : > { %366 = sbr.rel (%p363_p2) target bundleno = 3766 (0xeb6), region = 68  ;;  %415 = vst.msk [vmem:[#allocation2] sm:$0xff] (!%p363_p2), %vm414_vm0, %v7912_v0  ;;  %416 = vst.msk [vmem:[#allocation2 + $0x20] sm:$0xff] (!%p363_p2), %vm414_vm0, %v7912_v0  ;;  %546 = vmatprep.mubr.f32.mxu0 (!%p363_p2), %v7912_v0  ;;  %1564 = vmatprep.mubr.f32.mxu1 (!%p363_p2), %v7912_v0  ;;  %s9248_s27 = smov (!%p363_p2), 16   ;;  %v1285_v12 = vld [vmem:[%s9236_s9] sm:$0xff] (!%p363_p2)  ;;  %v420_v14 = vlaneseq (!%p363_p2)  ;;  %vm471_vm2 = vcmask (!%p363_p2), 130048  }
   0xa   : > { %418 = vst.msk [vmem:[#allocation2 + $0x18] sm:$0xff] (!%p363_p2), %vm417_vm1, %v7912_v0  ;;  %419 = vst.msk [vmem:[#allocation2 + $0x38] sm:$0xff] (!%p363_p2), %vm417_vm1, %v7912_v0  ;;  %s9282_s1 = sld [smem:[#allocation4_spill]] (!%p363_p2)  ;;  %s7914_s30 = smov (!%p363_p2), 124   ;;  %7589 = vset.pattern.permute.xlu0 (!%p363_p2), %v7928_v11  ;;  %7600 = vset.pattern.permute.xlu1 (!%p363_p2), %v7928_v11  ;;  %vm477_vm3 = vcmask (!%p363_p2), 1043456   ;;  %vm474_vm4 = vcmask (!%p363_p2), 31744  }
   0xb   : > { %s9246_s13 = smov (!%p363_p2), 17   ;;  %s9240_s14 = smov (!%p363_p2), 15   ;;  %v8096_v16 = vand.u32 (!%p363_p2), 127, %v420_v14  ;;  %vm454_vm5 = vcmask (!%p363_p2), 138240   ;;  %vm642_vm8 = vcmask (!%p363_p2), 121856   ;;  %vm738_vm11 = vcmask (!%p363_p2), 7168  }
   0xc   : > { %s9273_s15 = smov (!%p363_p2), 112   ;;  %s9269_s16 = smov (!%p363_p2), 1   ;;  %vm9265_vm12 = vcmask (!%p363_p2), 1039360   ;;  %vm9264_vm13 = vcmask (!%p363_p2), 916480   ;;  %vm9263_vm14 = vcmask (!%p363_p2), 924672   ;;  %vm9262_vm15 = vcmask (!%p363_p2), 908288  }
   0xd   : > { %s9266_s17 = smov (!%p363_p2), 120   ;;  %s7920_s18 = smov (!%p363_p2), 116   ;;  %v422_v18 = vadd.s32 (!%p363_p2), 128, %v8096_v16  ;;  %v423_v27 = vand.u32 (!%p363_p2), 15, %v8096_v16  ;;  %v6675_v36 = vld [vmem:[%s9235_s8] sm:$0x3] (!%p363_p2) }
   0xe   : > { %s9260_s19 = smov (!%p363_p2), 127   ;;  %s7922_s20 = smov (!%p363_p2), 108  }
   0xf   : > { %s9244_s24 = smov (!%p363_p2), 113   ;;  %s9259_s25 = smov (!%p363_p2), 104   ;;  %v424_v21 = vand.u32 (!%p363_p2), 15, %v422_v18  ;;  %vm8114_vm7 = vcmp.gt.s32.totalorder (!%p363_p2), %v423_v27, 0  ;;  %vm8121_vm9 = vcmp.lt.s32.totalorder (!%p363_p2), %v423_v27, 15 }
  0x10   : > { %s9376_s22 = smov (!%p404_p3, %s6823_s22), 1  ;;  %v438_v3 = vld [vmem:[#allocation2] sm:$0xf]  ;;  %s9271_s28 = smov 96  }
  0x11   : > { %s7027_s23 = sshll.u32 %s9376_s22, 3  ;;  %465 = vrot.lane.b32.xlu1 %v438_v3, %s9248_s27  ;;  %v8029_v4 = vld [vmem:[%s9282_s1] sm:$0xff]  ;;  %v907_v7 = vld [vmem:[#allocation2 + $0x18] sm:$0xf]  ;;  %s9283_s2 = sld [smem:[#allocation5_spill]]  ;;  %vm8103_vm6 = vcmp.gt.s32.totalorder %v424_v21, 0 }
  0x12   : > { %s408_s26 = scalar_lea.vmem %s9281_s0, %s7027_s23  ;;  %s7923_s23 = smov 100   ;;  %v8088_v13 = vld [vmem:[#allocation2] sm:$0xff]  ;;  %vm8127_vm10 = vcmp.lt.s32.totalorder %v424_v21, 15 }
  0x13   : > { %v432_v1 = vld [vmem:[%s408_s26] sm:$0xff]  ;;  %s9242_s26 = smov 111   ;;  %s9254_s29 = smov 72  }
  0x14   : > { %436 = vst [vmem:[#allocation2 + $0x8] sm:$0xf] %v432_v1  ;;  %v434_v2 = vcombine.high %v432_v1, %v432_v1  ;;  %s9311_s0 = smov 1  }
  0x15   : > { %463 = vrot.lane.b32.xlu1 %v8029_v4, %s7914_s30  ;;  %s9252_s30 = smov 80  }
  0x16   : > { %437 = vst [vmem:[#allocation2 + $0x10] sm:$0xf] %v434_v2 }
  0x17   : > { %v8080_v10 = vld [vmem:[%s9283_s2] sm:$0xff] }
  0x1b   : > { %v8032_v5 = vld [vmem:[#allocation2 + $0x8] sm:$0xf] }
  0x1c   : > { %467 = vrot.lane.b32.xlu0 %v8032_v5, %s9248_s27  ;;  %v905_v9 = vld [vmem:[#allocation2 + $0x8] sm:$0xf] }
  0x1d   : > { %v8036_v6 = vld [vmem:[#allocation2 + $0x10] sm:$0xf] }
  0x1e   : > { %452 = vrot.lane.b32.xlu1 %v8036_v6, %s9246_s13  ;;  %v906_v8 = vld [vmem:[#allocation2 + $0x10] sm:$0xf] }
  0x20   : > { %469 = vrot.lane.b32.xlu0 %v8036_v6, %s9248_s27 }
  0x22   : > { %638 = vrot.lane.b32.xlu1 %v8032_v5, %s9240_s14 }
  0x24   : > { %450 = vrot.lane.b32.xlu0 %v8032_v5, %s9246_s13 }
  0x26   : > { %636 = vrot.lane.b32.xlu1 %v438_v3, %s9240_s14 }
  0x28   : > { %448 = vrot.lane.b32.xlu0 %v438_v3, %s9246_s13 }
  0x2a   : > { %745 = vrot.lane.b32.xlu1 %v8029_v4, %s9273_s15 }
  0x2c   : > { %640 = vrot.lane.b32.xlu0 %v8036_v6, %s9240_s14 }
  0x2e   : > { %736 = vrot.lane.b32.xlu1 %v8036_v6, %s9269_s16 }
  0x30   : > { %649 = vrot.lane.b32.xlu0 %v8029_v4, %s9266_s17 }
  0x32   : > { %824 = vrot.lane.b32.xlu1 %v8029_v4, %s7920_s18  ;;  %s9309_s18 = smov 15  }
  0x34   : > { %734 = vrot.lane.b32.xlu0 %v8032_v5, %s9269_s16 }
  0x36   : > { %915 = vrot.lane.b32.xlu1 %v907_v7, %s9260_s19 }
  0x38   : > { %732 = vrot.lane.b32.xlu0 %v438_v3, %s9269_s16 }
  0x3a   : > { %924 = vrot.lane.b32.xlu1 %v8029_v4, %s7922_s20  ;;  %s9292_s20 = smov 88  }
  0x3c   : > { %913 = vrot.lane.b32.xlu0 %v906_v8, %s9260_s19 }
  0x3e   : > { %1026 = vrot.lane.b32.xlu1 %v907_v7, %s9273_s15 }
  0x40   : > { %911 = vrot.lane.b32.xlu0 %v905_v9, %s9260_s19 }
  0x42   : > { %1020 = vrot.lane.b32.xlu1 %v8029_v4, %s7923_s23  ;;  %s9256_s23 = smov 88  }
  0x44   : > { %1024 = vrot.lane.b32.xlu0 %v906_v8, %s9273_s15 }
  0x46   : > { %1011 = vrot.lane.b32.xlu1 %v907_v7, %s9244_s24 }
  0x48   : > { %1022 = vrot.lane.b32.xlu0 %v905_v9, %s9273_s15 }
  0x4a   : > { %1108 = vrot.lane.b32.xlu1 %v8029_v4, %s9259_s25 }
  0x4c   : > { %1009 = vrot.lane.b32.xlu0 %v906_v8, %s9244_s24 }
  0x4e   : > { %1193 = vrot.lane.b32.xlu1 %v907_v7, %s9242_s26 }
  0x50   : > { %1007 = vrot.lane.b32.xlu0 %v905_v9, %s9244_s24 }
  0x52   : > { %1202 = vrot.lane.b32.xlu1 %v8029_v4, %s9271_s28 }
  0x54   : > { %1191 = vrot.lane.b32.xlu0 %v906_v8, %s9242_s26 }
  0x56   : > { %1496 = vrot.lane.b32.xlu1 %v8080_v10, %s9273_s15 }
  0x58   : > { %1189 = vrot.lane.b32.xlu0 %v905_v9, %s9242_s26 }
  0x5c   : > { %1290 = vperm.xlu0 %7589, %v1285_v12  }
  0x60   : > { %1484 = vrot.lane.b32.xlu0 %v8088_v13, %s9240_s14 }
  0x64   : > { %1585 = vrot.lane.b32.xlu0 %v8080_v10, %s9271_s28 }
  0x68   : > { %1660 = vrot.lane.b32.xlu0 %v8080_v10, %s9259_s25 }
  0x83   : > { %v466_v15 = vpop.permute.xlu1 %465 }
  0x87   : > { %v464_v17 = vpop.permute.xlu1 %463 }
  0x8e   : > { %v468_v19 = vpop.permute.xlu0 %467 }
  0x8f   : > { %v472_v24 = vsel %vm471_vm2, %v466_v15, %v468_v19 }
  0x90   : > { %v453_v20 = vpop.permute.xlu1 %452 }
  0x92   : > { %v470_v22 = vpop.permute.xlu0 %469 }
  0x93   : > { %v473_v23 = vsel %vm471_vm2, %v468_v19, %v470_v22 }
  0x94   : > { %6832 = vmatprep.subr.msk.mxu0 %vm477_vm3, %v473_v23  ;;  %v639_v25 = vpop.permute.xlu1 %638  ;;  %v8195_v23 = vld [vmem:[#allocation2 + $0x18] sm:$0xff] }
  0x95   : > { %6833 = vmatpush1.msk.msra.mxu0 %vm477_vm3, %v472_v24  ;;  %1745 = vrot.lane.b32.xlu0 %v8195_v23, %s9260_s19 }
  0x96   : > { %6834 = vmatmul.mubr.msk.f32.vlgmr.msra.gmra.mrb[0].mxu0 %vm474_vm4, %v464_v17  ;;  %v451_v28 = vpop.permute.xlu0 %450 }
  0x97   : > { %v456_v29 = vsel %vm454_vm5, %v451_v28, %v453_v20  ;;  %625 = vmatprep.mubr.f32.mxu0 %v7912_v0 }
  0x98   : > { %v460_v30 = vsel %vm8103_vm6, %v456_v29, 0.0  ;;  %v637_v31 = vpop.permute.xlu1 %636 }
  0x99   : > { %6835 = vmatprep.subr.msk.mxu0 %vm477_vm3, %v460_v30  ;;  %v643_v37 = vsel %vm642_vm8, %v637_v31, %v639_v25  ;;  %1753 = vrot.lane.b32.xlu0 %v8080_v10, %s9256_s23  ;;  %s7935_s23 = smov 7  }
  0x9a   : > { %v449_v33 = vpop.permute.xlu0 %448  ;;  %v647_v41 = vsel %vm8121_vm9, %v643_v37, 0.0 }
  0x9b   : > { %v455_v34 = vsel %vm454_vm5, %v449_v33, %v451_v28 }
  0x9c   : > { %v459_v35 = vsel %vm8114_vm7, %v455_v34, 0.0  ;;  %v746_v38 = vpop.permute.xlu1 %745 }
  0x9d   : > { %6836 = vmatpush1.msk.msra.mxu0 %vm477_vm3, %v459_v35  ;;  %v2091_v35 = vld [vmem:[%s9236_s9 + $0x8] sm:$0xff] }
  0x9e   : > { %6837 = vmatmul.mubr.msk.f32.vlgmr.msra.gmra.mrb[0].mxu0 %vm474_vm4, %v8029_v4  ;;  %v641_v40 = vpop.permute.xlu0 %640 }
  0x9f   : > { %v644_v42 = vsel %vm642_vm8, %v639_v25, %v641_v40  ;;  %723 = vmatprep.mubr.f32.mxu0 %v7912_v0 }
  0xa0   : > { %v648_v43 = vsel %vm8127_vm10, %v644_v42, 0.0  ;;  %v737_v44 = vpop.permute.xlu1 %736 }
  0xa1   : > { %6838 = vmatprep.subr.msk.mxu0 %vm477_vm3, %v648_v43 }
  0xa2   : > { %6839 = vmatpush1.msk.msra.mxu0 %vm477_vm3, %v647_v41  ;;  %v650_v45 = vpop.permute.xlu0 %649 }
  0xa3   : > { %6841 = vmatprep.subr.msk.mxu0 %vm477_vm3, %v8036_v6 }
  0xa4   : > { %v825_v46 = vpop.permute.xlu1 %824 }
  0xa6   : > { %6840 = vmatmul.mubr.msk.f32.vlgmr.msra.gmra.mrb[0].mxu0 %vm474_vm4, %v650_v45  ;;  %v735_v47 = vpop.permute.xlu0 %734 }
  0xa7   : > { %v740_v48 = vsel %vm738_vm11, %v735_v47, %v737_v44  ;;  %6842 = vmatpush1.msk.msra.mxu0 %vm477_vm3, %v8032_v5  ;;  %817 = vmatprep.mubr.f32.mxu0 %v7912_v0 }
  0xa8   : > { %v744_v49 = vsel %vm8103_vm6, %v740_v48, 0.0  ;;  %v916_v50 = vpop.permute.xlu1 %915 }
  0xa9   : > { %6844 = vmatprep.subr.msk.mxu0 %vm477_vm3, %v744_v49 }
  0xaa   : > { %v733_v51 = vpop.permute.xlu0 %732 }
  0xab   : > { %v739_v52 = vsel %vm738_vm11, %v733_v51, %v735_v47 }
  0xac   : > { %v743_v53 = vsel %vm8114_vm7, %v739_v52, 0.0  ;;  %v925_v54 = vpop.permute.xlu1 %924 }
  0xae   : > { %6843 = vmatmul.mubr.msk.f32.vlgmr.msra.gmra.mrb[0].mxu0 %vm474_vm4, %v746_v38  ;;  %v914_v55 = vpop.permute.xlu0 %913 }
  0xaf   : > { %6845 = vmatpush1.msk.msra.mxu0 %vm477_vm3, %v743_v53  ;;  %v919_v56 = vsel %vm9265_vm12, %v914_v55, %v916_v50  ;;  %898 = vmatprep.mubr.f32.mxu0 %v7912_v0 }
  0xb0   : > { %v923_v57 = vsel %vm8127_vm10, %v919_v56, 0.0  ;;  %v1027_v58 = vpop.permute.xlu1 %1026 }
  0xb1   : > { %6847 = vmatprep.subr.msk.mxu0 %vm477_vm3, %v923_v57 }
  0xb2   : > { %v912_v59 = vpop.permute.xlu0 %911 }
  0xb3   : > { %v918_v60 = vsel %vm9265_vm12, %v912_v59, %v914_v55 }
  0xb4   : > { %v922_v61 = vsel %vm8121_vm9, %v918_v60, 0.0  ;;  %v1021_v62 = vpop.permute.xlu1 %1020 }
  0xb6   : > { %6846 = vmatmul.mubr.msk.f32.vlgmr.msra.gmra.mrb[0].mxu0 %vm474_vm4, %v825_v46  ;;  %v1025_v63 = vpop.permute.xlu0 %1024 }
  0xb7   : > { %6848 = vmatpush1.msk.msra.mxu0 %vm477_vm3, %v922_v61  ;;  %v1030_v1 = vsel %vm9264_vm13, %v1025_v63, %v1027_v58  ;;  %998 = vmatprep.mubr.f32.mxu0 %v7912_v0 }
  0xb8   : > { %6850 = vmatprep.subr.msk.mxu0 %vm477_vm3, %v1030_v1  ;;  %v1012_v2 = vpop.permute.xlu1 %1011 }
  0xba   : > { %v1023_v3 = vpop.permute.xlu0 %1022 }
  0xbb   : > { %v1029_v4 = vsel %vm9264_vm13, %v1023_v3, %v1025_v63 }
  0xbc   : > { %v1109_v6 = vpop.permute.xlu1 %1108 }
  0xbe   : > { %6849 = vmatmul.mubr.msk.f32.vlgmr.msra.gmra.mrb[0].mxu0 %vm474_vm4, %v925_v54  ;;  %v1010_v5 = vpop.permute.xlu0 %1009 }
  0xbf   : > { %6851 = vmatpush1.msk.msra.mxu0 %vm477_vm3, %v1029_v4  ;;  %v1015_v7 = vsel %vm9263_vm14, %v1010_v5, %v1012_v2  ;;  %1101 = vmatprep.mubr.f32.mxu0 %v7912_v0 }
  0xc0   : > { %v1019_v8 = vsel %vm8103_vm6, %v1015_v7, 0.0  ;;  %v1194_v14 = vpop.permute.xlu1 %1193 }
  0xc1   : > { %6853 = vmatprep.subr.msk.mxu0 %vm477_vm3, %v1019_v8 }
  0xc2   : > { %v1008_v9 = vpop.permute.xlu0 %1007 }
  0xc3   : > { %v1014_v11 = vsel %vm9263_vm14, %v1008_v9, %v1010_v5 }
  0xc4   : > { %v1018_v12 = vsel %vm8114_vm7, %v1014_v11, 0.0  ;;  %v1203_v22 = vpop.permute.xlu1 %1202 }
  0xc6   : > { %6852 = vmatmul.mubr.msk.f32.vlgmr.msra.gmra.mrb[0].mxu0 %vm474_vm4, %v1021_v62  ;;  %v1192_v15 = vpop.permute.xlu0 %1191 }
  0xc7   : > { %6854 = vmatpush1.msk.msra.mxu0 %vm477_vm3, %v1018_v12  ;;  %v1197_v17 = vsel %vm9262_vm15, %v1192_v15, %v1194_v14  ;;  %1182 = vmatprep.mubr.f32.mxu0 %v7912_v0 }
  0xc8   : > { %v1201_v18 = vsel %vm8127_vm10, %v1197_v17, 0.0  ;;  %v1497_v42 = vpop.permute.xlu1 %1496 }
  0xc9   : > { %6856 = vmatprep.subr.msk.mxu0 %vm477_vm3, %v1201_v18 }
  0xca   : > { %v1190_v19 = vpop.permute.xlu0 %1189 }
  0xcb   : > { %v1196_v20 = vsel %vm9262_vm15, %v1190_v19, %v1192_v15 }
  0xcc   : > { %v1200_v21 = vsel %vm8121_vm9, %v1196_v20, 0.0 }
  0xce   : > { %6855 = vmatmul.mubr.msk.f32.vlgmr.msra.gmra.mrb[0].mxu0 %vm474_vm4, %v1109_v6 }
  0xcf   : > { %6857 = vmatpush1.msk.msra.mxu0 %vm477_vm3, %v1200_v21  ;;  %1276 = vmatprep.mubr.f32.mxu0 %v7912_v0  ;;  %vm9277_vm3 = vcmask 64512  }
  0xd6   : > { %6858 = vmatmul.mubr.msk.f32.vlgmr.msra.gmra.mrb[0].mxu0 %vm474_vm4, %v1203_v22  ;;  %vm2250_vm4 = vcmask 654848  }
  0xd7   : > { %1404 = vmatprep.mubr.f32.mxu0 %v7912_v0  ;;  %2252 = vst.msk [vmem:[#allocation2 + $0x28] sm:$0xff] %vm2250_vm4, %v7912_v0 }
  0xdb   : > { %v1291_v24 = vpop.permute.xlu0 %1290 }
  0xdf   : > { %v1485_v37 = vpop.permute.xlu0 %1484 }
  0xe3   : > { %v1586_v38 = vpop.permute.xlu0 %1585 }
  0xe7   : > { %v1661_v40 = vpop.permute.xlu0 %1660 }
 0x107   : > { %v1746_v41 = vpop.permute.xlu0 %1745 }
 0x10b   : > { %v1754_v43 = vpop.permute.xlu0 %1753 }
 0x1a9   : > { %v1278_v25 = vpop.f32.mrb[0].mxu0 }
 0x1aa   : > { %v7427_v27 = vadd.f32 %v1291_v24, %v1278_v25  ;;  %v1280_v28 = vpop.f32.mrb[1].mxu0 }
 0x1ab   : > { %v7428_v29 = vadd.f32 %v1291_v24, %v1280_v28 }
 0x1ac   : > { %vm1297_vm0 = vcmp.ge.f32.partialorder %v7427_v27, 0.0  ;;  %v1299_v30 = vmul.f32 0.01, %v7427_v27 }
 0x1ad   : > { %vm1298_vm1 = vcmp.ge.f32.partialorder %v7428_v29, 0.0  ;;  %v1300_v31 = vmul.f32 0.01, %v7428_v29 }
 0x1ae   : > { %v1301_v33 = vsel %vm1297_vm0, %v7427_v27, %v1299_v30 }
 0x1af   : > { %v1302_v34 = vsel %vm1298_vm1, %v7428_v29, %v1300_v31  ;;  %1486 = vrot.lane.b32.xlu1 %v1301_v33, %s9240_s14 }
 0x1b0   : > { %1577 = vrot.lane.b32.xlu0 %v1302_v34, %s9269_s16 }
 0x1b3   : > { %1575 = vrot.lane.b32.xlu1 %v1301_v33, %s9269_s16 }
 0x1b4   : > { %1848 = vrot.lane.b32.xlu0 %v8195_v23, %s9273_s15 }
 0x1b7   : > { %1488 = vrot.lane.b32.xlu1 %v1302_v34, %s9240_s14  ;;  %s9250_s14 = smov 64  }
 0x1b8   : > { %1842 = vrot.lane.b32.xlu0 %v8080_v10, %s9254_s29  ;;  %s7937_s29 = smov 119  }
 0x1bb   : > { %1573 = vrot.lane.b32.xlu1 %v8088_v13, %s9269_s16 }
 0x1bc   : > { %1834 = vrot.lane.b32.xlu0 %v8195_v23, %s9244_s24 }
 0x1bf   : > { %1741 = vrot.lane.b32.xlu1 %v1301_v33, %s9260_s19 }
 0x1c0   : > { %1830 = vrot.lane.b32.xlu0 %v1301_v33, %s9244_s24 }
 0x1c3   : > { %1844 = vrot.lane.b32.xlu1 %v1301_v33, %s9273_s15 }
 0x1c4   : > { %1927 = vrot.lane.b32.xlu0 %v8080_v10, %s9252_s30  ;;  %s7934_s30 = smov 9  }
 0x1c7   : > { %1329 = vrot.lane.b32.xlu1 %v1301_v33, %s9248_s27 }
 0x1c8   : > { %1331 = vrot.lane.b32.xlu0 %v1302_v34, %s9248_s27 }
 0x1cb   : > { %1327 = vrot.lane.b32.xlu1 %v8088_v13, %s9248_s27  ;;  %s9293_s27 = smov 72  }
 0x1cc   : > { %2006 = vrot.lane.b32.xlu0 %v8195_v23, %s9242_s26 }
 0x1cf   : > { %1743 = vrot.lane.b32.xlu1 %v1302_v34, %s9260_s19 }
 0x1d0   : > { %1315 = vrot.lane.b32.xlu0 %v1302_v34, %s9246_s13 }
 0x1d3   : > { %1325 = vrot.lane.b32.xlu1 %v8080_v10, %s9266_s17 }
 0x1d4   : > { %2002 = vrot.lane.b32.xlu0 %v1301_v33, %s9242_s26 }
 0x1d7   : > { %1846 = vrot.lane.b32.xlu1 %v1302_v34, %s9273_s15 }
 0x1d8   : > { %2096 = vperm.xlu0 %7589, %v2091_v35  }
 0x1db   : > { %1313 = vrot.lane.b32.xlu1 %v1301_v33, %s9246_s13 }
 0x1df   : > { %1832 = vrot.lane.b32.xlu1 %v1302_v34, %s9244_s24  ;;  %s7933_s24 = smov 8  }
 0x1e3   : > { %1311 = vrot.lane.b32.xlu1 %v8088_v13, %s9246_s13  ;;  %s9258_s13 = smov 121  }
 0x1e7   : > { %2004 = vrot.lane.b32.xlu1 %v1302_v34, %s9242_s26  ;;  %s9294_s26 = smov 80  }
 0x1eb   : > { %2014 = vrot.lane.b32.xlu1 %v8080_v10, %s9250_s14  ;;  %s9295_s14 = smov 64  }
 0x221   : > { %v1487_v44 = vpop.permute.xlu1 %1486 }
 0x222   : > { %v1578_v45 = vpop.permute.xlu0 %1577  ;;  %v1490_v51 = vsel %vm642_vm8, %v1485_v37, %v1487_v44 }
 0x225   : > { %v1576_v46 = vpop.permute.xlu1 %1575 }
 0x226   : > { %v1849_v47 = vpop.permute.xlu0 %1848  ;;  %v1580_v54 = vsel %vm738_vm11, %v1576_v46, %v1578_v45  ;;  %v2149_v45 = vld [vmem:[%s9238_s11 + $0x8] sm:$0xff] }
 0x229   : > { %v1489_v48 = vpop.permute.xlu1 %1488 }
 0x22a   : > { %v1843_v49 = vpop.permute.xlu0 %1842  ;;  %v1491_v50 = vsel %vm642_vm8, %v1487_v44, %v1489_v48 }
 0x22b   : > { %6863 = vmatprep.subr.msk.mxu1 %vm8127_vm10, %v1491_v50 }
 0x22c   : > { %6864 = vmatpush1.msk.msra.mxu1 %vm8121_vm9, %v1490_v51  ;;  %v2150_v51 = vld [vmem:[%s9238_s11 + $0x10] sm:$0xff] }
 0x22d   : > { %v1574_v52 = vpop.permute.xlu1 %1573  ;;  %6865 = vmatmul.mubr.msk.f32.vlgmr.msra.gmra.mrb[0].mxu1 %vm9277_vm3, %v1497_v42  ;;  %1589 = vmatprep.subr.mxu1 %v1302_v34  ;;  %v2148_v42 = vld [vmem:[%s9238_s11] sm:$0xff] }
 0x22e   : > { %1590 = vmatpush1.msra.mxu1 %v1301_v33  ;;  %v1835_v53 = vpop.permute.xlu0 %1834  ;;  %1653 = vmatprep.mubr.f32.mxu1 %v7912_v0  ;;  %v1579_v57 = vsel %vm738_vm11, %v1574_v52, %v1576_v46  ;;  %v2166_v46 = vld [vmem:[%s9238_s11 + $0x90] sm:$0xff]  ;;  %v2151_v52 = vld [vmem:[%s9238_s11 + $0x18] sm:$0xff] }
 0x22f   : > { %6867 = vmatprep.subr.msk.mxu1 %vm8103_vm6, %v1580_v54 }
 0x231   : > { %v1742_v55 = vpop.permute.xlu1 %1741 }
 0x232   : > { %v1831_v56 = vpop.permute.xlu0 %1830 }
 0x235   : > { %v1845_v58 = vpop.permute.xlu1 %1844  ;;  %6866 = vmatmul.mubr.msk.f32.vlgmr.msra.gmra.mrb[0].mxu1 %vm9277_vm3, %v1586_v38 }
 0x236   : > { %6868 = vmatpush1.msk.msra.mxu1 %vm8114_vm7, %v1579_v57  ;;  %v1928_v59 = vpop.permute.xlu0 %1927  ;;  %1728 = vmatprep.mubr.f32.mxu1 %v7912_v0  ;;  %v7241_v57 = vpack.c.bf16 %v2151_v52, %v2150_v51 }
 0x239   : > { %v1330_v60 = vpop.permute.xlu1 %1329 }
 0x23a   : > { %v1332_v61 = vpop.permute.xlu0 %1331 }
 0x23b   : > { %v1334_v62 = vsel %vm471_vm2, %v1330_v60, %v1332_v61  ;;  %v2170_v61 = vld [vmem:[%s9238_s11 + $0xb0] sm:$0xff] }
 0x23c   : > { %1340 = vmatprep.subr.mxu0 %v1334_v62  ;;  %v2171_v62 = vld [vmem:[%s9238_s11 + $0xb8] sm:$0xff] }
 0x23d   : > { %v1328_v63 = vpop.permute.xlu1 %1327  ;;  %6869 = vmatmul.mubr.msk.f32.vlgmr.msra.gmra.mrb[0].mxu1 %vm9277_vm3, %v1661_v40  ;;  %v2164_v40 = vld [vmem:[%s9238_s11 + $0x80] sm:$0xff] }
 0x23e   : > { %v1333_v1 = vsel %vm471_vm2, %v1328_v63, %v1330_v60  ;;  %1821 = vmatprep.mubr.f32.mxu1 %v7912_v0  ;;  %v2007_v6 = vpop.permute.xlu0 %2006  ;;  %v2153_v60 = vld [vmem:[%s9238_s11 + $0x28] sm:$0xff] }
 0x23f   : > { %1341 = vmatpush1.msra.mxu0 %v1333_v1  ;;  %v7247_v1 = vpack.c.bf16 %v2171_v62, %v2170_v61  ;;  %v2270_v62 = vld [vmem:[%s9230_s3 + $0x8] sm:$0xff] }
 0x241   : > { %v1744_v2 = vpop.permute.xlu1 %1743 }
 0x242   : > { %v1747_v3 = vsel %vm9265_vm12, %v1742_v55, %v1744_v2  ;;  %v1748_v4 = vsel %vm9265_vm12, %v1744_v2, %v1746_v41  ;;  %v1316_v11 = vpop.permute.xlu0 %1315  ;;  %v2165_v41 = vld [vmem:[%s9238_s11 + $0x88] sm:$0xff]  ;;  %v2154_v2 = vld [vmem:[%s9238_s11 + $0x30] sm:$0xff] }
 0x243   : > { %6870 = vmatprep.subr.msk.mxu1 %vm8127_vm10, %v1748_v4  ;;  %v7235_v44 = vpack.c.bf16 %v2165_v41, %v2164_v40  ;;  %v2169_v55 = vld [vmem:[%s9238_s11 + $0xa8] sm:$0xff]  ;;  %v2172_v4 = vld [vmem:[%s9238_s11 + $0xc0] sm:$0xff] }
 0x244   : > { %6871 = vmatpush1.msk.msra.mxu1 %vm8121_vm9, %v1747_v3  ;;  %v2155_v3 = vld [vmem:[%s9238_s11 + $0x38] sm:$0xff] }
 0x245   : > { %v1326_v5 = vpop.permute.xlu1 %1325  ;;  %6872 = vmatmul.mubr.msk.f32.vlgmr.msra.gmra.mrb[0].mxu1 %vm9277_vm3, %v1754_v43 }
 0x246   : > { %6859 = vmatmul.mubr.msk.f32.vlgmr.msra.gmra.mrb[2].mxu0 %vm9277_vm3, %v1326_v5  ;;  %1920 = vmatprep.mubr.f32.mxu1 %v7912_v0  ;;  %v2003_v21 = vpop.permute.xlu0 %2002  ;;  %v2173_v5 = vld [vmem:[%s9238_s11 + $0xc8] sm:$0xff] }
 0x247   : > { %1477 = vmatprep.mubr.f32.mxu0 %v7912_v0 }
 0x249   : > { %v1847_v7 = vpop.permute.xlu1 %1846 }
 0x24a   : > { %v1851_v8 = vsel %vm9264_vm13, %v1847_v7, %v1849_v47  ;;  %v1850_v9 = vsel %vm9264_vm13, %v1845_v58, %v1847_v7  ;;  %v2167_v47 = vld [vmem:[%s9238_s11 + $0x98] sm:$0xff]  ;;  %v7251_v7 = vpack.c.bf16 %v2173_v5, %v2172_v4 }
 0x24b   : > { %1856 = vmatprep.subr.mxu1 %v1851_v8  ;;  %v7239_v50 = vpack.c.bf16 %v2167_v47, %v2166_v46  ;;  %v2156_v8 = vld [vmem:[%s9238_s11 + $0x40] sm:$0xff] }
 0x24c   : > { %1857 = vmatpush1.msra.mxu1 %v1850_v9  ;;  %v2157_v9 = vld [vmem:[%s9238_s11 + $0x48] sm:$0xff] }
 0x24d   : > { %v1314_v12 = vpop.permute.xlu1 %1313  ;;  %6873 = vmatmul.mubr.msk.f32.vlgmr.msra.gmra.mrb[0].mxu1 %vm9277_vm3, %v1843_v49  ;;  %v7237_v49 = vpack.c.bf16 %v2149_v45, %v2148_v42 }
 0x24e   : > { %v1318_v14 = vsel %vm454_vm5, %v1314_v12, %v1316_v11  ;;  %1995 = vmatprep.mubr.f32.mxu1 %v7912_v0  ;;  %v2174_v11 = vld [vmem:[%s9238_s11 + $0xd0] sm:$0xff] }
 0x24f   : > { %6860 = vmatprep.subr.msk.mxu0 %vm8103_vm6, %v1318_v14  ;;  %v7253_v14 = vpack.c.bf16 %v2157_v9, %v2156_v8 }
 0x251   : > { %v1833_v15 = vpop.permute.xlu1 %1832 }
 0x252   : > { %v1836_v17 = vsel %vm9263_vm14, %v1831_v56, %v1833_v15  ;;  %v1837_v18 = vsel %vm9263_vm14, %v1833_v15, %v1835_v53  ;;  %v2168_v53 = vld [vmem:[%s9238_s11 + $0xa0] sm:$0xff] }
 0x253   : > { %6874 = vmatprep.subr.msk.mxu1 %vm8103_vm6, %v1837_v18  ;;  %v7243_v58 = vpack.c.bf16 %v2169_v55, %v2168_v53  ;;  %v2159_v18 = vld [vmem:[%s9238_s11 + $0x58] sm:$0xff] }
 0x254   : > { %6875 = vmatpush1.msk.msra.mxu1 %vm8114_vm7, %v1836_v17  ;;  %v2158_v17 = vld [vmem:[%s9238_s11 + $0x50] sm:$0xff] }
 0x255   : > { %v1312_v19 = vpop.permute.xlu1 %1311  ;;  %6876 = vmatmul.mubr.msk.f32.vlgmr.msra.gmra.mrb[0].mxu1 %vm9277_vm3, %v1928_v59  ;;  %v2152_v59 = vld [vmem:[%s9238_s11 + $0x20] sm:$0xff] }
 0x256   : > { %v1317_v20 = vsel %vm454_vm5, %v1312_v19, %v1314_v12  ;;  %2082 = vmatprep.mubr.f32.mxu1 %v7912_v0  ;;  %v7245_v63 = vpack.c.bf16 %v2153_v60, %v2152_v59  ;;  %v2175_v12 = vld [vmem:[%s9238_s11 + $0xd8] sm:$0xff]  ;;  %v7257_v19 = vpack.c.bf16 %v2159_v18, %v2158_v17 }
 0x257   : > { %6861 = vmatpush1.msk.msra.mxu0 %vm8114_vm7, %v1317_v20  ;;  %v2097_v33 = vpop.permute.xlu0 %2096  ;;  %v7255_v15 = vpack.c.bf16 %v2175_v12, %v2174_v11  ;;  %v2176_v20 = vld [vmem:[%s9238_s11 + $0xe0] sm:$0xff] }
 0x258   : > { %6862 = vmatmul.mubr.msk.f32.vlgmr.msra.gmra.mrb[2].mxu0 %vm9277_vm3, %v8080_v10  ;;  %7236 = vmatprep.subr.bf16.mxu0 %v7235_v44 }
 0x259   : > { %v2005_v22 = vpop.permute.xlu1 %2004  ;;  %7238 = vmatpush3.bf16.msra.mxu0 %v7237_v49 }
 0x25a   : > { %v2008_v24 = vsel %vm9262_vm15, %v2003_v21, %v2005_v22  ;;  %v2009_v25 = vsel %vm9262_vm15, %v2005_v22, %v2007_v6  ;;  %7240 = vmatprep.subr.bf16.mxu0 %v7239_v50  ;;  %v7249_v6 = vpack.c.bf16 %v2155_v3, %v2154_v2  ;;  %v2177_v21 = vld [vmem:[%s9238_s11 + $0xe8] sm:$0xff]  ;;  %vm2447_vm15 = vcmask 56320  }
 0x25b   : > { %6877 = vmatprep.subr.msk.mxu1 %vm8127_vm10, %v2009_v25  ;;  %v7259_v22 = vpack.c.bf16 %v2177_v21, %v2176_v20  ;;  %v2161_v25 = vld [vmem:[%s9238_s11 + $0x68] sm:$0xff] }
 0x25c   : > { %6878 = vmatpush1.msk.msra.mxu1 %vm8121_vm9, %v2008_v24  ;;  %v2160_v24 = vld [vmem:[%s9238_s11 + $0x60] sm:$0xff] }
 0x25d   : > { %v2015_v27 = vpop.permute.xlu1 %2014  ;;  %7242 = vmatpush3.bf16.msra.mxu0 %v7241_v57 }
 0x25e   : > { %6879 = vmatmul.mubr.msk.f32.vlgmr.msra.gmra.mrb[0].mxu1 %vm9277_vm3, %v2015_v27  ;;  %7244 = vmatprep.subr.bf16.mxu0 %v7243_v58  ;;  %v7261_v27 = vpack.c.bf16 %v2161_v25, %v2160_v24 }
 0x261   : > { %7246 = vmatpush3.bf16.msra.mxu0 %v7245_v63  ;;  %v3061_v63 = vld [vmem:[%s9236_s9 + $0x18] sm:$0xff] }
 0x262   : > { %7248 = vmatprep.subr.bf16.mxu0 %v7247_v1  ;;  %v3060_v1 = vld [vmem:[%s9236_s9 + $0x10] sm:$0xff] }
 0x265   : > { %7250 = vmatpush3.bf16.msra.mxu0 %v7249_v6  ;;  %v429_v6 = vand.u32 7, %v8096_v16 }
 0x266   : > { %7252 = vmatprep.subr.bf16.mxu0 %v7251_v7 }
 0x267   : > { %vm8487_vm14 = vcmp.lt.s32.totalorder %v429_v6, 7 }
 0x269   : > { %7254 = vmatpush3.bf16.msra.mxu0 %v7253_v14 }
 0x26a   : > { %7256 = vmatprep.subr.bf16.mxu0 %v7255_v15 }
 0x26d   : > { %7258 = vmatpush3.bf16.msra.mxu0 %v7257_v19 }
 0x26e   : > { %7260 = vmatprep.subr.bf16.mxu0 %v7259_v22 }
 0x271   : > { %7262 = vmatpush3.bf16.msra.mxu0 %v7261_v27 }
 0x32b   : > { %v1479_v10 = vpop.f32.mrb[2].mxu0 }
 0x32c   : > { %v1481_v28 = vpop.f32.mrb[3].mxu0 }
 0x331   : > { %v2084_v29 = vpop.f32.mrb[0].mxu1 }
 0x332   : > { %v7429_v30 = vadd.f32 %v2084_v29, %v1479_v10  ;;  %v2086_v31 = vpop.f32.mrb[1].mxu1  ;;  %v2178_v10 = vld [vmem:[%s9238_s11 + $0xf0] sm:$0xff] }
 0x333   : > { %v7431_v34 = vadd.f32 %v2086_v31, %v1481_v28  ;;  %v2179_v28 = vld [vmem:[%s9238_s11 + $0xf8] sm:$0xff] }
 0x334   : > { %v7430_v35 = vadd.f32 %v7429_v30, %v2097_v33  ;;  %v7263_v29 = vpack.c.bf16 %v2179_v28, %v2178_v10  ;;  %v2162_v30 = vld [vmem:[%s9238_s11 + $0x70] sm:$0xff]  ;;  %v2163_v31 = vld [vmem:[%s9238_s11 + $0x78] sm:$0xff] }
 0x335   : > { %v7432_v37 = vadd.f32 %v7431_v34, %v2097_v33  ;;  %v7265_v33 = vpack.c.bf16 %v2163_v31, %v2162_v30 }
 0x336   : > { %vm2103_vm0 = vcmp.ge.f32.partialorder %v7430_v35, 0.0  ;;  %v2105_v38 = vmul.f32 0.01, %v7430_v35  ;;  %7264 = vmatprep.subr.bf16.mxu0 %v7263_v29 }
 0x337   : > { %vm2104_vm1 = vcmp.ge.f32.partialorder %v7432_v37, 0.0  ;;  %v2106_v43 = vmul.f32 0.01, %v7432_v37  ;;  %7266 = vmatpush3.bf16.msra.mxu0 %v7265_v33 }
 0x338   : > { %v8317_v48 = vsel %vm2103_vm0, %v7430_v35, %v2105_v38  ;;  %vm2265_vm0 = vcmask 72704  }
 0x339   : > { %2109 = vst [vmem:[#allocation2 + $0x8] sm:$0xff] %v8317_v48  ;;  %v8329_v54 = vsel %vm2104_vm1, %v7432_v37, %v2106_v43  ;;  %2117 = vrot.lane.b32.xlu0 %v8317_v48, %s9260_s19  ;;  %vm8478_vm1 = vcmp.gt.s32.totalorder %v429_v6, 0 }
 0x33a   : > { %2251 = vst.msk [vmem:[#allocation2 + $0x8] sm:$0xff] %vm2250_vm4, %v7912_v0  ;;  %v7590_v56 = vpack.i.bf16 %v8195_v23, %v8329_v54  ;;  %4962 = vst [vmem:[#allocation2 + $0x30] sm:$0xff] %v8329_v54  ;;  %vm2253_vm4 = vcmask 523264  }
 0x33c   : > { %7591 = vrot.lane.b32.xlu1 %v7590_v56, %s9260_s19 }
 0x3ab   : > { %v2118_v38 = vpop.permute.xlu0 %2117 }
 0x3ae   : > { %v7592_v34 = vpop.permute.xlu1 %7591 }
 0x3af   : > { %v7594_v35 = vunpack.i.h.bf16 %v7592_v34  ;;  %v7593_v37 = vunpack.i.l.bf16 %v7592_v34 }
 0x3b1   : > { %v2132_v40 = vmax.f32 %v8195_v23, %v7594_v35  ;;  %v2123_v41 = vsel %vm9265_vm12, %v2118_v38, %v7593_v37  ;;  %v2124_v42 = vsel %vm9265_vm12, %v7593_v37, %v7594_v35  ;;  %v8420_v23 = vld [vmem:[%s9230_s3] sm:$0xff] }
 0x3b2   : > { %v2130_v43 = vmax.f32 %v8317_v48, %v2123_v41  ;;  %v2131_v44 = vmax.f32 %v8329_v54, %v2124_v42 }
 0x3b4   : > { %2136 = vrot.lane.b32.xlu0 %v2130_v43, %s9273_s15  ;;  %v7595_v45 = vpack.i.bf16 %v2132_v40, %v2131_v44 }
 0x3b6   : > { %7596 = vrot.lane.b32.xlu1 %v7595_v45, %s9273_s15 }
 0x3ba   : > { %2277 = vrot.lane.b32.xlu1 %v8088_v13, %s7933_s24 }
 0x3be   : > { %2273 = vrot.lane.b32.xlu1 %v8420_v23, %s9266_s17 }
 0x3c2   : > { %2261 = vrot.lane.b32.xlu1 %v8088_v13, %s7934_s30 }
 0x3c6   : > { %2443 = vrot.lane.b32.xlu1 %v8088_v13, %s7935_s23 }
 0x3ca   : > { %2451 = vrot.lane.b32.xlu1 %v8420_v23, %s9273_s15 }
 0x3ce   : > { %2543 = vrot.lane.b32.xlu1 %v8420_v23, %s9271_s28 }
 0x3d2   : > { %2536 = vrot.lane.b32.xlu1 %v8088_v13, %s9269_s16 }
 0x3d6   : > { %2626 = vrot.lane.b32.xlu1 %v8420_v23, %s9259_s25 }
 0x426   : > { %v2137_v50 = vpop.permute.xlu0 %2136 }
 0x428   : > { %v7597_v46 = vpop.permute.xlu1 %7596 }
 0x429   : > { %v7599_v47 = vunpack.i.h.bf16 %v7597_v46  ;;  %v7598_v49 = vunpack.i.l.bf16 %v7597_v46 }
 0x42b   : > { %v2142_v51 = vsel %vm9264_vm13, %v2137_v50, %v7598_v49  ;;  %v2143_v52 = vsel %vm9264_vm13, %v7598_v49, %v7599_v47 }
 0x42c   : > { %v2147_v53 = vmax.f32 %v2131_v44, %v2143_v52  ;;  %v2146_v55 = vmax.f32 %v2130_v43, %v2142_v51  ;;  %v2278_v56 = vpop.permute.xlu1 %2277  ;;  %v8531_v51 = vld [vmem:[#allocation2 + $0x20] sm:$0xff] }
 0x42e   : > { %2244 = vmatprep.mubr.f32.mxu0 %v2147_v53 }
 0x42f   : > { %2245 = vmatmul.mubr.f32.vlgmr.msra.gmra.mrb[4].mxu0 %v2146_v55 }
 0x430   : > { %v2274_v57 = vpop.permute.xlu1 %2273 }
 0x431   : > { %7129 = vmatprep.mubr.msk.f32.mxu1 %vm9277_vm3, %v2274_v57  ;;  %v8547_v57 = vld [vmem:[%s9231_s4 + $0x10] sm:$0xff] }
 0x434   : > { %v2262_v2 = vpop.permute.xlu1 %2261 }
 0x438   : > { %v2444_v3 = vpop.permute.xlu1 %2443 }
 0x43c   : > { %v2452_v7 = vpop.permute.xlu1 %2451 }
 0x440   : > { %v2544_v14 = vpop.permute.xlu1 %2543 }
 0x444   : > { %v2537_v18 = vpop.permute.xlu1 %2536 }
 0x448   : > { %v2627_v21 = vpop.permute.xlu1 %2626 }
 0x502   : > { %v7061_v58 = vpop.f32.mrb[4].mxu0 }
 0x503   : > { %v7062_v59 = vpop.f32.mrb[5].mxu0 }
 0x504   : > { %v7063_v60 = vadd.f32 %v7062_v59, %v7061_v58  ;;  %v8552_v58 = vld [vmem:[%s9231_s4] sm:$0xff]  ;;  %v3932_v59 = vld [vmem:[%s9236_s9 + $0x28] sm:$0xff] }
 0x506   : > { %2254 = vst.msk [vmem:[#allocation2 + $0x8] sm:$0xff] %vm2253_vm4, %v7063_v60  ;;  %v3931_v60 = vld [vmem:[%s9236_s9 + $0x20] sm:$0xff] }
 0x50d   : > { %v2256_v61 = vld [vmem:[#allocation2 + $0x8] sm:$0xff] }
 0x50e   : > { %2709 = vrot.lane.b32.xlu1 %v2256_v61, %s9260_s19  ;;  %2279 = vrot.lane.b32.xlu0 %v2256_v61, %s7933_s24  ;;  %s9275_s19 = smov 32  }
 0x512   : > { %2715 = vrot.lane.b32.xlu1 %v2270_v62, %s9292_s20  ;;  %2275 = vrot.lane.b32.xlu0 %v2270_v62, %s9266_s17 }
 0x516   : > { %2802 = vrot.lane.b32.xlu1 %v8420_v23, %s9293_s27  ;;  %2263 = vrot.lane.b32.xlu0 %v2256_v61, %s7934_s30 }
 0x51a   : > { %2798 = vrot.lane.b32.xlu1 %v2256_v61, %s9258_s13  ;;  %2445 = vrot.lane.b32.xlu0 %v2256_v61, %s7935_s23  ;;  %s9308_s13 = smov 112  }
 0x51e   : > { %2453 = vrot.lane.b32.xlu0 %v2270_v62, %s9273_s15  ;;  %2890 = vrot.lane.b32.xlu1 %v2270_v62, %s9294_s26 }
 0x522   : > { %2545 = vrot.lane.b32.xlu0 %v2270_v62, %s9271_s28  ;;  %2975 = vrot.lane.b32.xlu1 %v8420_v23, %s9295_s14 }
 0x526   : > { %2538 = vrot.lane.b32.xlu0 %v2256_v61, %s9269_s16  ;;  %3066 = vperm.xlu1 %7600, %v3060_v1  }
 0x52a   : > { %2628 = vrot.lane.b32.xlu0 %v2270_v62, %s9259_s25  ;;  %s9302_s25 = smov 121  }
 0x52e   : > { %2713 = vrot.lane.b32.xlu0 %v8420_v23, %s9292_s20 }
 0x532   : > { %2806 = vrot.lane.b32.xlu0 %v2256_v61, %s9266_s17 }
 0x536   : > { %2804 = vrot.lane.b32.xlu0 %v2270_v62, %s9293_s27 }
 0x53a   : > { %2888 = vrot.lane.b32.xlu0 %v8420_v23, %s9294_s26 }
 0x53e   : > { %2971 = vrot.lane.b32.xlu0 %v2256_v61, %s7937_s29 }
 0x542   : > { %2977 = vrot.lane.b32.xlu0 %v2270_v62, %s9295_s14 }
 0x546   : > { %3071 = vperm.xlu0 %7589, %v3061_v63   ;;  %v3955_v63 = vld [vmem:[%s9237_s10] sm:$0xff] }
 0x580   : > { %v2280_v4 = vpop.permute.xlu0 %2279  ;;  %v2710_v25 = vpop.permute.xlu1 %2709 }
 0x581   : > { %v2281_v5 = vsel %vm9277_vm3, %v2278_v56, %v2280_v4  ;;  %v3962_v4 = vld [vmem:[%s9237_s10 + $0x38] sm:$0xff] }
 0x582   : > { %7127 = vmatprep.subr.mxu1 %v2281_v5 }
 0x583   : > { %7128 = vmatpush3.msra.mxu1 %v2281_v5 }
 0x584   : > { %v2276_v8 = vpop.permute.xlu0 %2275  ;;  %v2716_v28 = vpop.permute.xlu1 %2715 }
 0x585   : > { %7130 = vmatmul.mubr.msk.f32.vlgmr.msra.gmra.mrb[2].mxu1 %vm9277_vm3, %v2276_v8  ;;  %v3961_v8 = vld [vmem:[%s9237_s10 + $0x30] sm:$0xff] }
 0x586   : > { %7134 = vmatprep.mubr.msk.f32.mxu1 %vm9277_vm3, %v8420_v23 }
 0x588   : > { %v2264_v11 = vpop.permute.xlu0 %2263  ;;  %v2803_v30 = vpop.permute.xlu1 %2802 }
 0x589   : > { %v2266_v12 = vsel %vm2265_vm0, %v2262_v2, %v2264_v11  ;;  %v3957_v2 = vld [vmem:[%s9237_s10 + $0x10] sm:$0xff]  ;;  %v3964_v11 = vld [vmem:[%s9237_s10 + $0x48] sm:$0xff] }
 0x58a   : > { %7132 = vmatprep.subr.msk.mxu1 %vm8478_vm1, %v2266_v12  ;;  %v7317_v5 = vpack.c.bf16 %v3957_v2, %v3955_v63 }
 0x58b   : > { %7133 = vmatpush3.msk.msra.mxu1 %vm8478_vm1, %v2266_v12  ;;  %v3966_v12 = vld [vmem:[%s9237_s10 + $0x58] sm:$0xff] }
 0x58c   : > { %v2446_v15 = vpop.permute.xlu0 %2445  ;;  %v2799_v33 = vpop.permute.xlu1 %2798 }
 0x58d   : > { %v2448_v17 = vsel %vm2447_vm15, %v2444_v3, %v2446_v15  ;;  %7135 = vmatmul.mubr.msk.f32.vlgmr.msra.gmra.mrb[2].mxu1 %vm9277_vm3, %v2270_v62  ;;  %v3958_v62 = vld [vmem:[%s9237_s10 + $0x18] sm:$0xff]  ;;  %v3960_v3 = vld [vmem:[%s9237_s10 + $0x28] sm:$0xff]  ;;  %v7323_v15 = vpack.c.bf16 %v3966_v12, %v3964_v11 }
 0x58e   : > { %7137 = vmatprep.subr.msk.mxu1 %vm8487_vm14, %v2448_v17  ;;  %7139 = vmatprep.mubr.msk.f32.mxu1 %vm9277_vm3, %v2452_v7  ;;  %v7319_v6 = vpack.c.bf16 %v3962_v4, %v3960_v3  ;;  %v3959_v7 = vld [vmem:[%s9237_s10 + $0x20] sm:$0xff] }
 0x58f   : > { %7138 = vmatpush3.msk.msra.mxu1 %vm8487_vm14, %v2448_v17 }
 0x590   : > { %7142 = vmatprep.subr.mxu1 %v2256_v61  ;;  %v2454_v19 = vpop.permute.xlu0 %2453  ;;  %v2891_v37 = vpop.permute.xlu1 %2890 }
 0x594   : > { %v2546_v20 = vpop.permute.xlu0 %2545  ;;  %v2976_v38 = vpop.permute.xlu1 %2975 }
 0x595   : > { %7140 = vmatmul.mubr.msk.f32.vlgmr.msra.gmra.mrb[2].mxu1 %vm9277_vm3, %v2454_v19 }
 0x596   : > { %7143 = vmatpush3.msra.mxu1 %v2256_v61  ;;  %7144 = vmatprep.mubr.msk.f32.mxu1 %vm9277_vm3, %v2544_v14  ;;  %v3956_v61 = vld [vmem:[%s9237_s10 + $0x8] sm:$0xff]  ;;  %v7321_v14 = vpack.c.bf16 %v3961_v8, %v3959_v7 }
 0x597   : > { %v7315_v1 = vpack.c.bf16 %v3958_v62, %v3956_v61 }
 0x598   : > { %v2539_v22 = vpop.permute.xlu0 %2538 }
 0x599   : > { %v2540_v24 = vsel %vm738_vm11, %v2537_v18, %v2539_v22 }
 0x59a   : > { %7147 = vmatprep.subr.msk.mxu1 %vm8478_vm1, %v2540_v24 }
 0x59c   : > { %v2629_v27 = vpop.permute.xlu0 %2628 }
 0x59d   : > { %7145 = vmatmul.mubr.msk.f32.vlgmr.msra.gmra.mrb[2].mxu1 %vm9277_vm3, %v2546_v20 }
 0x59e   : > { %7148 = vmatpush3.msk.msra.mxu1 %vm8478_vm1, %v2540_v24  ;;  %7149 = vmatprep.mubr.msk.f32.mxu1 %vm9277_vm3, %v2627_v21 }
 0x59f   : > { %7152 = vmatprep.subr.msk.mxu1 %vm8487_vm14, %v2710_v25 }
 0x5a0   : > { %v2714_v10 = vpop.permute.xlu0 %2713 }
 0x5a4   : > { %v2807_v29 = vpop.permute.xlu0 %2806 }
 0x5a5   : > { %7150 = vmatmul.mubr.msk.f32.vlgmr.msra.gmra.mrb[2].mxu1 %vm9277_vm3, %v2629_v27  ;;  %v3067_v41 = vpop.permute.xlu1 %3066 }
 0x5a6   : > { %7153 = vmatpush3.msk.msra.mxu1 %vm8487_vm14, %v2710_v25  ;;  %7154 = vmatprep.mubr.msk.f32.mxu1 %vm9277_vm3, %v2714_v10 }
 0x5a7   : > { %7157 = vmatprep.subr.mxu1 %v2807_v29 }
 0x5a8   : > { %v2805_v31 = vpop.permute.xlu0 %2804 }
 0x5ac   : > { %v2889_v34 = vpop.permute.xlu0 %2888 }
 0x5ad   : > { %7155 = vmatmul.mubr.msk.f32.vlgmr.msra.gmra.mrb[2].mxu1 %vm9277_vm3, %v2716_v28 }
 0x5ae   : > { %7158 = vmatpush3.msra.mxu1 %v2807_v29  ;;  %7159 = vmatprep.mubr.msk.f32.mxu1 %vm9277_vm3, %v2803_v30 }
 0x5af   : > { %7162 = vmatprep.subr.msk.mxu1 %vm8478_vm1, %v2799_v33 }
 0x5b0   : > { %v2972_v35 = vpop.permute.xlu0 %2971 }
 0x5b4   : > { %v2978_v40 = vpop.permute.xlu0 %2977 }
 0x5b5   : > { %7160 = vmatmul.mubr.msk.f32.vlgmr.msra.gmra.mrb[2].mxu1 %vm9277_vm3, %v2805_v31 }
 0x5b6   : > { %7163 = vmatpush3.msk.msra.mxu1 %vm8478_vm1, %v2799_v33  ;;  %7164 = vmatprep.mubr.msk.f32.mxu1 %vm9277_vm3, %v2889_v34 }
 0x5b7   : > { %7167 = vmatprep.subr.msk.mxu1 %vm8487_vm14, %v2972_v35 }
 0x5bd   : > { %7165 = vmatmul.mubr.msk.f32.vlgmr.msra.gmra.mrb[2].mxu1 %vm9277_vm3, %v2891_v37 }
 0x5be   : > { %7168 = vmatpush3.msk.msra.mxu1 %vm8487_vm14, %v2972_v35  ;;  %7169 = vmatprep.mubr.msk.f32.mxu1 %vm9277_vm3, %v2976_v38 }
 0x5bf   : > { %7316 = vmatprep.subr.bf16.mxu1 %v7315_v1 }
 0x5c5   : > { %7170 = vmatmul.mubr.msk.f32.vlgmr.msra.gmra.mrb[2].mxu1 %vm9277_vm3, %v2978_v40  ;;  %v3072_v42 = vpop.permute.xlu0 %3071 }
 0x5c6   : > { %4041 = vmatprep.mubr.f32.mxu1 %v7912_v0  ;;  %7318 = vmatpush1.bf16.msra.mxu1 %v7317_v5 }
 0x5c7   : > { %7320 = vmatprep.subr.bf16.mxu1 %v7319_v6 }
 0x5ca   : > { %7322 = vmatpush1.bf16.msra.mxu1 %v7321_v14 }
 0x5cb   : > { %7324 = vmatprep.subr.bf16.mxu1 %v7323_v15 }
 0x698   : > { %v7171_v43 = vpop.f32.mrb[2].mxu1 }
 0x699   : > { %v7433_v44 = vadd.f32 %v7171_v43, %v3072_v42  ;;  %v3049_v45 = vpop.f32.mrb[3].mxu1 }
 0x69a   : > { %v7434_v23 = vadd.f32 %v3067_v41, %v3049_v45 }
 0x69b   : > { %vm3079_vm13 = vcmp.ge.f32.partialorder %v7433_v44, 0.0  ;;  %v3081_v46 = vmul.f32 0.01, %v7433_v44 }
 0x69c   : > { %vm3078_vm12 = vcmp.ge.f32.partialorder %v7434_v23, 0.0  ;;  %v3080_v47 = vmul.f32 0.01, %v7434_v23 }
 0x69d   : > { %v3083_v49 = vsel %vm3079_vm13, %v7433_v44, %v3081_v46  ;;  %vm8654_vm13 = vmpackc.low %vm8487_vm14, %vm8487_vm14 }
 0x69e   : > { %3085 = vst.msk [vmem:[#allocation2 + $0x28] sm:$0xff] %vm2253_vm4, %v3083_v49  ;;  %v3082_v50 = vsel %vm3078_vm12, %v7434_v23, %v3080_v47  ;;  %vm8639_vm12 = vmpackc.low %vm8478_vm1, %vm8478_vm1 }
 0x69f   : > { %3084 = vst.msk [vmem:[#allocation2 + $0x8] sm:$0xff] %vm2253_vm4, %v3082_v50  ;;  %vm8857_vm1 = vmpackc.low %vm8127_vm10, %vm8127_vm10 }
 0x6a5   : > { %v8533_v52 = vld [vmem:[#allocation2 + $0x28] sm:$0xff] }
 0x6a6   : > { %v7601_v53 = vpack.i.bf16 %v8533_v52, %v8531_v51  ;;  %v8537_v55 = vld [vmem:[#allocation2 + $0x8] sm:$0xff]  ;;  %4961 = vst [vmem:[#allocation2 + $0x28] sm:$0xff] %v8317_v48 }
 0x6a7   : > { %v7606_v56 = vpack.i.bf16 %v8537_v55, %v8088_v13  ;;  %v7641_v13 = vpack.i.bf16 %v8533_v52, %v8537_v55 }
 0x6a8   : > { %7602 = vrot.lane.b32.xlu0 %v7601_v53, %s7933_s24 }
 0x6a9   : > { %7607 = vrot.lane.b32.xlu1 %v7606_v56, %s7933_s24  ;;  %s9267_s24 = smov 48  }
 0x6ac   : > { %3114 = vrot.lane.b32.xlu0 %v8547_v57, %s9273_s15 }
 0x6ad   : > { %3112 = vrot.lane.b32.xlu1 %v8552_v58, %s9273_s15  ;;  %s9314_s15 = smov 111  }
 0x6b0   : > { %7617 = vrot.lane.b32.xlu0 %v7601_v53, %s7934_s30 }
 0x6b1   : > { %7612 = vrot.lane.b32.xlu1 %v7606_v56, %s7934_s30  ;;  %s9300_s30 = smov 127  }
 0x6b4   : > { %7627 = vrot.lane.b32.xlu0 %v7601_v53, %s7935_s23 }
 0x6b5   : > { %7622 = vrot.lane.b32.xlu1 %v7606_v56, %s7935_s23  ;;  %s9301_s23 = smov 16  }
 0x6b8   : > { %3302 = vrot.lane.b32.xlu0 %v8547_v57, %s9271_s28 }
 0x6b9   : > { %3300 = vrot.lane.b32.xlu1 %v8552_v58, %s9271_s28  ;;  %s9315_s28 = smov 32  }
 0x6bc   : > { %3401 = vrot.lane.b32.xlu0 %v8547_v57, %s9295_s14 }
 0x6bd   : > { %3399 = vrot.lane.b32.xlu1 %v8552_v58, %s9295_s14 }
 0x6c0   : > { %7637 = vrot.lane.b32.xlu0 %v7601_v53, %s9269_s16 }
 0x6c1   : > { %7632 = vrot.lane.b32.xlu1 %v7606_v56, %s9269_s16  ;;  %s9313_s16 = smov 113  }
 0x6c4   : > { %3484 = vrot.lane.b32.xlu0 %v8547_v57, %s9294_s26 }
 0x6c5   : > { %3482 = vrot.lane.b32.xlu1 %v8552_v58, %s9294_s26 }
 0x6c8   : > { %3573 = vrot.lane.b32.xlu0 %v8552_v58, %s9267_s24 }
 0x6c9   : > { %7642 = vrot.lane.b32.xlu1 %v7641_v13, %s9300_s30 }
 0x6cc   : > { %7647 = vrot.lane.b32.xlu0 %v7641_v13, %s9266_s17  ;;  %s9310_s17 = smov 96  }
 0x6cd   : > { %3575 = vrot.lane.b32.xlu1 %v8547_v57, %s9267_s24  ;;  %s9312_s24 = smov 48  }
 0x6d0   : > { %3668 = vrot.lane.b32.xlu0 %v8547_v57, %s9301_s23 }
 0x6d1   : > { %3666 = vrot.lane.b32.xlu1 %v8552_v58, %s9301_s23 }
 0x6d4   : > { %3755 = vrot.lane.b32.xlu0 %v8552_v58, %s9275_s19 }
 0x6d5   : > { %7652 = vrot.lane.b32.xlu1 %v7641_v13, %s9302_s25 }
 0x6d8   : > { %7657 = vrot.lane.b32.xlu0 %v7641_v13, %s7937_s29  ;;  %s9307_s29 = smov 17  }
 0x6d9   : > { %3757 = vrot.lane.b32.xlu1 %v8547_v57, %s9275_s19 }
 0x6dc   : > { %3942 = vperm.xlu0 %7589, %v3932_v59  }
 0x6dd   : > { %3937 = vperm.xlu1 %7600, %v3931_v60  }
 0x71a   : > { %v7603_v17 = vpop.permute.xlu0 %7602 }
 0x71b   : > { %v7605_v18 = vunpack.i.h.bf16 %v7603_v17  ;;  %v7604_v19 = vunpack.i.l.bf16 %v7603_v17  ;;  %v7608_v20 = vpop.permute.xlu1 %7607 }
 0x71c   : > { %v7610_v21 = vunpack.i.h.bf16 %v7608_v20  ;;  %v7609_v22 = vunpack.i.l.bf16 %v7608_v20 }
 0x71d   : > { %v3125_v24 = vsel %vm9277_vm3, %v7604_v19, %v7605_v18 }
 0x71e   : > { %v3115_v25 = vpop.permute.xlu0 %3114  ;;  %v3124_v27 = vsel %vm9277_vm3, %v7609_v22, %v7610_v21 }
 0x71f   : > { %v3113_v10 = vpop.permute.xlu1 %3112  ;;  %v7267_v28 = vpack.c.bf16 %v3125_v24, %v3124_v27 }
 0x720   : > { %7176 = vmatprep.mubr.msk.f32.mxu0 %vm471_vm2, %v3113_v10 }
 0x721   : > { %7268 = vmatprep.subr.bf16.mxu0 %v7267_v28 }
 0x722   : > { %v7618_v29 = vpop.permute.xlu0 %7617  ;;  %7270 = vmatpush3.bf16.msra.mxu0 %v7267_v28 }
 0x723   : > { %v7620_v30 = vunpack.i.h.bf16 %v7618_v29  ;;  %v7619_v31 = vunpack.i.l.bf16 %v7618_v29  ;;  %v7613_v33 = vpop.permute.xlu1 %7612 }
 0x724   : > { %v7615_v34 = vunpack.i.h.bf16 %v7613_v33  ;;  %v7614_v35 = vunpack.i.l.bf16 %v7613_v33  ;;  %v3847_v33 = vld [vmem:[%s9231_s4 + $0x18] sm:$0xff] }
 0x725   : > { %v3103_v37 = vsel %vm2265_vm0, %v7619_v31, %v7620_v30  ;;  %7177 = vmatmul.mubr.msk.f32.vlgmr.msra.gmra.mrb[6].mxu0 %vm471_vm2, %v3115_v25  ;;  %v3846_v30 = vld [vmem:[%s9231_s4 + $0x8] sm:$0xff] }
 0x726   : > { %v3102_v38 = vsel %vm2265_vm0, %v7614_v35, %v7615_v34  ;;  %v7628_v40 = vpop.permute.xlu0 %7627  ;;  %7183 = vmatprep.mubr.msk.f32.mxu0 %vm471_vm2, %v8552_v58  ;;  %v7283_v58 = vpack.c.bf16 %v8533_v52, %v8537_v55  ;;  %v3963_v34 = vld [vmem:[%s9237_s10 + $0x40] sm:$0xff]  ;;  %v3965_v35 = vld [vmem:[%s9237_s10 + $0x50] sm:$0xff]  ;;  %vm8844_vm0 = vmpackc.low %vm8114_vm7, %vm8114_vm7 }
 0x727   : > { %v7630_v42 = vunpack.i.h.bf16 %v7628_v40  ;;  %v7629_v43 = vunpack.i.l.bf16 %v7628_v40  ;;  %v7623_v44 = vpop.permute.xlu1 %7622  ;;  %v7271_v45 = vpack.c.bf16 %v3103_v37, %v3102_v38  ;;  %v7325_v37 = vpack.c.bf16 %v3965_v35, %v3963_v34  ;;  %v3968_v38 = vld [vmem:[%s9237_s10 + $0x68] sm:$0xff]  ;;  %v3970_v40 = vld [vmem:[%s9237_s10 + $0x78] sm:$0xff] }
 0x728   : > { %v7625_v23 = vunpack.i.h.bf16 %v7623_v44  ;;  %v7624_v46 = vunpack.i.l.bf16 %v7623_v44  ;;  %v7327_v41 = vpack.c.bf16 %v3970_v40, %v3968_v38 }
 0x729   : > { %v3295_v47 = vsel %vm2447_vm15, %v7629_v43, %v7630_v42  ;;  %7273 = vmatprep.subr.msk.bf16.mxu0 %vm8639_vm12, %v7271_v45  ;;  %7326 = vmatpush1.bf16.msra.mxu1 %v7325_v37  ;;  %v3967_v42 = vld [vmem:[%s9237_s10 + $0x60] sm:$0xff]  ;;  %v3969_v43 = vld [vmem:[%s9237_s10 + $0x70] sm:$0xff] }
 0x72a   : > { %v3294_v9 = vsel %vm2447_vm15, %v7624_v46, %v7625_v23  ;;  %v3303_v49 = vpop.permute.xlu0 %3302  ;;  %7276 = vmatpush3.bf16.msk.msra.mxu0 %vm8639_vm12, %v7271_v45  ;;  %v7329_v44 = vpack.c.bf16 %v3969_v43, %v3967_v42  ;;  %7328 = vmatprep.subr.bf16.mxu1 %v7327_v41 }
 0x72b   : > { %v3301_v53 = vpop.permute.xlu1 %3300  ;;  %v7277_v56 = vpack.c.bf16 %v3295_v47, %v3294_v9 }
 0x72d   : > { %7184 = vmatmul.mubr.msk.f32.vlgmr.msra.gmra.mrb[6].mxu0 %vm471_vm2, %v8547_v57  ;;  %7279 = vmatprep.subr.msk.bf16.mxu0 %vm8654_vm13, %v7277_v56 }
 0x72e   : > { %v3402_v13 = vpop.permute.xlu0 %3401  ;;  %7282 = vmatpush3.bf16.msk.msra.mxu0 %vm8654_vm13, %v7277_v56  ;;  %7190 = vmatprep.mubr.msk.f32.mxu0 %vm471_vm2, %v3301_v53 }
 0x72f   : > { %v3400_v16 = vpop.permute.xlu1 %3399  ;;  %7284 = vmatprep.subr.bf16.mxu0 %v7283_v58  ;;  %7330 = vmatpush1.bf16.msra.mxu1 %v7329_v44 }
 0x732   : > { %v7638_v59 = vpop.permute.xlu0 %7637 }
 0x733   : > { %v7640_v60 = vunpack.i.h.bf16 %v7638_v59  ;;  %v7639_v61 = vunpack.i.l.bf16 %v7638_v59  ;;  %v7633_v62 = vpop.permute.xlu1 %7632  ;;  %v8731_v59 = vld [vmem:[#allocation2] sm:$0xff] }
 0x734   : > { %v7635_v63 = vunpack.i.h.bf16 %v7633_v62  ;;  %v7634_v57 = vunpack.i.l.bf16 %v7633_v62  ;;  %v8740_v62 = vpack.i.bf16 %v8531_v51, %v8731_v59  ;;  %v8758_v51 = vld [vmem:[%s9232_s5] sm:$0xff] }
 0x735   : > { %v3394_v1 = vsel %vm738_vm11, %v7639_v61, %v7640_v60  ;;  %7191 = vmatmul.mubr.msk.f32.vlgmr.msra.gmra.mrb[6].mxu0 %vm471_vm2, %v3303_v49 }
 0x736   : > { %v3393_v52 = vsel %vm738_vm11, %v7634_v57, %v7635_v63  ;;  %7286 = vmatpush3.bf16.msra.mxu0 %v7283_v58  ;;  %v3485_v55 = vpop.permute.xlu0 %3484  ;;  %7197 = vmatprep.mubr.msk.f32.mxu0 %vm471_vm2, %v3400_v16 }
 0x737   : > { %v3483_v2 = vpop.permute.xlu1 %3482  ;;  %v7287_v3 = vpack.c.bf16 %v3394_v1, %v3393_v52 }
 0x739   : > { %7289 = vmatprep.subr.msk.bf16.mxu0 %vm8639_vm12, %v7287_v3 }
 0x73a   : > { %v3574_v4 = vpop.permute.xlu0 %3573 }
 0x73b   : > { %v7643_v5 = vpop.permute.xlu1 %7642 }
 0x73c   : > { %v7645_v6 = vunpack.i.h.bf16 %v7643_v5  ;;  %v7644_v7 = vunpack.i.l.bf16 %v7643_v5 }
 0x73d   : > { %7198 = vmatmul.mubr.msk.f32.vlgmr.msra.gmra.mrb[6].mxu0 %vm471_vm2, %v3402_v13 }
 0x73e   : > { %v7293_v8 = vpack.c.bf16 %v7645_v6, %v7644_v7  ;;  %7292 = vmatpush3.bf16.msk.msra.mxu0 %vm8639_vm12, %v7287_v3  ;;  %v7648_v11 = vpop.permute.xlu0 %7647  ;;  %7204 = vmatprep.mubr.msk.f32.mxu0 %vm471_vm2, %v3483_v2  ;;  %v8775_v2 = vld [vmem:[#allocation2 + $0x18] sm:$0xff]  ;;  %v4947_v6 = vld [vmem:[%s9236_s9 + $0x30] sm:$0xff]  ;;  %v8811_v7 = vpack.i.bf16 %v8329_v54, %v8317_v48 }
 0x73f   : > { %v3576_v12 = vpop.permute.xlu1 %3575  ;;  %v7650_v14 = vunpack.i.h.bf16 %v7648_v11  ;;  %v7649_v15 = vunpack.i.l.bf16 %v7648_v11 }
 0x740   : > { %7295 = vmatprep.subr.msk.bf16.mxu0 %vm8654_vm13, %v7293_v8 }
 0x741   : > { %v7299_v19 = vpack.c.bf16 %v7650_v14, %v7649_v15 }
 0x742   : > { %v3669_v17 = vpop.permute.xlu0 %3668 }
 0x743   : > { %v3667_v18 = vpop.permute.xlu1 %3666 }
 0x745   : > { %7205 = vmatmul.mubr.msk.f32.vlgmr.msra.gmra.mrb[6].mxu0 %vm471_vm2, %v3485_v55 }
 0x746   : > { %7298 = vmatpush3.bf16.msk.msra.mxu0 %vm8654_vm13, %v7293_v8  ;;  %7211 = vmatprep.mubr.msk.f32.mxu0 %vm471_vm2, %v3574_v4  ;;  %v3756_v21 = vpop.permute.xlu0 %3755  ;;  %v8785_v4 = vld [vmem:[#allocation2 + $0x38] sm:$0xff]  ;;  %v8818_v8 = vld [vmem:[%s9233_s6] sm:$0xff] }
 0x747   : > { %7300 = vmatprep.subr.bf16.mxu0 %v7299_v19  ;;  %v7653_v20 = vpop.permute.xlu1 %7652 }
 0x748   : > { %v7655_v22 = vunpack.i.h.bf16 %v7653_v20  ;;  %v7654_v24 = vunpack.i.l.bf16 %v7653_v20 }
 0x74a   : > { %v7303_v25 = vpack.c.bf16 %v7655_v22, %v7654_v24  ;;  %v7658_v27 = vpop.permute.xlu0 %7657 }
 0x74b   : > { %v7660_v10 = vunpack.i.h.bf16 %v7658_v27  ;;  %v7659_v28 = vunpack.i.l.bf16 %v7658_v27  ;;  %v3758_v31 = vpop.permute.xlu1 %3757 }
 0x74d   : > { %7212 = vmatmul.mubr.msk.f32.vlgmr.msra.gmra.mrb[6].mxu0 %vm471_vm2, %v3576_v12  ;;  %v7309_v29 = vpack.c.bf16 %v7660_v10, %v7659_v28 }
 0x74e   : > { %7302 = vmatpush3.bf16.msra.mxu0 %v7299_v19  ;;  %7218 = vmatprep.mubr.msk.f32.mxu0 %vm471_vm2, %v3667_v18 }
 0x74f   : > { %7305 = vmatprep.subr.msk.bf16.mxu0 %vm8639_vm12, %v7303_v25 }
 0x755   : > { %7219 = vmatmul.mubr.msk.f32.vlgmr.msra.gmra.mrb[6].mxu0 %vm471_vm2, %v3669_v17 }
 0x756   : > { %7308 = vmatpush3.bf16.msk.msra.mxu0 %vm8639_vm12, %v7303_v25  ;;  %7225 = vmatprep.mubr.msk.f32.mxu0 %vm471_vm2, %v3756_v21  ;;  %vm8870_vm12 = vmpackc.low %vm8121_vm9, %vm8121_vm9 }
 0x757   : > { %7311 = vmatprep.subr.msk.bf16.mxu0 %vm8654_vm13, %v7309_v29 }
 0x75b   : > { %v3943_v45 = vpop.permute.xlu0 %3942 }
 0x75c   : > { %v3938_v46 = vpop.permute.xlu1 %3937 }
 0x75d   : > { %7226 = vmatmul.mubr.msk.f32.vlgmr.msra.gmra.mrb[6].mxu0 %vm471_vm2, %v3758_v31 }
 0x75e   : > { %7314 = vmatpush3.bf16.msk.msra.mxu0 %vm8654_vm13, %v7309_v29  ;;  %7232 = vmatprep.mubr.msk.f32.mxu0 %vm471_vm2, %v3846_v30  ;;  %vm9324_vm13 = vcmask 1039360  }
 0x75f   : > { %vm9327_vm3 = vmmov %vm9324_vm13 }
 0x765   : > { %7233 = vmatmul.mubr.msk.f32.vlgmr.msra.gmra.mrb[6].mxu0 %vm471_vm2, %v3847_v33 }
 0x766   : > { %5089 = vmatprep.mubr.f32.mxu0 %v7912_v0 }
 0x838   : > { %v7234_v23 = vpop.f32.mrb[6].mxu0 }
 0x839   : > { %v3920_v47 = vpop.f32.mrb[7].mxu0  ;;  %v7435_v9 = vadd.f32 %v7234_v23, %v3943_v45 }
 0x83a   : > { %v7436_v49 = vadd.f32 %v3938_v46, %v3920_v47 }
 0x83b   : > { %v3952_v53 = vmul.f32 0.01, %v7435_v9  ;;  %vm3950_vm15 = vcmp.ge.f32.partialorder %v7435_v9, 0.0 }
 0x83c   : > { %vm3949_vm14 = vcmp.ge.f32.partialorder %v7436_v49, 0.0  ;;  %v3951_v50 = vmul.f32 0.01, %v7436_v49 }
 0x83d   : > { %v3954_v58 = vsel %vm3950_vm15, %v7435_v9, %v3952_v53  ;;  %vm9326_vm15 = vmmov %vm9324_vm13 }
 0x83e   : > { %v3953_v56 = vsel %vm3949_vm14, %v7436_v49, %v3951_v50  ;;  %vm9325_vm14 = vmmov %vm9324_vm13  ;;  %v5775_v49 = vld [vmem:[%s9233_s6 + $0x8] sm:$0xff] }
 0x83f   : > { %6934 = vmatmul.mubr.msk.f32.vlgmr.msra.gmra.mrb[4].mxu1 %vm2253_vm4, %v3953_v56 }
 0x840   : > { %4047 = vmatprep.mubr.f32.mxu1 %v7912_v0 }
 0x843   : > { %6935 = vmatmul.mubr.msk.f32.gmra.mrb[6].mxu1 %vm2253_vm4, %v3954_v58  ;;  %vm8836_vm4 = vmpackc.low %vm8103_vm6, %vm8103_vm6 }
 0x844   : > { %4184 = vmatprep.mubr.f32.mxu1 %v7912_v0 }
 0x912   : > { %v8727_v13 = vpop.f32.mrb[4].mxu1 }
 0x913   : > { %v8729_v16 = vpop.f32.mrb[5].mxu1 }
 0x914   : > { %v7661_v60 = vpack.i.bf16 %v8729_v16, %v8727_v13  ;;  %v7721_v3 = vpack.i.bf16 %v8775_v2, %v8729_v16 }
 0x916   : > { %v8735_v61 = vpop.f32.mrb[6].mxu1  ;;  %7662 = vrot.lane.b32.xlu1 %v7661_v60, %s9301_s23 }
 0x917   : > { %v8742_v63 = vpop.f32.mrb[7].mxu1  ;;  %v7726_v57 = vpack.i.bf16 %v8735_v61, %v8727_v13  ;;  %v7349_v1 = vpack.c.bf16 %v8735_v61, %v8727_v13 }
 0x918   : > { %v7671_v52 = vpack.i.bf16 %v8742_v63, %v8735_v61  ;;  %v7347_v55 = vpack.c.bf16 %v8742_v63, %v8729_v16  ;;  %v7731_v5 = vpack.i.bf16 %v8785_v4, %v8742_v63 }
 0x91a   : > { %7667 = vrot.lane.b32.xlu1 %v8740_v62, %s9301_s23  ;;  %7672 = vrot.lane.b32.xlu0 %v7671_v52, %s9301_s23 }
 0x91e   : > { %7677 = vrot.lane.b32.xlu1 %v7661_v60, %s9307_s29  ;;  %4096 = vrot.lane.b32.xlu0 %v8758_v51, %s9308_s13 }
 0x922   : > { %7687 = vrot.lane.b32.xlu1 %v8740_v62, %s9307_s29  ;;  %7682 = vrot.lane.b32.xlu0 %v7671_v52, %s9307_s29 }
 0x926   : > { %7697 = vrot.lane.b32.xlu1 %v7671_v52, %s9309_s18  ;;  %7692 = vrot.lane.b32.xlu0 %v7661_v60, %s9309_s18 }
 0x92a   : > { %4288 = vrot.lane.b32.xlu1 %v8758_v51, %s9310_s17  ;;  %7702 = vrot.lane.b32.xlu0 %v8740_v62, %s9309_s18 }
 0x92e   : > { %7707 = vrot.lane.b32.xlu1 %v7661_v60, %s9311_s0  ;;  %4389 = vrot.lane.b32.xlu0 %v8758_v51, %s9295_s14 }
 0x932   : > { %7712 = vrot.lane.b32.xlu1 %v8740_v62, %s9311_s0  ;;  %7717 = vrot.lane.b32.xlu0 %v7671_v52, %s9311_s0 }
 0x936   : > { %7722 = vrot.lane.b32.xlu1 %v7721_v3, %s9300_s30  ;;  %4464 = vrot.lane.b32.xlu0 %v8758_v51, %s9294_s26 }
 0x93a   : > { %7727 = vrot.lane.b32.xlu1 %v7726_v57, %s9300_s30  ;;  %7732 = vrot.lane.b32.xlu0 %v7731_v5, %s9300_s30 }
 0x93e   : > { %7737 = vrot.lane.b32.xlu1 %v7721_v3, %s9308_s13  ;;  %4575 = vrot.lane.b32.xlu0 %v8758_v51, %s9312_s24 }
 0x942   : > { %7742 = vrot.lane.b32.xlu1 %v7726_v57, %s9308_s13  ;;  %7747 = vrot.lane.b32.xlu0 %v7731_v5, %s9308_s13 }
 0x946   : > { %7752 = vrot.lane.b32.xlu1 %v7721_v3, %s9313_s16  ;;  %4676 = vrot.lane.b32.xlu0 %v8758_v51, %s9301_s23 }
 0x94a   : > { %7757 = vrot.lane.b32.xlu1 %v7726_v57, %s9313_s16  ;;  %7762 = vrot.lane.b32.xlu0 %v7731_v5, %s9313_s16 }
 0x94e   : > { %7767 = vrot.lane.b32.xlu1 %v7721_v3, %s9314_s15  ;;  %4771 = vrot.lane.b32.xlu0 %v8758_v51, %s9315_s28 }
 0x952   : > { %7777 = vrot.lane.b32.xlu1 %v7726_v57, %s9314_s15  ;;  %7772 = vrot.lane.b32.xlu0 %v7731_v5, %s9314_s15 }
 0x956   : > { %4952 = vperm.xlu0 %7589, %v4947_v6  }
 0x95a   : > { %7782 = vrot.lane.b32.xlu0 %v8811_v7, %s9301_s23 }
 0x95e   : > { %5001 = vrot.lane.b32.xlu0 %v8818_v8, %s9308_s13 }
 0x962   : > { %7797 = vrot.lane.b32.xlu0 %v8811_v7, %s9307_s29 }
 0x988   : > { %v7663_v11 = vpop.permute.xlu1 %7662 }
 0x989   : > { %v7665_v12 = vunpack.i.h.bf16 %v7663_v11  ;;  %v7664_v14 = vunpack.i.l.bf16 %v7663_v11 }
 0x98b   : > { %v4111_v24 = vsel %vm471_vm2, %v7664_v14, %v7665_v12 }
 0x98c   : > { %v7668_v15 = vpop.permute.xlu1 %7667  ;;  %v7673_v54 = vpop.permute.xlu0 %7672 }
 0x98d   : > { %v7670_v17 = vunpack.i.h.bf16 %v7668_v15  ;;  %v7669_v18 = vunpack.i.l.bf16 %v7668_v15  ;;  %v7675_v19 = vunpack.i.h.bf16 %v7673_v54  ;;  %v7674_v20 = vunpack.i.l.bf16 %v7673_v54 }
 0x98f   : > { %v4110_v21 = vsel %vm471_vm2, %v7669_v18, %v7664_v14  ;;  %v4112_v22 = vsel %vm471_vm2, %v7670_v17, %v7674_v20  ;;  %v4113_v25 = vsel %vm471_vm2, %v7674_v20, %v7675_v19 }
 0x990   : > { %v7333_v27 = vpack.c.bf16 %v4112_v22, %v4110_v21  ;;  %v7678_v10 = vpop.permute.xlu1 %7677  ;;  %v4097_v28 = vpop.permute.xlu0 %4096  ;;  %v7331_v29 = vpack.c.bf16 %v4113_v25, %v4111_v24 }
 0x991   : > { %v7680_v30 = vunpack.i.h.bf16 %v7678_v10  ;;  %v7679_v31 = vunpack.i.l.bf16 %v7678_v10 }
 0x992   : > { %7332 = vmatprep.subr.bf16.mxu1 %v7331_v29 }
 0x993   : > { %7334 = vmatpush1.bf16.msra.mxu1 %v7333_v27  ;;  %v4083_v41 = vsel %vm454_vm5, %v7679_v31, %v7680_v30 }
 0x994   : > { %v7688_v33 = vpop.permute.xlu1 %7687  ;;  %v7683_v34 = vpop.permute.xlu0 %7682 }
 0x995   : > { %v7690_v35 = vunpack.i.h.bf16 %v7688_v33  ;;  %v7689_v37 = vunpack.i.l.bf16 %v7688_v33  ;;  %v7685_v38 = vunpack.i.h.bf16 %v7683_v34  ;;  %v7684_v40 = vunpack.i.l.bf16 %v7683_v34 }
 0x996   : > { %6936 = vmatmul.mubr.msk.f32.vlgmr.msra.gmra.mrb[8].mxu1 %vm471_vm2, %v4097_v28 }
 0x997   : > { %v4082_v42 = vsel %vm454_vm5, %v7689_v37, %v7679_v31  ;;  %v4084_v43 = vsel %vm454_vm5, %v7690_v35, %v7684_v40  ;;  %v4085_v44 = vsel %vm454_vm5, %v7684_v40, %v7685_v38  ;;  %4257 = vmatprep.mubr.f32.mxu1 %v7912_v0 }
 0x998   : > { %v7335_v23 = vpack.c.bf16 %v4085_v44, %v4083_v41  ;;  %v7338_v46 = vpack.c.bf16 %v4084_v43, %v4082_v42  ;;  %v7698_v47 = vpop.permute.xlu1 %7697  ;;  %v7693_v9 = vpop.permute.xlu0 %7692 }
 0x999   : > { %v7700_v50 = vunpack.i.h.bf16 %v7698_v47  ;;  %v7699_v53 = vunpack.i.l.bf16 %v7698_v47  ;;  %v7695_v56 = vunpack.i.h.bf16 %v7693_v9  ;;  %v7694_v58 = vunpack.i.l.bf16 %v7693_v9 }
 0x99a   : > { %7337 = vmatprep.subr.msk.bf16.mxu1 %vm8836_vm4, %v7335_v23 }
 0x99b   : > { %v4279_v60 = vsel %vm642_vm8, %v7699_v53, %v7700_v50  ;;  %v4277_v57 = vsel %vm642_vm8, %v7694_v58, %v7695_v56  ;;  %7340 = vmatpush1.bf16.msk.msra.mxu1 %vm8844_vm0, %v7338_v46 }
 0x99c   : > { %v7341_v3 = vpack.c.bf16 %v4279_v60, %v4277_v57  ;;  %v4289_v5 = vpop.permute.xlu1 %4288  ;;  %v7703_v6 = vpop.permute.xlu0 %7702 }
 0x99d   : > { %v7705_v11 = vunpack.i.h.bf16 %v7703_v6  ;;  %v7704_v12 = vunpack.i.l.bf16 %v7703_v6 }
 0x99e   : > { %6941 = vmatmul.mubr.msk.f32.vlgmr.msra.gmra.mrb[8].mxu1 %vm471_vm2, %v8758_v51  ;;  %7343 = vmatprep.subr.msk.bf16.mxu1 %vm8857_vm1, %v7341_v3 }
 0x99f   : > { %v4278_v14 = vsel %vm642_vm8, %v7705_v11, %v7699_v53  ;;  %v4276_v15 = vsel %vm642_vm8, %v7704_v12, %v7694_v58  ;;  %4356 = vmatprep.mubr.f32.mxu1 %v7912_v0 }
 0x9a0   : > { %v7344_v17 = vpack.c.bf16 %v4278_v14, %v4276_v15  ;;  %v7708_v18 = vpop.permute.xlu1 %7707  ;;  %v4390_v19 = vpop.permute.xlu0 %4389 }
 0x9a1   : > { %v7710_v51 = vunpack.i.h.bf16 %v7708_v18  ;;  %v7709_v20 = vunpack.i.l.bf16 %v7708_v18 }
 0x9a2   : > { %7346 = vmatpush1.bf16.msk.msra.mxu1 %vm8870_vm12, %v7344_v17 }
 0x9a3   : > { %7348 = vmatprep.subr.bf16.mxu1 %v7347_v55  ;;  %v4378_v28 = vsel %vm738_vm11, %v7709_v20, %v7710_v51 }
 0x9a4   : > { %v7713_v21 = vpop.permute.xlu1 %7712  ;;  %v7718_v22 = vpop.permute.xlu0 %7717 }
 0x9a5   : > { %v7720_v24 = vunpack.i.h.bf16 %v7718_v22  ;;  %v7719_v25 = vunpack.i.l.bf16 %v7718_v22  ;;  %v7715_v27 = vunpack.i.h.bf16 %v7713_v21  ;;  %v7714_v10 = vunpack.i.l.bf16 %v7713_v21 }
 0x9a6   : > { %6946 = vmatmul.mubr.msk.f32.vlgmr.msra.gmra.mrb[8].mxu1 %vm471_vm2, %v4289_v5 }
 0x9a7   : > { %v4380_v29 = vsel %vm738_vm11, %v7719_v25, %v7720_v24  ;;  %7350 = vmatpush1.bf16.msra.mxu1 %v7349_v1  ;;  %4457 = vmatprep.mubr.f32.mxu1 %v7912_v0  ;;  %v4377_v30 = vsel %vm738_vm11, %v7714_v10, %v7709_v20  ;;  %v4379_v31 = vsel %vm738_vm11, %v7715_v27, %v7719_v25 }
 0x9a8   : > { %v7351_v16 = vpack.c.bf16 %v4380_v29, %v4378_v28  ;;  %v7723_v63 = vpop.permute.xlu1 %7722  ;;  %v4465_v55 = vpop.permute.xlu0 %4464  ;;  %v7354_v38 = vpack.c.bf16 %v4379_v31, %v4377_v30 }
 0x9a9   : > { %v7725_v33 = vunpack.i.h.bf16 %v7723_v63  ;;  %v7724_v34 = vunpack.i.l.bf16 %v7723_v63 }
 0x9aa   : > { %7353 = vmatprep.subr.msk.bf16.mxu1 %vm8836_vm4, %v7351_v16 }
 0x9ab   : > { %v4564_v41 = vsel %vm9324_vm13, %v7724_v34, %v7725_v33  ;;  %vm9328_vm13 = vcmask 916480  }
 0x9ac   : > { %v7728_v35 = vpop.permute.xlu1 %7727  ;;  %v7733_v37 = vpop.permute.xlu0 %7732 }
 0x9ad   : > { %v7735_v40 = vunpack.i.h.bf16 %v7733_v37  ;;  %v7734_v13 = vunpack.i.l.bf16 %v7733_v37  ;;  %v7730_v61 = vunpack.i.h.bf16 %v7728_v35  ;;  %v7729_v1 = vunpack.i.l.bf16 %v7728_v35 }
 0x9ae   : > { %6947 = vmatmul.mubr.msk.f32.vlgmr.msra.gmra.mrb[8].mxu1 %vm471_vm2, %v4390_v19 }
 0x9af   : > { %v4566_v42 = vsel %vm9325_vm14, %v7734_v13, %v7735_v40  ;;  %7356 = vmatpush1.bf16.msk.msra.mxu1 %vm8844_vm0, %v7354_v38  ;;  %4532 = vmatprep.mubr.f32.mxu1 %v7912_v0  ;;  %v4563_v46 = vsel %vm9326_vm15, %v7729_v1, %v7724_v34  ;;  %v4565_v47 = vsel %vm9327_vm3, %v7730_v61, %v7734_v13  ;;  %vm9329_vm3 = vmmov %vm9328_vm13 }
 0x9b0   : > { %v7357_v43 = vpack.c.bf16 %v4566_v42, %v4564_v41  ;;  %v7738_v44 = vpop.permute.xlu1 %7737  ;;  %v4576_v23 = vpop.permute.xlu0 %4575  ;;  %v7360_v58 = vpack.c.bf16 %v4565_v47, %v4563_v46  ;;  %vm9330_vm14 = vmmov %vm9329_vm3  ;;  %v4870_v47 = vld [vmem:[%s9232_s5 + $0x8] sm:$0xff] }
 0x9b1   : > { %v7740_v9 = vunpack.i.h.bf16 %v7738_v44  ;;  %v7739_v50 = vunpack.i.l.bf16 %v7738_v44  ;;  %vm9331_vm15 = vmmov %vm9329_vm3 }
 0x9b2   : > { %7359 = vmatprep.subr.msk.bf16.mxu1 %vm8857_vm1, %v7357_v43 }
 0x9b3   : > { %v4691_v6 = vsel %vm9328_vm13, %v7739_v50, %v7740_v9  ;;  %vm9332_vm13 = vcmask 924672  }
 0x9b4   : > { %v7743_v53 = vpop.permute.xlu1 %7742  ;;  %v7748_v56 = vpop.permute.xlu0 %7747 }
 0x9b5   : > { %v7750_v60 = vunpack.i.h.bf16 %v7748_v56  ;;  %v7749_v57 = vunpack.i.l.bf16 %v7748_v56  ;;  %v7745_v3 = vunpack.i.h.bf16 %v7743_v53  ;;  %v7744_v5 = vunpack.i.l.bf16 %v7743_v53 }
 0x9b6   : > { %6952 = vmatmul.mubr.msk.f32.vlgmr.msra.gmra.mrb[8].mxu1 %vm471_vm2, %v4465_v55 }
 0x9b7   : > { %7362 = vmatpush1.bf16.msk.msra.mxu1 %vm8870_vm12, %v7360_v58  ;;  %v4693_v11 = vsel %vm9329_vm3, %v7749_v57, %v7750_v60  ;;  %4643 = vmatprep.mubr.f32.mxu1 %v7912_v0  ;;  %v4690_v17 = vsel %vm9330_vm14, %v7744_v5, %v7739_v50  ;;  %v4692_v18 = vsel %vm9331_vm15, %v7745_v3, %v7749_v57  ;;  %vm9333_vm3 = vmmov %vm9332_vm13  ;;  %v8959_v57 = vld [vmem:[#allocation2 + $0x30] sm:$0xff] }
 0x9b8   : > { %v7753_v12 = vpop.permute.xlu1 %7752  ;;  %v4677_v14 = vpop.permute.xlu0 %4676  ;;  %v7363_v15 = vpack.c.bf16 %v4693_v11, %v4691_v6  ;;  %v7365_v22 = vpack.c.bf16 %v4692_v18, %v4690_v17  ;;  %vm9334_vm14 = vmmov %vm9333_vm3  ;;  %v7841_v3 = vpack.i.bf16 %v8785_v4, %v8959_v57 }
 0x9b9   : > { %v7755_v19 = vunpack.i.h.bf16 %v7753_v12  ;;  %v7754_v51 = vunpack.i.l.bf16 %v7753_v12  ;;  %vm9335_vm15 = vmmov %vm9333_vm3 }
 0x9ba   : > { %7364 = vmatprep.subr.bf16.mxu1 %v7363_v15 }
 0x9bb   : > { %v4665_v28 = vsel %vm9332_vm13, %v7754_v51, %v7755_v19  ;;  %vm9336_vm13 = vcmask 908288  }
 0x9bc   : > { %v7758_v20 = vpop.permute.xlu1 %7757  ;;  %v7763_v21 = vpop.permute.xlu0 %7762 }
 0x9bd   : > { %v7765_v24 = vunpack.i.h.bf16 %v7763_v21  ;;  %v7764_v25 = vunpack.i.l.bf16 %v7763_v21  ;;  %v7760_v27 = vunpack.i.h.bf16 %v7758_v20  ;;  %v7759_v10 = vunpack.i.l.bf16 %v7758_v20 }
 0x9be   : > { %6957 = vmatmul.mubr.msk.f32.vlgmr.msra.gmra.mrb[8].mxu1 %vm471_vm2, %v4576_v23 }
 0x9bf   : > { %v4667_v29 = vsel %vm9333_vm3, %v7764_v25, %v7765_v24  ;;  %7366 = vmatpush1.bf16.msra.mxu1 %v7365_v22  ;;  %4764 = vmatprep.mubr.f32.mxu1 %v7912_v0  ;;  %v4664_v30 = vsel %vm9334_vm14, %v7759_v10, %v7754_v51  ;;  %v4666_v31 = vsel %vm9335_vm15, %v7760_v27, %v7764_v25  ;;  %vm9337_vm3 = vmmov %vm9336_vm13 }
 0x9c0   : > { %v7367_v16 = vpack.c.bf16 %v4667_v29, %v4665_v28  ;;  %v7768_v63 = vpop.permute.xlu1 %7767  ;;  %v4772_v55 = vpop.permute.xlu0 %4771  ;;  %v7370_v38 = vpack.c.bf16 %v4666_v31, %v4664_v30  ;;  %vm9338_vm14 = vmmov %vm9337_vm3 }
 0x9c1   : > { %v7770_v33 = vunpack.i.h.bf16 %v7768_v63  ;;  %v7769_v34 = vunpack.i.l.bf16 %v7768_v63  ;;  %vm9339_vm15 = vmmov %vm9337_vm3 }
 0x9c2   : > { %7369 = vmatprep.subr.msk.bf16.mxu1 %vm8836_vm4, %v7367_v16 }
 0x9c3   : > { %v4859_v41 = vsel %vm9336_vm13, %v7769_v34, %v7770_v33  ;;  %vm9340_vm13 = vcmask 1039360  }
 0x9c4   : > { %v7778_v35 = vpop.permute.xlu1 %7777  ;;  %v7773_v37 = vpop.permute.xlu0 %7772 }
 0x9c5   : > { %v7775_v40 = vunpack.i.h.bf16 %v7773_v37  ;;  %v7774_v13 = vunpack.i.l.bf16 %v7773_v37  ;;  %v7780_v61 = vunpack.i.h.bf16 %v7778_v35  ;;  %v7779_v1 = vunpack.i.l.bf16 %v7778_v35 }
 0x9c6   : > { %6958 = vmatmul.mubr.msk.f32.vlgmr.msra.gmra.mrb[8].mxu1 %vm471_vm2, %v4677_v14 }
 0x9c7   : > { %v4861_v42 = vsel %vm9337_vm3, %v7774_v13, %v7775_v40  ;;  %7372 = vmatpush1.bf16.msk.msra.mxu1 %vm8844_vm0, %v7370_v38  ;;  %4839 = vmatprep.mubr.f32.mxu1 %v7912_v0  ;;  %v4858_v44 = vsel %vm9338_vm14, %v7779_v1, %v7769_v34  ;;  %v4860_v23 = vsel %vm9339_vm15, %v7780_v61, %v7774_v13  ;;  %vm9341_vm3 = vmmov %vm9340_vm13 }
 0x9c8   : > { %v7373_v43 = vpack.c.bf16 %v4861_v42, %v4859_v41  ;;  %v7376_v46 = vpack.c.bf16 %v4860_v23, %v4858_v44  ;;  %vm9342_vm14 = vmmov %vm9341_vm3 }
 0x9c9   : > { %vm9343_vm15 = vmmov %vm9341_vm3 }
 0x9ca   : > { %7375 = vmatprep.subr.msk.bf16.mxu1 %vm8857_vm1, %v7373_v43 }
 0x9ce   : > { %6963 = vmatmul.mubr.msk.f32.vlgmr.msra.gmra.mrb[8].mxu1 %vm471_vm2, %v4772_v55 }
 0x9cf   : > { %7378 = vmatpush1.bf16.msk.msra.mxu1 %vm8870_vm12, %v7376_v46  ;;  %4938 = vmatprep.mubr.f32.mxu1 %v7912_v0 }
 0x9d5   : > { %v4953_v9 = vpop.permute.xlu0 %4952 }
 0x9d6   : > { %6968 = vmatmul.mubr.msk.f32.vlgmr.msra.gmra.mrb[8].mxu1 %vm471_vm2, %v4870_v47 }
 0x9d7   : > { %5970 = vmatprep.mubr.f32.mxu1 %v7912_v0 }
 0xaa9   : > { %v4940_v50 = vpop.f32.mrb[8].mxu1 }
 0xaaa   : > { %v8936_v53 = vadd.f32 %v4953_v9, %v4940_v50  ;;  %v4942_v56 = vpop.f32.mrb[9].mxu1 }
 0xaab   : > { %v8938_v58 = vadd.f32 %v4953_v9, %v4942_v56 }
 0xaac   : > { %v7851_v4 = vpack.i.bf16 %v8317_v48, %v8936_v53  ;;  %v7783_v48 = vpop.permute.xlu0 %7782 }
 0xaad   : > { %v7816_v60 = vpack.i.bf16 %v8938_v58, %v8936_v53  ;;  %v7785_v11 = vunpack.i.h.bf16 %v7783_v48  ;;  %v7784_v12 = vunpack.i.l.bf16 %v7783_v48 }
 0xaaf   : > { %7817 = vrot.lane.b32.xlu0 %v7816_v60, %s9309_s18  ;;  %7787 = vrot.lane.b32.xlu1 %v7816_v60, %s9301_s23  ;;  %v5018_v51 = vsel %vm471_vm2, %v7784_v12, %v7785_v11 }
 0xab0   : > { %v5002_v5 = vpop.permute.xlu0 %5001 }
 0xab3   : > { %7822 = vrot.lane.b32.xlu0 %v8740_v62, %s9309_s18  ;;  %7792 = vrot.lane.b32.xlu1 %v8740_v62, %s9301_s23 }
 0xab4   : > { %v7798_v6 = vpop.permute.xlu0 %7797 }
 0xab5   : > { %v7800_v27 = vunpack.i.h.bf16 %v7798_v6  ;;  %v7799_v10 = vunpack.i.l.bf16 %v7798_v6  ;;  %v7395_v6 = vpack.c.bf16 %v8959_v57, %v8938_v58  ;;  %v7903_v57 = vld [vmem:[#allocation2 + $0x28] sm:$0xff] }
 0xab7   : > { %5294 = vrot.lane.b32.xlu0 %v8818_v8, %s9295_s14  ;;  %7802 = vrot.lane.b32.xlu1 %v7816_v60, %s9307_s29  ;;  %v4990_v33 = vsel %vm454_vm5, %v7799_v10, %v7800_v27 }
 0xabb   : > { %7827 = vrot.lane.b32.xlu0 %v8811_v7, %s9311_s0  ;;  %7807 = vrot.lane.b32.xlu1 %v8740_v62, %s9307_s29 }
 0xabf   : > { %5369 = vrot.lane.b32.xlu0 %v8818_v8, %s9294_s26  ;;  %7812 = vrot.lane.b32.xlu1 %v8811_v7, %s9309_s18  ;;  %v7846_v7 = vpack.i.bf16 %v8775_v2, %v8938_v58 }
 0xac3   : > { %7842 = vrot.lane.b32.xlu0 %v7841_v3, %s9300_s30  ;;  %5193 = vrot.lane.b32.xlu1 %v8818_v8, %s9310_s17 }
 0xac7   : > { %5480 = vrot.lane.b32.xlu0 %v8818_v8, %s9312_s24  ;;  %7832 = vrot.lane.b32.xlu1 %v7816_v60, %s9311_s0  ;;  %s9356_s24 = smov 120  }
 0xacb   : > { %7857 = vrot.lane.b32.xlu0 %v7841_v3, %s9308_s13  ;;  %7837 = vrot.lane.b32.xlu1 %v8740_v62, %s9311_s0  ;;  %v5852_v62 = vld [vmem:[%s9236_s9 + $0x38] sm:$0xff] }
 0xacf   : > { %5581 = vrot.lane.b32.xlu0 %v8818_v8, %s9301_s23  ;;  %7847 = vrot.lane.b32.xlu1 %v7846_v7, %s9300_s30 }
 0xad3   : > { %7872 = vrot.lane.b32.xlu0 %v7841_v3, %s9313_s16  ;;  %7852 = vrot.lane.b32.xlu1 %v7851_v4, %s9300_s30 }
 0xad7   : > { %5676 = vrot.lane.b32.xlu0 %v8818_v8, %s9315_s28  ;;  %7862 = vrot.lane.b32.xlu1 %v7846_v7, %s9308_s13 }
 0xadb   : > { %7887 = vrot.lane.b32.xlu0 %v7841_v3, %s9314_s15  ;;  %7867 = vrot.lane.b32.xlu1 %v7851_v4, %s9308_s13 }
 0xadf   : > { %5857 = vperm.xlu0 %7589, %v5852_v62   ;;  %7877 = vrot.lane.b32.xlu1 %v7846_v7, %s9313_s16 }
 0xae3   : > { %7882 = vrot.lane.b32.xlu1 %v7851_v4, %s9313_s16 }
 0xae7   : > { %7892 = vrot.lane.b32.xlu1 %v7846_v7, %s9314_s15 }
 0xaeb   : > { %7897 = vrot.lane.b32.xlu1 %v7851_v4, %s9314_s15 }
 0xb21   : > { %v7818_v14 = vpop.permute.xlu0 %7817  ;;  %v7788_v15 = vpop.permute.xlu1 %7787 }
 0xb22   : > { %v7790_v17 = vunpack.i.h.bf16 %v7788_v15  ;;  %v7789_v18 = vunpack.i.l.bf16 %v7788_v15  ;;  %v7820_v61 = vunpack.i.h.bf16 %v7818_v14  ;;  %v7819_v1 = vunpack.i.l.bf16 %v7818_v14 }
 0xb24   : > { %v5016_v19 = vsel %vm471_vm2, %v7789_v18, %v7790_v17  ;;  %v5182_v56 = vsel %vm642_vm8, %v7819_v1, %v7820_v61 }
 0xb25   : > { %v7823_v20 = vpop.permute.xlu0 %7822  ;;  %v7793_v21 = vpop.permute.xlu1 %7792  ;;  %v7379_v22 = vpack.c.bf16 %v5018_v51, %v5016_v19 }
 0xb26   : > { %v7795_v24 = vunpack.i.h.bf16 %v7793_v21  ;;  %v7794_v25 = vunpack.i.l.bf16 %v7793_v21  ;;  %v7825_v41 = vunpack.i.h.bf16 %v7823_v20  ;;  %v7824_v42 = vunpack.i.l.bf16 %v7823_v20 }
 0xb27   : > { %7380 = vmatprep.subr.bf16.mxu0 %v7379_v22  ;;  %v7397_v21 = vpack.c.bf16 %v7903_v57, %v8936_v53 }
 0xb28   : > { %v5017_v28 = vsel %vm471_vm2, %v7795_v24, %v7784_v12  ;;  %v5015_v29 = vsel %vm471_vm2, %v7794_v25, %v7789_v18  ;;  %v5181_v60 = vsel %vm642_vm8, %v7824_v42, %v7819_v1 }
 0xb29   : > { %v7381_v16 = vpack.c.bf16 %v5017_v28, %v5015_v29  ;;  %v8997_v63 = vpop.permute.xlu0 %5294  ;;  %v7803_v55 = vpop.permute.xlu1 %7802 }
 0xb2a   : > { %v7805_v30 = vunpack.i.h.bf16 %v7803_v55  ;;  %v7804_v31 = vunpack.i.l.bf16 %v7803_v55 }
 0xb2b   : > { %7382 = vmatpush1.bf16.msra.mxu0 %v7381_v16 }
 0xb2c   : > { %v4988_v34 = vsel %vm454_vm5, %v7804_v31, %v7805_v30 }
 0xb2d   : > { %v7383_v35 = vpack.c.bf16 %v4990_v33, %v4988_v34  ;;  %v7828_v37 = vpop.permute.xlu0 %7827  ;;  %v7808_v38 = vpop.permute.xlu1 %7807 }
 0xb2e   : > { %v7810_v40 = vunpack.i.h.bf16 %v7808_v38  ;;  %v7809_v13 = vunpack.i.l.bf16 %v7808_v38  ;;  %6969 = vmatmul.mubr.msk.f32.vlgmr.msra.gmra.mrb[8].mxu0 %vm471_vm2, %v5002_v5  ;;  %v7830_v11 = vunpack.i.h.bf16 %v7828_v37  ;;  %v7829_v12 = vunpack.i.l.bf16 %v7828_v37 }
 0xb2f   : > { %7385 = vmatprep.subr.msk.bf16.mxu0 %vm8836_vm4, %v7383_v35  ;;  %5162 = vmatprep.mubr.f32.mxu0 %v7912_v0 }
 0xb30   : > { %v4989_v43 = vsel %vm454_vm5, %v7810_v40, %v7799_v10  ;;  %v4987_v44 = vsel %vm454_vm5, %v7809_v13, %v7804_v31 }
 0xb31   : > { %v7386_v23 = vpack.c.bf16 %v4989_v43, %v4987_v44  ;;  %v9007_v46 = vpop.permute.xlu0 %5369  ;;  %v7813_v47 = vpop.permute.xlu1 %7812 }
 0xb32   : > { %v7815_v9 = vunpack.i.h.bf16 %v7813_v47  ;;  %v7814_v50 = vunpack.i.l.bf16 %v7813_v47 }
 0xb33   : > { %7388 = vmatpush1.bf16.msk.msra.mxu0 %vm8844_vm0, %v7386_v23 }
 0xb34   : > { %v5183_v3 = vsel %vm642_vm8, %v7825_v41, %v7814_v50  ;;  %v5184_v7 = vsel %vm642_vm8, %v7814_v50, %v7815_v9 }
 0xb35   : > { %v7389_v4 = vpack.c.bf16 %v5184_v7, %v5182_v56  ;;  %v7392_v62 = vpack.c.bf16 %v5183_v3, %v5181_v60  ;;  %v7843_v48 = vpop.permute.xlu0 %7842  ;;  %v5194_v5 = vpop.permute.xlu1 %5193 }
 0xb36   : > { %6974 = vmatmul.mubr.msk.f32.vlgmr.msra.gmra.mrb[8].mxu0 %vm471_vm2, %v8818_v8  ;;  %v5285_v8 = vsel %vm738_vm11, %v7829_v12, %v7830_v11  ;;  %v7845_v25 = vunpack.i.h.bf16 %v7843_v48  ;;  %v7844_v27 = vunpack.i.l.bf16 %v7843_v48 }
 0xb37   : > { %7391 = vmatprep.subr.msk.bf16.mxu0 %vm8857_vm1, %v7389_v4  ;;  %5261 = vmatprep.mubr.f32.mxu0 %v7912_v0 }
 0xb38   : > { %7394 = vmatpush1.bf16.msk.msra.mxu0 %vm8870_vm12, %v7392_v62  ;;  %v5471_v30 = vsel %vm9340_vm13, %v7844_v27, %v7845_v25  ;;  %vm9344_vm13 = vcmask 916480  }
 0xb39   : > { %v9024_v14 = vpop.permute.xlu0 %5480  ;;  %v7833_v15 = vpop.permute.xlu1 %7832  ;;  %7396 = vmatprep.subr.bf16.mxu0 %v7395_v6 }
 0xb3a   : > { %v7835_v17 = vunpack.i.h.bf16 %v7833_v15  ;;  %v7834_v18 = vunpack.i.l.bf16 %v7833_v15 }
 0xb3c   : > { %v5283_v19 = vsel %vm738_vm11, %v7834_v18, %v7835_v17 }
 0xb3d   : > { %v7399_v51 = vpack.c.bf16 %v5285_v8, %v5283_v19  ;;  %v7858_v20 = vpop.permute.xlu0 %7857  ;;  %v7838_v58 = vpop.permute.xlu1 %7837 }
 0xb3e   : > { %v7840_v22 = vunpack.i.h.bf16 %v7838_v58  ;;  %v7839_v24 = vunpack.i.l.bf16 %v7838_v58  ;;  %6979 = vmatmul.mubr.msk.f32.vlgmr.msra.gmra.mrb[8].mxu0 %vm471_vm2, %v5194_v5  ;;  %v7860_v40 = vunpack.i.h.bf16 %v7858_v20  ;;  %v7859_v13 = vunpack.i.l.bf16 %v7858_v20 }
 0xb3f   : > { %7398 = vmatpush1.bf16.msra.mxu0 %v7397_v21  ;;  %5362 = vmatprep.mubr.f32.mxu0 %v7912_v0 }
 0xb40   : > { %7401 = vmatprep.subr.msk.bf16.mxu0 %vm8836_vm4, %v7399_v51  ;;  %v5284_v28 = vsel %vm738_vm11, %v7840_v22, %v7829_v12  ;;  %v5282_v29 = vsel %vm738_vm11, %v7839_v24, %v7834_v18 }
 0xb41   : > { %v7848_v10 = vpop.permute.xlu1 %7847  ;;  %v9035_v53 = vpop.permute.xlu0 %5581  ;;  %v7402_v33 = vpack.c.bf16 %v5284_v28, %v5282_v29 }
 0xb42   : > { %v7850_v16 = vunpack.i.h.bf16 %v7848_v10  ;;  %v7849_v55 = vunpack.i.l.bf16 %v7848_v10 }
 0xb44   : > { %v5469_v31 = vsel %vm9341_vm3, %v7849_v55, %v7850_v16  ;;  %vm9345_vm3 = vmmov %vm9344_vm13 }
 0xb45   : > { %v7405_v34 = vpack.c.bf16 %v5471_v30, %v5469_v31  ;;  %v7853_v35 = vpop.permute.xlu1 %7852  ;;  %v7873_v61 = vpop.permute.xlu0 %7872  ;;  %v5598_v23 = vsel %vm9345_vm3, %v7859_v13, %v7860_v40 }
 0xb46   : > { %v7855_v37 = vunpack.i.h.bf16 %v7853_v35  ;;  %v7854_v38 = vunpack.i.l.bf16 %v7853_v35  ;;  %6980 = vmatmul.mubr.msk.f32.vlgmr.msra.gmra.mrb[8].mxu0 %vm471_vm2, %v8997_v63  ;;  %v7875_v7 = vunpack.i.h.bf16 %v7873_v61  ;;  %v7874_v4 = vunpack.i.l.bf16 %v7873_v61  ;;  %v6676_v61 = vld [vmem:[%s9236_s9 + $0x48] sm:$0x3] }
 0xb47   : > { %7404 = vmatpush1.bf16.msk.msra.mxu0 %vm8844_vm0, %v7402_v33  ;;  %5437 = vmatprep.mubr.f32.mxu0 %v7912_v0 }
 0xb48   : > { %7407 = vmatprep.subr.msk.bf16.mxu0 %vm8857_vm1, %v7405_v34  ;;  %v5470_v41 = vsel %vm9342_vm14, %v7855_v37, %v7844_v27  ;;  %v5468_v42 = vsel %vm9343_vm15, %v7854_v38, %v7849_v55  ;;  %vm9346_vm14 = vmmov %vm9345_vm3 }
 0xb49   : > { %v7863_v1 = vpop.permute.xlu1 %7862  ;;  %v7408_v47 = vpack.c.bf16 %v5470_v41, %v5468_v42  ;;  %v5677_v3 = vpop.permute.xlu0 %5676  ;;  %vm9347_vm15 = vmmov %vm9345_vm3 }
 0xb4a   : > { %v7865_v43 = vunpack.i.h.bf16 %v7863_v1  ;;  %v7864_v44 = vunpack.i.l.bf16 %v7863_v1 }
 0xb4c   : > { %v5596_v63 = vsel %vm9344_vm13, %v7864_v44, %v7865_v43  ;;  %vm9348_vm13 = vcmask 924672  }
 0xb4d   : > { %v7868_v9 = vpop.permute.xlu1 %7867  ;;  %v7411_v50 = vpack.c.bf16 %v5598_v23, %v5596_v63  ;;  %v5572_v12 = vsel %vm9348_vm13, %v7874_v4, %v7875_v7  ;;  %vm9349_vm3 = vmmov %vm9348_vm13  ;;  %v7888_v15 = vpop.permute.xlu0 %7887  ;;  %vm9352_vm13 = vcmask 908288  }
 0xb4e   : > { %v7870_v56 = vunpack.i.h.bf16 %v7868_v9  ;;  %v7869_v60 = vunpack.i.l.bf16 %v7868_v9  ;;  %6985 = vmatmul.mubr.msk.f32.vlgmr.msra.gmra.mrb[8].mxu0 %vm471_vm2, %v9007_v46  ;;  %v7890_v20 = vunpack.i.h.bf16 %v7888_v15  ;;  %v7889_v58 = vunpack.i.l.bf16 %v7888_v15 }
 0xb4f   : > { %7410 = vmatpush1.bf16.msk.msra.mxu0 %vm8870_vm12, %v7408_v47  ;;  %5548 = vmatprep.mubr.f32.mxu0 %v7912_v0 }
 0xb50   : > { %7412 = vmatprep.subr.bf16.mxu0 %v7411_v50  ;;  %v5597_v48 = vsel %vm9346_vm14, %v7870_v56, %v7859_v13  ;;  %v5595_v5 = vsel %vm9347_vm15, %v7869_v60, %v7864_v44  ;;  %vm9350_vm14 = vmmov %vm9349_vm3  ;;  %v5766_v27 = vsel %vm9352_vm13, %v7889_v58, %v7890_v20  ;;  %v5890_v13 = vld [vmem:[%s9234_s7] sm:$0xff] }
 0xb51   : > { %v7878_v62 = vpop.permute.xlu1 %7877  ;;  %v7413_v17 = vpack.c.bf16 %v5597_v48, %v5595_v5  ;;  %vm9351_vm15 = vmmov %vm9349_vm3 }
 0xb52   : > { %v7880_v6 = vunpack.i.h.bf16 %v7878_v62  ;;  %v7879_v11 = vunpack.i.l.bf16 %v7878_v62 }
 0xb54   : > { %v5570_v46 = vsel %vm9349_vm3, %v7879_v11, %v7880_v6  ;;  %vm9353_vm3 = vmmov %vm9352_vm13 }
 0xb55   : > { %v7415_v18 = vpack.c.bf16 %v5572_v12, %v5570_v46  ;;  %v7883_v8 = vpop.permute.xlu1 %7882 }
 0xb56   : > { %v7885_v19 = vunpack.i.h.bf16 %v7883_v8  ;;  %v7884_v51 = vunpack.i.l.bf16 %v7883_v8  ;;  %6990 = vmatmul.mubr.msk.f32.vlgmr.msra.gmra.mrb[8].mxu0 %vm471_vm2, %v9024_v14 }
 0xb57   : > { %7414 = vmatpush1.bf16.msra.mxu0 %v7413_v17  ;;  %5669 = vmatprep.mubr.f32.mxu0 %v7912_v0 }
 0xb58   : > { %7417 = vmatprep.subr.msk.bf16.mxu0 %vm8836_vm4, %v7415_v18  ;;  %v5571_v21 = vsel %vm9350_vm14, %v7885_v19, %v7874_v4  ;;  %v5569_v22 = vsel %vm9351_vm15, %v7884_v51, %v7879_v11  ;;  %vm9354_vm4 = vmmov %vm9353_vm3  ;;  %vm9362_vm15 = vcmask 1039360  }
 0xb59   : > { %v7893_v57 = vpop.permute.xlu1 %7892  ;;  %v7418_v14 = vpack.c.bf16 %v5571_v21, %v5569_v22  ;;  %vm9355_vm14 = vmmov %vm9353_vm3 }
 0xb5a   : > { %v7895_v24 = vunpack.i.h.bf16 %v7893_v57  ;;  %v7894_v25 = vunpack.i.l.bf16 %v7893_v57  ;;  %vm9363_vm13 = vmmov %vm9362_vm15 }
 0xb5c   : > { %v5764_v10 = vsel %vm9353_vm3, %v7894_v25, %v7895_v24  ;;  %vm9365_vm3 = vcmask 916480  }
 0xb5d   : > { %v7421_v28 = vpack.c.bf16 %v5766_v27, %v5764_v10  ;;  %v7898_v29 = vpop.permute.xlu1 %7897 }
 0xb5e   : > { %v7900_v16 = vunpack.i.h.bf16 %v7898_v29  ;;  %v7899_v55 = vunpack.i.l.bf16 %v7898_v29  ;;  %6991 = vmatmul.mubr.msk.f32.vlgmr.msra.gmra.mrb[8].mxu0 %vm471_vm2, %v9035_v53  ;;  %v5858_v52 = vpop.permute.xlu0 %5857 }
 0xb5f   : > { %7420 = vmatpush1.bf16.msk.msra.mxu0 %vm8844_vm0, %v7418_v14  ;;  %5744 = vmatprep.mubr.f32.mxu0 %v7912_v0 }
 0xb60   : > { %7423 = vmatprep.subr.msk.bf16.mxu0 %vm8857_vm1, %v7421_v28  ;;  %v5765_v45 = vsel %vm9354_vm4, %v7900_v16, %v7889_v58  ;;  %v5763_v30 = vsel %vm9355_vm14, %v7899_v55, %v7894_v25  ;;  %vm9366_vm4 = vmmov %vm9365_vm3 }
 0xb61   : > { %v7424_v31 = vpack.c.bf16 %v5765_v45, %v5763_v30 }
 0xb66   : > { %6996 = vmatmul.mubr.msk.f32.vlgmr.msra.gmra.mrb[8].mxu0 %vm471_vm2, %v5677_v3 }
 0xb67   : > { %7426 = vmatpush1.bf16.msk.msra.mxu0 %vm8870_vm12, %v7424_v31  ;;  %5843 = vmatprep.mubr.f32.mxu0 %v7912_v0  ;;  %vm9358_vm12 = vcmask 64512  }
 0xb6e   : > { %7001 = vmatmul.mubr.msk.f32.vlgmr.msra.gmra.mrb[8].mxu0 %vm471_vm2, %v5775_v49 }
 0xb6f   : > { %6749 = vmatprep.mubr.f32.mxu0 %v7912_v0 }
 0xc41   : > { %v5845_v53 = vpop.f32.mrb[8].mxu0 }
 0xc42   : > { %v7439_v33 = vadd.f32 %v5858_v52, %v5845_v53  ;;  %v5847_v34 = vpop.f32.mrb[9].mxu0 }
 0xc43   : > { %v7440_v35 = vadd.f32 %v5858_v52, %v5847_v34 }
 0xc44   : > { %vm5864_vm0 = vcmp.ge.f32.partialorder %v7439_v33, 0.0  ;;  %v5866_v37 = vmul.f32 0.01, %v7439_v33 }
 0xc45   : > { %vm5865_vm1 = vcmp.ge.f32.partialorder %v7440_v35, 0.0  ;;  %v5867_v54 = vmul.f32 0.01, %v7440_v35 }
 0xc46   : > { %v9086_v38 = vsel %vm5864_vm0, %v7439_v33, %v5866_v37  ;;  %vm9368_vm0 = vcmask 924672  }
 0xc47   : > { %5870 = vst [vmem:[#allocation2 + $0x8] sm:$0xff] %v9086_v38  ;;  %v9089_v40 = vsel %vm5865_vm1, %v7440_v35, %v5867_v54  ;;  %5896 = vrot.lane.b32.xlu1 %v9086_v38, %s9301_s23  ;;  %vm9369_vm1 = vmmov %vm9368_vm0 }
 0xc48   : > { %5871 = vst [vmem:[#allocation2 + $0x10] sm:$0xff] %v9089_v40  ;;  %5898 = vrot.lane.b32.xlu0 %v9089_v40, %s9301_s23 }
 0xc4b   : > { %5894 = vrot.lane.b32.xlu1 %v8731_v59, %s9301_s23  ;;  %s9357_s23 = smov 104  }
 0xc4c   : > { %5892 = vrot.lane.b32.xlu0 %v5890_v13, %s9356_s24 }
 0xc4f   : > { %5880 = vrot.lane.b32.xlu1 %v9086_v38, %s9307_s29 }
 0xc50   : > { %5882 = vrot.lane.b32.xlu0 %v9089_v40, %s9307_s29 }
 0xc53   : > { %5878 = vrot.lane.b32.xlu1 %v8731_v59, %s9307_s29 }
 0xc54   : > { %6052 = vrot.lane.b32.xlu0 %v9086_v38, %s9309_s18 }
 0xc57   : > { %6054 = vrot.lane.b32.xlu1 %v9089_v40, %s9309_s18 }
 0xc58   : > { %6050 = vrot.lane.b32.xlu0 %v8731_v59, %s9309_s18 }
 0xc5b   : > { %6062 = vrot.lane.b32.xlu1 %v5890_v13, %s9308_s13 }
 0xc5c   : > { %6151 = vrot.lane.b32.xlu0 %v5890_v13, %s9310_s17 }
 0xc5f   : > { %6141 = vrot.lane.b32.xlu1 %v9086_v38, %s9311_s0 }
 0xc60   : > { %6143 = vrot.lane.b32.xlu0 %v9089_v40, %s9311_s0 }
 0xc63   : > { %6139 = vrot.lane.b32.xlu1 %v8731_v59, %s9311_s0  ;;  %v6657_v59 = vld [vmem:[%s9236_s9 + $0x40] sm:$0xff] }
 0xc64   : > { %6226 = vrot.lane.b32.xlu0 %v5890_v13, %s9357_s23 }
 0xc67   : > { %6309 = vrot.lane.b32.xlu1 %v9089_v40, %s9300_s30 }
 0xc68   : > { %6311 = vrot.lane.b32.xlu0 %v8775_v2, %s9300_s30 }
 0xc6b   : > { %6307 = vrot.lane.b32.xlu1 %v9086_v38, %s9300_s30 }
 0xc6c   : > { %6319 = vrot.lane.b32.xlu0 %v5890_v13, %s9292_s20 }
 0xc6f   : > { %6412 = vrot.lane.b32.xlu1 %v9089_v40, %s9308_s13 }
 0xc70   : > { %6414 = vrot.lane.b32.xlu0 %v8775_v2, %s9308_s13 }
 0xc73   : > { %6410 = vrot.lane.b32.xlu1 %v9086_v38, %s9308_s13  ;;  %s7028_s13 = sshll.u32 %s9376_s22, 2 }
 0xc74   : > { %6408 = vrot.lane.b32.xlu0 %v5890_v13, %s9293_s27  ;;  %s413_s0 = scalar_lea.vmem %s9239_s12, %s7028_s13 }
 0xc77   : > { %6398 = vrot.lane.b32.xlu1 %v9089_v40, %s9313_s16 }
 0xc78   : > { %6400 = vrot.lane.b32.xlu0 %v8775_v2, %s9313_s16 }
 0xc7b   : > { %6396 = vrot.lane.b32.xlu1 %v9086_v38, %s9313_s16 }
 0xc7c   : > { %6493 = vrot.lane.b32.xlu0 %v5890_v13, %s9294_s26 }
 0xc7f   : > { %6570 = vrot.lane.b32.xlu1 %v9089_v40, %s9314_s15 }
 0xc80   : > { %6572 = vrot.lane.b32.xlu0 %v8775_v2, %s9314_s15 }
 0xc83   : > { %6568 = vrot.lane.b32.xlu1 %v9086_v38, %s9314_s15 }
 0xc84   : > { %6580 = vrot.lane.b32.xlu0 %v5890_v13, %s9295_s14 }
 0xc87   : > { %6662 = vperm.xlu1 %7600, %v6657_v59  }
 0xc88   : > { %6679 = vperm.xlu0 %7589, %v6676_v61  }
 0xcb9   : > { %v5897_v1 = vpop.permute.xlu1 %5896 }
 0xcba   : > { %v5899_v41 = vpop.permute.xlu0 %5898 }
 0xcbb   : > { %v5901_v42 = vsel %vm471_vm2, %v5897_v1, %v5899_v41 }
 0xcbc   : > { %5906 = vmatprep.subr.mxu1 %v5901_v42 }
 0xcbd   : > { %v5895_v2 = vpop.permute.xlu1 %5894 }
 0xcbe   : > { %v5900_v43 = vsel %vm471_vm2, %v5895_v2, %v5897_v1  ;;  %v5893_v44 = vpop.permute.xlu0 %5892  ;;  %vm9359_vm2 = vmmov %vm9358_vm12 }
 0xcbf   : > { %5907 = vmatpush1.msra.mxu1 %v5900_v43  ;;  %vm9367_vm14 = vmmov %vm9359_vm2 }
 0xcc0   : > { %7002 = vmatmul.mubr.msk.f32.vlgmr.msra.gmra.mrb[10].mxu1 %vm9358_vm12, %v5893_v44  ;;  %vm9370_vm12 = vmmov %vm9359_vm2 }
 0xcc1   : > { %v5881_v63 = vpop.permute.xlu1 %5880  ;;  %6043 = vmatprep.mubr.f32.mxu1 %v7912_v0 }
 0xcc2   : > { %v5883_v23 = vpop.permute.xlu0 %5882 }
 0xcc3   : > { %v5885_v47 = vsel %vm454_vm5, %v5881_v63, %v5883_v23 }
 0xcc4   : > { %7003 = vmatprep.subr.msk.mxu1 %vm8103_vm6, %v5885_v47 }
 0xcc5   : > { %v5879_v9 = vpop.permute.xlu1 %5878 }
 0xcc6   : > { %v5884_v50 = vsel %vm454_vm5, %v5879_v9, %v5881_v63  ;;  %v6053_v56 = vpop.permute.xlu0 %6052  ;;  %vm9360_vm5 = vmmov %vm9359_vm2 }
 0xcc7   : > { %7004 = vmatpush1.msk.msra.mxu1 %vm8114_vm7, %v5884_v50 }
 0xcc8   : > { %7005 = vmatmul.mubr.msk.f32.vlgmr.msra.gmra.mrb[10].mxu1 %vm9359_vm2, %v5890_v13 }
 0xcc9   : > { %v6055_v60 = vpop.permute.xlu1 %6054  ;;  %6130 = vmatprep.mubr.f32.mxu1 %v7912_v0 }
 0xcca   : > { %v6057_v3 = vsel %vm642_vm8, %v6053_v56, %v6055_v60  ;;  %v6051_v7 = vpop.permute.xlu0 %6050 }
 0xccb   : > { %v6056_v4 = vsel %vm642_vm8, %v6051_v7, %v6053_v56  ;;  %7006 = vmatprep.subr.msk.mxu1 %vm8127_vm10, %v6057_v3  ;;  %vm9361_vm8 = vmmov %vm9359_vm2 }
 0xccc   : > { %7007 = vmatpush1.msk.msra.mxu1 %vm8121_vm9, %v6056_v4 }
 0xccd   : > { %v6063_v62 = vpop.permute.xlu1 %6062  ;;  %6155 = vmatprep.subr.mxu1 %v9089_v40 }
 0xcce   : > { %v6152_v48 = vpop.permute.xlu0 %6151 }
 0xcd0   : > { %7008 = vmatmul.mubr.msk.f32.vlgmr.msra.gmra.mrb[10].mxu1 %vm9360_vm5, %v6063_v62 }
 0xcd1   : > { %6156 = vmatpush1.msra.mxu1 %v9086_v38  ;;  %v6142_v5 = vpop.permute.xlu1 %6141  ;;  %6219 = vmatprep.mubr.f32.mxu1 %v7912_v0 }
 0xcd2   : > { %v6144_v6 = vpop.permute.xlu0 %6143 }
 0xcd3   : > { %v6146_v11 = vsel %vm738_vm11, %v6142_v5, %v6144_v6 }
 0xcd4   : > { %7010 = vmatprep.subr.msk.mxu1 %vm8103_vm6, %v6146_v11 }
 0xcd5   : > { %v6140_v12 = vpop.permute.xlu1 %6139 }
 0xcd6   : > { %v6145_v46 = vsel %vm738_vm11, %v6140_v12, %v6142_v5  ;;  %v6227_v15 = vpop.permute.xlu0 %6226  ;;  %vm9364_vm11 = vmmov %vm9359_vm2  ;;  %vm9371_vm2 = vcmask 908288  }
 0xcd8   : > { %7009 = vmatmul.mubr.msk.f32.vlgmr.msra.gmra.mrb[10].mxu1 %vm9361_vm8, %v6152_v48 }
 0xcd9   : > { %7011 = vmatpush1.msk.msra.mxu1 %vm8114_vm7, %v6145_v46  ;;  %v6310_v17 = vpop.permute.xlu1 %6309  ;;  %6294 = vmatprep.mubr.f32.mxu1 %v7912_v0 }
 0xcda   : > { %v6312_v18 = vpop.permute.xlu0 %6311 }
 0xcdb   : > { %v6314_v8 = vsel %vm9362_vm15, %v6310_v17, %v6312_v18 }
 0xcdc   : > { %7013 = vmatprep.subr.msk.mxu1 %vm8127_vm10, %v6314_v8 }
 0xcdd   : > { %v6308_v19 = vpop.permute.xlu1 %6307 }
 0xcde   : > { %v6313_v51 = vsel %vm9363_vm13, %v6308_v19, %v6310_v17  ;;  %v6320_v20 = vpop.permute.xlu0 %6319 }
 0xce0   : > { %7012 = vmatmul.mubr.msk.f32.vlgmr.msra.gmra.mrb[10].mxu1 %vm9364_vm11, %v6227_v15 }
 0xce1   : > { %7014 = vmatpush1.msk.msra.mxu1 %vm8121_vm9, %v6313_v51  ;;  %v6413_v58 = vpop.permute.xlu1 %6412  ;;  %6387 = vmatprep.mubr.f32.mxu1 %v7912_v0 }
 0xce2   : > { %v6415_v57 = vpop.permute.xlu0 %6414 }
 0xce3   : > { %v6417_v21 = vsel %vm9365_vm3, %v6413_v58, %v6415_v57 }
 0xce4   : > { %6422 = vmatprep.subr.mxu1 %v6417_v21 }
 0xce5   : > { %v6411_v22 = vpop.permute.xlu1 %6410 }
 0xce6   : > { %v6416_v24 = vsel %vm9366_vm4, %v6411_v22, %v6413_v58  ;;  %v6409_v25 = vpop.permute.xlu0 %6408 }
 0xce8   : > { %7015 = vmatmul.mubr.msk.f32.vlgmr.msra.gmra.mrb[10].mxu1 %vm9367_vm14, %v6320_v20 }
 0xce9   : > { %6423 = vmatpush1.msra.mxu1 %v6416_v24  ;;  %v6399_v27 = vpop.permute.xlu1 %6398  ;;  %6486 = vmatprep.mubr.f32.mxu1 %v7912_v0 }
 0xcea   : > { %v6401_v10 = vpop.permute.xlu0 %6400 }
 0xceb   : > { %v6403_v14 = vsel %vm9368_vm0, %v6399_v27, %v6401_v10 }
 0xcec   : > { %7017 = vmatprep.subr.msk.mxu1 %vm8103_vm6, %v6403_v14  ;;  %vm9372_vm6 = vmmov %vm9371_vm2 }
 0xced   : > { %v6397_v28 = vpop.permute.xlu1 %6396 }
 0xcee   : > { %v6402_v29 = vsel %vm9369_vm1, %v6397_v28, %v6399_v27  ;;  %v6494_v16 = vpop.permute.xlu0 %6493 }
 0xcf0   : > { %7016 = vmatmul.mubr.msk.f32.vlgmr.msra.gmra.mrb[10].mxu1 %vm9370_vm12, %v6409_v25 }
 0xcf1   : > { %7018 = vmatpush1.msk.msra.mxu1 %vm8114_vm7, %v6402_v29  ;;  %v6571_v55 = vpop.permute.xlu1 %6570  ;;  %6561 = vmatprep.mubr.f32.mxu1 %v7912_v0  ;;  %vm9373_vm7 = vmmov %vm9360_vm5 }
 0xcf2   : > { %v6573_v45 = vpop.permute.xlu0 %6572 }
 0xcf3   : > { %v6575_v30 = vsel %vm9371_vm2, %v6571_v55, %v6573_v45 }
 0xcf4   : > { %7020 = vmatprep.subr.msk.mxu1 %vm8127_vm10, %v6575_v30 }
 0xcf5   : > { %v6569_v26 = vpop.permute.xlu1 %6568 }
 0xcf6   : > { %v6574_v31 = vsel %vm9372_vm6, %v6569_v26, %v6571_v55  ;;  %v6581_v32 = vpop.permute.xlu0 %6580 }
 0xcf8   : > { %7019 = vmatmul.mubr.msk.f32.vlgmr.msra.gmra.mrb[10].mxu1 %vm9360_vm5, %v6494_v16 }
 0xcf9   : > { %7021 = vmatpush1.msk.msra.mxu1 %vm8121_vm9, %v6574_v31  ;;  %6648 = vmatprep.mubr.f32.mxu1 %v7912_v0  ;;  %vm9374_vm9 = vmmov %vm9360_vm5 }
 0xd00   : > { %7022 = vmatmul.mubr.msk.f32.vlgmr.msra.gmra.mrb[10].mxu1 %vm9373_vm7, %v6581_v32 }
 0xd06   : > { %v6663_v49 = vpop.permute.xlu1 %6662 }
 0xd07   : > { %v6680_v54 = vpop.permute.xlu0 %6679 }
 0xdd3   : > { %v6650_v52 = vpop.f32.mrb[10].mxu1 }
 0xdd4   : > { %v7441_v53 = vadd.f32 %v6663_v49, %v6650_v52  ;;  %v6652_v33 = vpop.f32.mrb[11].mxu1 }
 0xdd5   : > { %v7442_v39 = vadd.f32 %v6663_v49, %v6652_v33 }
 0xdd6   : > { %v6671_v34 = vmul.f32 0.01, %v7441_v53  ;;  %vm6669_vm10 = vcmp.ge.f32.partialorder %v7441_v53, 0.0 }
 0xdd7   : > { %v6672_v35 = vmul.f32 0.01, %v7442_v39  ;;  %vm6670_vm8 = vcmp.ge.f32.partialorder %v7442_v39, 0.0 }
 0xdd8   : > { %v6673_v0 = vsel %vm6669_vm10, %v7441_v53, %v6671_v34 }
 0xdd9   : > { %v6674_v37 = vsel %vm6670_vm8, %v7442_v39, %v6672_v35 }
 0xdda   : > { %6685 = vmatprep.subr.mxu0 %v6674_v37 }
 0xddb   : > { %6686 = vmatpush1.msra.mxu0 %v6673_v0 }
 0xddc   : > { %7023 = vmatmul.mubr.msk.f32.vlgmr.msra.gmra.mrb[10].mxu0 %vm9374_vm9, %v6675_v36 }
 0xeaf   : > { %v6751_v38 = vpop.f32.mrb[10].mxu0 }
 0xeb0   : > { %v6752_v40 = vadd.f32 %v6751_v38, %v6680_v54  ;;  %v6753_v13 = vpop.f32.mrb[11].mxu0 }
 0xeb1   : > { %v6754_v59 = vadd.f32 %v6753_v13, %v6680_v54 }
 0xeb3   : > { %v6758_v61 = vcombine.low %v6752_v40, %v6754_v59 }
 0xeb5   : > { %7024 = vst.sshfl [vmem:[%s413_s0] sm:$0x33 pattern:$0x76325410] %v6758_v61 }
 0xeb6 PF: > { %s22_s21 = sadd.s32 1, %s7910_s21  }
 0xeb7   : > { %p19_p4 = scmp.ge.s32.totalorder %s22_s21, 4  }
 0xeb9   :  { %21 = sbr.rel (!%p19_p4) target bundleno = 4 (0x4), region = 98 }

</bundles_post_ra>
